<compile_context>
chip_gen: v7x
topology: tpu7x:2x2x1
jax: 0.10.0
libtpu: 0.0.40
codegen_flags: <defaults>
</compile_context>

<pallas_src>
import functools

import jax
import jax.numpy as jnp
from jax import lax
from jax.experimental import pallas as pl
from jax.experimental.pallas import tpu as pltpu

_NEG_BIG = -1e30  # stands in for -inf in the online logsumexp (exp underflows to 0)


def _round_up(x, m):
    return (x + m - 1) // m * m


# ----------------------------------------------------------------------------
# Fused GraspEnergyNetwork forward + EnergyBasedLoss kernel
# ----------------------------------------------------------------------------
def _fused_fwd_loss_kernel(lbl_ref, x_ref, w1_ref, b1_ref, w2_ref, b2_ref,
                           w3_ref, b3_ref, w4_ref, b4_ref,
                           e_ref, loss_ref,
                           spe, sne, spe2, sne2, npos, nneg, lse_m, lse_s,
                           *, temperature, ml_coeff, l2_coeff, batch,
                           batch_tile):
    """One batch tile: energy-head forward + partial EnergyBasedLoss stats.

    Dropout(p=0.1) is identity in eval mode -> omitted.  Loss accumulators live
    in (1,1) f32 VMEM scratch, persist across the (serial, "arbitrary") grid,
    and the scalar loss is emitted on the last tile.
    """
    i = pl.program_id(0)
    inv_t = 1.0 / temperature

    @pl.when(i == 0)
    def _init():
        for r in (spe, sne, spe2, sne2, npos, nneg, lse_s):
            r[...] = jnp.zeros_like(r)
        lse_m[...] = jnp.full_like(lse_m, _NEG_BIG)

    # ---- energy head: Linear->ReLU x3 (MXU, f32 accumulation) ----
    cdt = w1_ref.dtype
    h = jnp.dot(x_ref[...], w1_ref[...], preferred_element_type=jnp.float32)
    h = jnp.maximum(h + b1_ref[...], 0.0).astype(cdt)
    h = jnp.dot(h, w2_ref[...], preferred_element_type=jnp.float32)
    h = jnp.maximum(h + b2_ref[...], 0.0).astype(cdt)
    h = jnp.dot(h, w3_ref[...], preferred_element_type=jnp.float32)
    h = jnp.maximum(h + b3_ref[...], 0.0)                         # [tb, H3] f32

    # 256 -> 1 head as a VPU multiply + lane reduction (an MXU matmul with
    # N=1 would waste all but one systolic-array column).
    e = jnp.sum(h * w4_ref[...], axis=-1, keepdims=True) + b4_ref[...]  # [tb, 1]
    e_ref[...] = e          # (tb, 1) column block: tiny writeback, no 128x blowup

    # ---- EnergyBasedLoss partial statistics for this tile ----
    row = i * batch_tile + lax.broadcasted_iota(jnp.int32, (batch_tile, 1), 0)
    valid = row < batch                       # [tb, 1] bool, masks padded rows
    validf = valid.astype(jnp.float32)
    pos = lbl_ref[...] * validf               # 1.0 where positive sample
    neg = validf - pos

    # sublane-only reductions (axis=0): never touch physically padded lanes.
    spe[...] += jnp.sum(e * pos, axis=0, keepdims=True)
    sne[...] += jnp.sum(e * neg, axis=0, keepdims=True)
    spe2[...] += jnp.sum(e * e * pos, axis=0, keepdims=True)
    sne2[...] += jnp.sum(e * e * neg, axis=0, keepdims=True)
    npos[...] += jnp.sum(pos, axis=0, keepdims=True)
    nneg[...] += jnp.sum(neg, axis=0, keepdims=True)

    # Online logsumexp of z = -e/T over valid rows (flash-attention style).
    z = jnp.where(valid, -e * inv_t, _NEG_BIG)
    m_new = jnp.maximum(lse_m[...], jnp.max(z, axis=0, keepdims=True))
    lse_s[...] = (lse_s[...] * jnp.exp(lse_m[...] - m_new)
                  + jnp.sum(jnp.exp(z - m_new) * validf, axis=0, keepdims=True))
    lse_m[...] = m_new

    @pl.when(i == pl.num_programs(0) - 1)
    def _finalize():
        pos_mean = spe[...] / npos[...]
        neg_mean = sne[...] / nneg[...]
        log_z = lse_m[...] + jnp.log(lse_s[...])
        nll_loss = pos_mean * inv_t + log_z            # = -(pos log-likelihood)
        contrastive = (pos_mean - neg_mean) * inv_t
        l2_reg = l2_coeff * (spe2[...] / npos[...] + sne2[...] / nneg[...])
        loss_ref[...] = ml_coeff * (nll_loss + contrastive) + l2_reg


def prepare_params(params, compute_dtype=jnp.bfloat16):
    """Hoists parameter-only transforms (dtype cast / reshape) out of the
    per-call path.  w1..w3 feed the MXU in `compute_dtype`; biases and the
    256->1 head stay f32 (f32 accumulation, VPU head reduce)."""
    cdt = jnp.dtype(compute_dtype)
    w1 = params["w1"].astype(cdt)
    w2 = params["w2"].astype(cdt)
    w3 = params["w3"].astype(cdt)
    b1 = params["b1"].reshape(1, -1).astype(jnp.float32)
    b2 = params["b2"].reshape(1, -1).astype(jnp.float32)
    b3 = params["b3"].reshape(1, -1).astype(jnp.float32)
    w4 = params["w4"].reshape(1, -1).astype(jnp.float32)
    b4 = params["b4"].reshape(1, 1).astype(jnp.float32)
    return (w1, b1, w2, b2, w3, b3, w4, b4)


def grasp_energy_loss_forward(x, labels, prepared_params, *, temperature=1.0,
                              ml_coeff=1.0, l2_coeff=0.2, batch_tile=None):
    """Fused GraspEnergyNetwork forward + EnergyBasedLoss.

    x: [B, D], labels: [B] in {0,1} (needs >=1 positive and >=1 negative,
    like the PyTorch module -- otherwise NaN/Inf).  Returns
    (energies [B,1] f32, scalar loss f32) from a single pallas_call.
    """
    B, D = x.shape
    w1, b1, w2, b2, w3, b3, w4, b4 = prepared_params
    H1, H2, H3 = w1.shape[1], w2.shape[1], w3.shape[1]
    cdt = w1.dtype

    # Tile selection (per review): fewest, biggest tiles.  VMEM is not the
    # limit (~3 MB total even at tb=2048); per-grid-step overhead is.  Multiples
    # of 256 fill the 256-wide MXU M dimension on v6e/v7x.
    if batch_tile is None:
        batch_tile = min(2048, _round_up(B, 256))
    if batch_tile % 128 != 0:
        raise ValueError("batch_tile must be a multiple of 128")
    tb = batch_tile

    B_pad = _round_up(B, tb)
    n_tiles = B_pad // tb

    x = x.astype(cdt)
    if B_pad != B:
        x = jnp.pad(x, ((0, B_pad - B), (0, 0)))
    lbl = jnp.pad(labels.reshape(-1).astype(jnp.float32), (0, B_pad - B))
    lbl = lbl.reshape(B_pad, 1)

    kernel = functools.partial(
        _fused_fwd_loss_kernel, temperature=float(temperature),
        ml_coeff=float(ml_coeff), l2_coeff=float(l2_coeff),
        batch=B, batch_tile=tb)

    bytes_in = (x.size * x.dtype.itemsize + lbl.size * 4
                + sum(int(a.size) * a.dtype.itemsize for a in prepared_params))
    cost = pl.CostEstimate(
        flops=2 * B_pad * (D * H1 + H1 * H2 + H2 * H3 + H3),
        transcendentals=B_pad + 8,
        bytes_accessed=int(bytes_in) + B_pad * 4 + 4)

    def const(shape):
        return pl.BlockSpec(shape, lambda i: (0, 0))

    energies, loss = pl.pallas_call(
        kernel,
        out_shape=(jax.ShapeDtypeStruct((B_pad, 1), jnp.float32),
                   jax.ShapeDtypeStruct((1, 1), jnp.float32)),
        grid_spec=pltpu.PrefetchScalarGridSpec(
            num_scalar_prefetch=0,
            grid=(n_tiles,),
            in_specs=[
                pl.BlockSpec((tb, 1), lambda i: (i, 0)),   # labels column
                pl.BlockSpec((tb, D), lambda i: (i, 0)),   # x tile (full-D block)
                const((D, H1)), const((1, H1)),            # layer 1
                const((H1, H2)), const((1, H2)),           # layer 2
                const((H2, H3)), const((1, H3)),           # layer 3
                const((1, H3)), const((1, 1)),             # 256->1 head
            ],
            out_specs=[
                pl.BlockSpec((tb, 1), lambda i: (i, 0)),   # energies
                pl.BlockSpec((1, 1), lambda i: (0, 0)),    # loss (last tile)
            ],
            scratch_shapes=[pltpu.VMEM((1, 1), jnp.float32)] * 8),
        compiler_params=pltpu.CompilerParams(
            # Loss accumulators carry across tiles -> the grid axis is a
            # (serial) reduction axis.
            dimension_semantics=("arbitrary",)),
        cost_estimate=cost,
    )(lbl, x, w1, b1, w2, b2, w3, b3, w4, b4)

    if B_pad != B:
        energies = energies[:B]
    return energies, loss[0, 0]


# ----------------------------------------------------------------------------
# Standalone EnergyBasedLoss kernel (exact spec-module interface)
# ----------------------------------------------------------------------------
def _ebm_loss_kernel(e_ref, lbl_ref, o_ref, *, temperature, ml_coeff, l2_coeff,
                     batch):
    """EnergyBasedLoss.forward on a dense 2-D (R, 128) layout with an explicit
    validity mask (exact for any batch size)."""
    e = e_ref[...]
    lbl = lbl_ref[...]
    r, c = e.shape
    idx = (lax.broadcasted_iota(jnp.int32, (r, c), 0) * c
           + lax.broadcasted_iota(jnp.int32, (r, c), 1))
    valid = idx < batch
    validf = valid.astype(jnp.float32)
    pos = lbl * validf
    neg = validf - pos
    inv_t = 1.0 / temperature

    n_pos = jnp.sum(pos, keepdims=True)
    n_neg = jnp.sum(neg, keepdims=True)
    pos_mean = jnp.sum(e * pos, keepdims=True) / n_pos
    neg_mean = jnp.sum(e * neg, keepdims=True) / n_neg

    z = jnp.where(valid, -e * inv_t, _NEG_BIG)
    m = jnp.max(z, keepdims=True)
    log_z = m + jnp.log(jnp.sum(jnp.exp(z - m) * validf, keepdims=True))

    nll_loss = pos_mean * inv_t + log_z
    contrastive = (pos_mean - neg_mean) * inv_t
    l2_reg = l2_coeff * (jnp.sum(e * e * pos, keepdims=True) / n_pos
                         + jnp.sum(e * e * neg, keepdims=True) / n_neg)
    o_ref[...] = ml_coeff * (nll_loss + contrastive) + l2_reg


def energy_based_loss(energies, labels, *, temperature=1.0, ml_coeff=1.0,
                      l2_coeff=0.2):
    """Standalone Pallas EnergyBasedLoss: energies [B,1] (or [B]), labels [B].

    Boolean-mask means are computed as mask-weighted means (identical math,
    static shapes).  Requires >=1 positive and >=1 negative label (else the
    result is NaN/Inf, matching the PyTorch module).
    """
    B = energies.shape[0]
    C = 128
    R = _round_up(pl.cdiv(B, C), 8)   # sublane dim multiple of 8: dense vregs
    Bp = R * C
    e = jnp.pad(energies.reshape(-1).astype(jnp.float32), (0, Bp - B))
    lbl = jnp.pad(labels.reshape(-1).astype(jnp.float32), (0, Bp - B))
    e = e.reshape(R, C)
    lbl = lbl.reshape(R, C)

    kernel = functools.partial(_ebm_loss_kernel, temperature=float(temperature),
                               ml_coeff=float(ml_coeff),
                               l2_coeff=float(l2_coeff), batch=B)
    cost = pl.CostEstimate(flops=16 * Bp, transcendentals=Bp + 2,
                           bytes_accessed=8 * Bp + 4)
    out = pl.pallas_call(
        kernel,
        out_shape=jax.ShapeDtypeStruct((1, 1), jnp.float32),
        grid_spec=pltpu.PrefetchScalarGridSpec(
            num_scalar_prefetch=0,
            grid=(1,),
            in_specs=[pl.BlockSpec((R, C), lambda i: (0, 0)),
                      pl.BlockSpec((R, C), lambda i: (0, 0))],
            out_specs=pl.BlockSpec((1, 1), lambda i: (0, 0))),
        compiler_params=pltpu.CompilerParams(dimension_semantics=("arbitrary",)),
        cost_estimate=cost,
    )(e, lbl)
    return out[0, 0]


# ----------------------------------------------------------------------------
# Parameter init + pure-JAX references
# ----------------------------------------------------------------------------
def init_params(key, input_dim, hidden_dims=(256, 256, 256)):
    """kaiming_normal_(nonlinearity='linear') => std = 1/sqrt(fan_in), bias=0.
    Weights stored transposed vs PyTorch: [in_features, out_features]."""
    dims = [input_dim] + list(hidden_dims) + [1]
    keys = jax.random.split(key, len(dims) - 1)
    params = {}
    for idx, (fan_in, fan_out) in enumerate(zip(dims[:-1], dims[1:]), start=1):
        std = 1.0 / jnp.sqrt(jnp.float32(fan_in))
        params[f"w{idx}"] = (jax.random.normal(keys[idx - 1], (fan_in, fan_out),
                                               jnp.float32) * std)
        params[f"b{idx}"] = jnp.zeros((1, fan_out), jnp.float32)
    return params


def reference_forward(x, params, compute_dtype=jnp.float32):
    """Pure-JAX reference for the energy head (eval mode)."""
    cdt = jnp.dtype(compute_dtype)

    def layer(h, w, b, relu):
        y = jnp.dot(h.astype(cdt), w.astype(cdt),
                    preferred_element_type=jnp.float32,
                    precision=lax.Precision.HIGHEST) + b.astype(jnp.float32)
        return jnp.maximum(y, 0.0) if relu else y

    h = layer(x, params["w1"], params["b1"], True)
    h = layer(h, params["w2"], params["b2"], True)
    h = layer(h, params["w3"], params["b3"], True)
    return layer(h, params["w4"], params["b4"], False)


def reference_energy_based_loss(energies, labels, temperature=1.0,
                                ml_coeff=1.0, l2_coeff=0.2):
    """Pure-JAX reference for EnergyBasedLoss.forward."""
    e = energies.reshape(-1).astype(jnp.float32)
    pos = labels.reshape(-1).astype(jnp.float32)
    neg = 1.0 - pos
    pos_mean = jnp.sum(e * pos) / jnp.sum(pos)
    neg_mean = jnp.sum(e * neg) / jnp.sum(neg)
    z = -e / temperature
    log_z = jnp.max(z) + jnp.log(jnp.sum(jnp.exp(z - jnp.max(z))))
    nll = pos_mean / temperature + log_z
    contrastive = (pos_mean - neg_mean) / temperature
    l2 = l2_coeff * (jnp.sum(e * e * pos) / jnp.sum(pos)
                     + jnp.sum(e * e * neg) / jnp.sum(neg))
    return ml_coeff * (nll + contrastive) + l2


# ----------------------------------------------------------------------------
# Demo / correctness check
# ----------------------------------------------------------------------------
if __name__ == "__main__":
    key = jax.random.PRNGKey(0)
    k_param, k_x, k_lbl = jax.random.split(key, 3)

    batch, input_dim = 300, 64      # B deliberately NOT a multiple of 128
    params = init_params(k_param, input_dim)
    x = jax.random.normal(k_x, (batch, input_dim), jnp.float32)
    labels = (jax.random.uniform(k_lbl, (batch,)) < 0.5).astype(jnp.float32)
    labels = labels.at[0].set(1.0).at[1].set(0.0)  # guarantee >=1 pos & >=1 neg

    # --- fused forward + loss, f32 MXU path, forced multi-tile (3 tiles, last padded)
    p_f32 = prepare_params(params, jnp.float32)
    e_f32, loss_f32 = grasp_energy_loss_forward(x, labels, p_f32, batch_tile=128)
    e_f32 = jax.block_until_ready(e_f32)
    loss_f32 = jax.block_until_ready(loss_f32)
    assert e_f32.shape == (batch, 1)
    ref_e = reference_forward(x, params)
    err_e = float(jnp.max(jnp.abs(e_f32 - ref_e)))
    assert err_e < 2e-2, f"f32 energy mismatch: {err_e}"
    ref_loss = float(reference_energy_based_loss(e_f32, labels))
    err_l = abs(float(loss_f32) - ref_loss)
    assert err_l < 5e-3 + 1e-3 * abs(ref_loss), (float(loss_f32), ref_loss)

    # --- fused forward + loss, default bf16 MXU path, default (single) tile
    p_bf16 = prepare_params(params)        # compute_dtype defaults to bfloat16
    e_b, loss_b = grasp_energy_loss_forward(x, labels, p_bf16)
    e_b = jax.block_until_ready(e_b)
    loss_b = jax.block_until_ready(loss_b)
    ref_e_b = reference_forward(x, params, compute_dtype=jnp.bfloat16)
    err_b = float(jnp.max(jnp.abs(e_b - ref_e_b)))
    assert err_b < 1e-1, f"bf16 energy mismatch: {err_b}"
    ref_loss_b = float(reference_energy_based_loss(e_b, labels))
    err_lb = abs(float(loss_b) - ref_loss_b)
    assert err_lb < 5e-3 + 1e-3 * abs(ref_loss_b), (float(loss_b), ref_loss_b)

    # --- standalone EnergyBasedLoss kernel (the spec module), B=300 != k*128
    loss_s = jax.block_until_ready(energy_based_loss(e_f32, labels))
    err_s = abs(float(loss_s) - ref_loss)
    assert err_s < 5e-3 + 1e-3 * abs(ref_loss), (float(loss_s), ref_loss)

    print("KERNEL_OK")
</pallas_src>

<mosaic_0001>
module attributes {stable_mosaic.version = 11 : i64} {
  func.func @_fused_fwd_loss_kernel(%arg0: i32, %arg1: memref<128x1xf32, #tpu.memory_space<vmem>>, %arg2: memref<128x64xf32, #tpu.memory_space<vmem>>, %arg3: memref<64x256xf32, #tpu.memory_space<vmem>>, %arg4: memref<1x256xf32, #tpu.memory_space<vmem>>, %arg5: memref<256x256xf32, #tpu.memory_space<vmem>>, %arg6: memref<1x256xf32, #tpu.memory_space<vmem>>, %arg7: memref<256x256xf32, #tpu.memory_space<vmem>>, %arg8: memref<1x256xf32, #tpu.memory_space<vmem>>, %arg9: memref<1x256xf32, #tpu.memory_space<vmem>>, %arg10: memref<1x1xf32, #tpu.memory_space<vmem>>, %arg11: memref<128x1xf32, #tpu.memory_space<vmem>>, %arg12: memref<1x1xf32, #tpu.memory_space<vmem>>, %arg13: memref<1x1xf32, #tpu.memory_space<vmem>>, %arg14: memref<1x1xf32, #tpu.memory_space<vmem>>, %arg15: memref<1x1xf32, #tpu.memory_space<vmem>>, %arg16: memref<1x1xf32, #tpu.memory_space<vmem>>, %arg17: memref<1x1xf32, #tpu.memory_space<vmem>>, %arg18: memref<1x1xf32, #tpu.memory_space<vmem>>, %arg19: memref<1x1xf32, #tpu.memory_space<vmem>>, %arg20: memref<1x1xf32, #tpu.memory_space<vmem>>) attributes {dimension_semantics = [#tpu.dimension_semantics<arbitrary>], iteration_bounds = array<i64: 3>, scalar_prefetch = 0 : i64, scratch_operands = 8 : i64, tpu.core_type = #tpu.core_type<tc>, window_params = [{transform_indices = @transform_0, window_bounds = array<i64: 128, 1>}, {transform_indices = @transform_1, window_bounds = array<i64: 128, 64>}, {pipeline_mode = #tpu.pipeline_mode<synchronous>, transform_indices = @transform_2, window_bounds = array<i64: 64, 256>}, {pipeline_mode = #tpu.pipeline_mode<synchronous>, transform_indices = @transform_3, window_bounds = array<i64: 1, 256>}, {pipeline_mode = #tpu.pipeline_mode<synchronous>, transform_indices = @transform_4, window_bounds = array<i64: 256, 256>}, {pipeline_mode = #tpu.pipeline_mode<synchronous>, transform_indices = @transform_5, window_bounds = array<i64: 1, 256>}, {pipeline_mode = #tpu.pipeline_mode<synchronous>, transform_indices = @transform_6, window_bounds = array<i64: 256, 256>}, {pipeline_mode = #tpu.pipeline_mode<synchronous>, transform_indices = @transform_7, window_bounds = array<i64: 1, 256>}, {pipeline_mode = #tpu.pipeline_mode<synchronous>, transform_indices = @transform_8, window_bounds = array<i64: 1, 256>}, {pipeline_mode = #tpu.pipeline_mode<synchronous>, transform_indices = @transform_9, window_bounds = array<i64: 1, 1>}, {transform_indices = @transform_10, window_bounds = array<i64: 128, 1>}, {pipeline_mode = #tpu.pipeline_mode<synchronous>, transform_indices = @transform_11, window_bounds = array<i64: 1, 1>}]} {
    %c0_i32 = arith.constant 0 : i32
    %0 = arith.cmpi eq, %arg0, %c0_i32 : i32
    %1 = arith.extui %0 : i1 to i32
    %c0_i32_0 = arith.constant 0 : i32
    %2 = arith.cmpi ne, %1, %c0_i32_0 : i32
    scf.if %2 {
      %cst_74 = arith.constant 0.000000e+00 : f32
      %108 = vector.broadcast %cst_74 : f32 to vector<1x1xf32>
      %c0_75 = arith.constant 0 : index
      %c0_76 = arith.constant 0 : index
      %109 = vector.load %arg13[%c0_75, %c0_76] : memref<1x1xf32, #tpu.memory_space<vmem>>, vector<1x1xf32>
      tpu.vector_store %arg13[%c0_75, %c0_76], %108 {strides = array<i32>} : memref<1x1xf32, #tpu.memory_space<vmem>>, vector<1x1xf32>,
      %cst_77 = arith.constant 0.000000e+00 : f32
      %110 = vector.broadcast %cst_77 : f32 to vector<1x1xf32>
      %c0_78 = arith.constant 0 : index
      %c0_79 = arith.constant 0 : index
      %111 = vector.load %arg14[%c0_78, %c0_79] : memref<1x1xf32, #tpu.memory_space<vmem>>, vector<1x1xf32>
      tpu.vector_store %arg14[%c0_78, %c0_79], %110 {strides = array<i32>} : memref<1x1xf32, #tpu.memory_space<vmem>>, vector<1x1xf32>,
      %cst_80 = arith.constant 0.000000e+00 : f32
      %112 = vector.broadcast %cst_80 : f32 to vector<1x1xf32>
      %c0_81 = arith.constant 0 : index
      %c0_82 = arith.constant 0 : index
      %113 = vector.load %arg15[%c0_81, %c0_82] : memref<1x1xf32, #tpu.memory_space<vmem>>, vector<1x1xf32>
      tpu.vector_store %arg15[%c0_81, %c0_82], %112 {strides = array<i32>} : memref<1x1xf32, #tpu.memory_space<vmem>>, vector<1x1xf32>,
      %cst_83 = arith.constant 0.000000e+00 : f32
      %114 = vector.broadcast %cst_83 : f32 to vector<1x1xf32>
      %c0_84 = arith.constant 0 : index
      %c0_85 = arith.constant 0 : index
      %115 = vector.load %arg16[%c0_84, %c0_85] : memref<1x1xf32, #tpu.memory_space<vmem>>, vector<1x1xf32>
      tpu.vector_store %arg16[%c0_84, %c0_85], %114 {strides = array<i32>} : memref<1x1xf32, #tpu.memory_space<vmem>>, vector<1x1xf32>,
      %cst_86 = arith.constant 0.000000e+00 : f32
      %116 = vector.broadcast %cst_86 : f32 to vector<1x1xf32>
      %c0_87 = arith.constant 0 : index
      %c0_88 = arith.constant 0 : index
      %117 = vector.load %arg17[%c0_87, %c0_88] : memref<1x1xf32, #tpu.memory_space<vmem>>, vector<1x1xf32>
      tpu.vector_store %arg17[%c0_87, %c0_88], %116 {strides = array<i32>} : memref<1x1xf32, #tpu.memory_space<vmem>>, vector<1x1xf32>,
      %cst_89 = arith.constant 0.000000e+00 : f32
      %118 = vector.broadcast %cst_89 : f32 to vector<1x1xf32>
      %c0_90 = arith.constant 0 : index
      %c0_91 = arith.constant 0 : index
      %119 = vector.load %arg18[%c0_90, %c0_91] : memref<1x1xf32, #tpu.memory_space<vmem>>, vector<1x1xf32>
      tpu.vector_store %arg18[%c0_90, %c0_91], %118 {strides = array<i32>} : memref<1x1xf32, #tpu.memory_space<vmem>>, vector<1x1xf32>,
      %cst_92 = arith.constant 0.000000e+00 : f32
      %120 = vector.broadcast %cst_92 : f32 to vector<1x1xf32>
      %c0_93 = arith.constant 0 : index
      %c0_94 = arith.constant 0 : index
      %121 = vector.load %arg20[%c0_93, %c0_94] : memref<1x1xf32, #tpu.memory_space<vmem>>, vector<1x1xf32>
      tpu.vector_store %arg20[%c0_93, %c0_94], %120 {strides = array<i32>} : memref<1x1xf32, #tpu.memory_space<vmem>>, vector<1x1xf32>,
      %cst_95 = arith.constant -1.000000e+30 : f32
      %122 = vector.broadcast %cst_95 : f32 to vector<1x1xf32>
      %c0_96 = arith.constant 0 : index
      %c0_97 = arith.constant 0 : index
      %123 = vector.load %arg19[%c0_96, %c0_97] : memref<1x1xf32, #tpu.memory_space<vmem>>, vector<1x1xf32>
      tpu.vector_store %arg19[%c0_96, %c0_97], %122 {strides = array<i32>} : memref<1x1xf32, #tpu.memory_space<vmem>>, vector<1x1xf32>,
    } else {
    }
    %c0 = arith.constant 0 : index
    %c0_1 = arith.constant 0 : index
    %3 = vector.load %arg2[%c0, %c0_1] : memref<128x64xf32, #tpu.memory_space<vmem>>, vector<128x64xf32>
    %c0_2 = arith.constant 0 : index
    %c0_3 = arith.constant 0 : index
    %4 = vector.load %arg3[%c0_2, %c0_3] : memref<64x256xf32, #tpu.memory_space<vmem>>, vector<64x256xf32>
    %cst = arith.constant dense<0.000000e+00> : vector<128x256xf32>
    %5 = tpu.matmul %3, %4, %cst {dimension_numbers = #tpu.dot_dimension_numbers<[1], [0], [0], [1], [0, 0, 1, 1], [], []>} : vector<128x64xf32>, vector<64x256xf32>, vector<128x256xf32> -> vector<128x256xf32>
    %c0_4 = arith.constant 0 : index
    %c0_5 = arith.constant 0 : index
    %6 = vector.load %arg4[%c0_4, %c0_5] : memref<1x256xf32, #tpu.memory_space<vmem>>, vector<1x256xf32>
    %7 = vector.broadcast %6 : vector<1x256xf32> to vector<128x256xf32>
    %8 = arith.addf %5, %7 : vector<128x256xf32>
    %cst_6 = arith.constant 0.000000e+00 : f32
    %9 = vector.broadcast %cst_6 : f32 to vector<128x256xf32>
    %10 = arith.maximumf %8, %9 : vector<128x256xf32>
    %c0_7 = arith.constant 0 : index
    %c0_8 = arith.constant 0 : index
    %11 = vector.load %arg5[%c0_7, %c0_8] : memref<256x256xf32, #tpu.memory_space<vmem>>, vector<256x256xf32>
    %cst_9 = arith.constant dense<0.000000e+00> : vector<128x256xf32>
    %12 = tpu.matmul %10, %11, %cst_9 {dimension_numbers = #tpu.dot_dimension_numbers<[1], [0], [0], [1], [0, 0, 1, 1], [], []>} : vector<128x256xf32>, vector<256x256xf32>, vector<128x256xf32> -> vector<128x256xf32>
    %c0_10 = arith.constant 0 : index
    %c0_11 = arith.constant 0 : index
    %13 = vector.load %arg6[%c0_10, %c0_11] : memref<1x256xf32, #tpu.memory_space<vmem>>, vector<1x256xf32>
    %14 = vector.broadcast %13 : vector<1x256xf32> to vector<128x256xf32>
    %15 = arith.addf %12, %14 : vector<128x256xf32>
    %cst_12 = arith.constant 0.000000e+00 : f32
    %16 = vector.broadcast %cst_12 : f32 to vector<128x256xf32>
    %17 = arith.maximumf %15, %16 : vector<128x256xf32>
    %c0_13 = arith.constant 0 : index
    %c0_14 = arith.constant 0 : index
    %18 = vector.load %arg7[%c0_13, %c0_14] : memref<256x256xf32, #tpu.memory_space<vmem>>, vector<256x256xf32>
    %cst_15 = arith.constant dense<0.000000e+00> : vector<128x256xf32>
    %19 = tpu.matmul %17, %18, %cst_15 {dimension_numbers = #tpu.dot_dimension_numbers<[1], [0], [0], [1], [0, 0, 1, 1], [], []>} : vector<128x256xf32>, vector<256x256xf32>, vector<128x256xf32> -> vector<128x256xf32>
    %c0_16 = arith.constant 0 : index
    %c0_17 = arith.constant 0 : index
    %20 = vector.load %arg8[%c0_16, %c0_17] : memref<1x256xf32, #tpu.memory_space<vmem>>, vector<1x256xf32>
    %21 = vector.broadcast %20 : vector<1x256xf32> to vector<128x256xf32>
    %22 = arith.addf %19, %21 : vector<128x256xf32>
    %cst_18 = arith.constant 0.000000e+00 : f32
    %23 = vector.broadcast %cst_18 : f32 to vector<128x256xf32>
    %24 = arith.maximumf %22, %23 : vector<128x256xf32>
    %c0_19 = arith.constant 0 : index
    %c0_20 = arith.constant 0 : index
    %25 = vector.load %arg9[%c0_19, %c0_20] : memref<1x256xf32, #tpu.memory_space<vmem>>, vector<1x256xf32>
    %26 = vector.broadcast %25 : vector<1x256xf32> to vector<128x256xf32>
    %27 = arith.mulf %24, %26 : vector<128x256xf32>
    %cst_21 = arith.constant dense<0.000000e+00> : vector<128xf32>
    %28 = vector.multi_reduction <add>, %27, %cst_21 [1] : vector<128x256xf32> to vector<128xf32>
    %29 = vector.shape_cast %28 : vector<128xf32> to vector<128x1xf32>
    %c0_22 = arith.constant 0 : index
    %c0_23 = arith.constant 0 : index
    %30 = vector.load %arg10[%c0_22, %c0_23] : memref<1x1xf32, #tpu.memory_space<vmem>>, vector<1x1xf32>
    %31 = vector.broadcast %30 : vector<1x1xf32> to vector<128x1xf32>
    %32 = arith.addf %29, %31 : vector<128x1xf32>
    %c0_24 = arith.constant 0 : index
    %c0_25 = arith.constant 0 : index
    %33 = vector.load %arg11[%c0_24, %c0_25] : memref<128x1xf32, #tpu.memory_space<vmem>>, vector<128x1xf32>
    tpu.vector_store %arg11[%c0_24, %c0_25], %32 {strides = array<i32>} : memref<128x1xf32, #tpu.memory_space<vmem>>, vector<128x1xf32>,
    %c128_i32 = arith.constant 128 : i32
    %34 = arith.muli %arg0, %c128_i32 : i32
    %35 = tpu.iota {dimensions = array<i32: 0>} : vector<128x1xi32>
    %36 = vector.broadcast %34 : i32 to vector<128x1xi32>
    %37 = arith.addi %36, %35 : vector<128x1xi32>
    %c300_i32 = arith.constant 300 : i32
    %38 = vector.broadcast %c300_i32 : i32 to vector<128x1xi32>
    %39 = arith.cmpi slt, %37, %38 : vector<128x1xi32>
    %40 = arith.extui %39 : vector<128x1xi1> to vector<128x1xi32>
    %41 = arith.sitofp %40 : vector<128x1xi32> to vector<128x1xf32>
    %c0_26 = arith.constant 0 : index
    %c0_27 = arith.constant 0 : index
    %42 = vector.load %arg1[%c0_26, %c0_27] : memref<128x1xf32, #tpu.memory_space<vmem>>, vector<128x1xf32>
    %43 = arith.mulf %42, %41 : vector<128x1xf32>
    %44 = arith.subf %41, %43 : vector<128x1xf32>
    %c0_28 = arith.constant 0 : index
    %c0_29 = arith.constant 0 : index
    %45 = vector.load %arg13[%c0_28, %c0_29] : memref<1x1xf32, #tpu.memory_space<vmem>>, vector<1x1xf32>
    %46 = arith.mulf %32, %43 : vector<128x1xf32>
    %cst_30 = arith.constant dense<0.000000e+00> : vector<1xf32>
    %47 = vector.multi_reduction <add>, %46, %cst_30 [0] : vector<128x1xf32> to vector<1xf32>
    %48 = vector.shape_cast %47 : vector<1xf32> to vector<1x1xf32>
    %49 = arith.addf %45, %48 : vector<1x1xf32>
    %c0_31 = arith.constant 0 : index
    %c0_32 = arith.constant 0 : index
    %50 = vector.load %arg13[%c0_31, %c0_32] : memref<1x1xf32, #tpu.memory_space<vmem>>, vector<1x1xf32>
    tpu.vector_store %arg13[%c0_31, %c0_32], %49 {strides = array<i32>} : memref<1x1xf32, #tpu.memory_space<vmem>>, vector<1x1xf32>,
    %c0_33 = arith.constant 0 : index
    %c0_34 = arith.constant 0 : index
    %51 = vector.load %arg14[%c0_33, %c0_34] : memref<1x1xf32, #tpu.memory_space<vmem>>, vector<1x1xf32>
    %52 = arith.mulf %32, %44 : vector<128x1xf32>
    %cst_35 = arith.constant dense<0.000000e+00> : vector<1xf32>
    %53 = vector.multi_reduction <add>, %52, %cst_35 [0] : vector<128x1xf32> to vector<1xf32>
    %54 = vector.shape_cast %53 : vector<1xf32> to vector<1x1xf32>
    %55 = arith.addf %51, %54 : vector<1x1xf32>
    %c0_36 = arith.constant 0 : index
    %c0_37 = arith.constant 0 : index
    %56 = vector.load %arg14[%c0_36, %c0_37] : memref<1x1xf32, #tpu.memory_space<vmem>>, vector<1x1xf32>
    tpu.vector_store %arg14[%c0_36, %c0_37], %55 {strides = array<i32>} : memref<1x1xf32, #tpu.memory_space<vmem>>, vector<1x1xf32>,
    %c0_38 = arith.constant 0 : index
    %c0_39 = arith.constant 0 : index
    %57 = vector.load %arg15[%c0_38, %c0_39] : memref<1x1xf32, #tpu.memory_space<vmem>>, vector<1x1xf32>
    %58 = arith.mulf %32, %32 : vector<128x1xf32>
    %59 = arith.mulf %58, %43 : vector<128x1xf32>
    %cst_40 = arith.constant dense<0.000000e+00> : vector<1xf32>
    %60 = vector.multi_reduction <add>, %59, %cst_40 [0] : vector<128x1xf32> to vector<1xf32>
    %61 = vector.shape_cast %60 : vector<1xf32> to vector<1x1xf32>
    %62 = arith.addf %57, %61 : vector<1x1xf32>
    %c0_41 = arith.constant 0 : index
    %c0_42 = arith.constant 0 : index
    %63 = vector.load %arg15[%c0_41, %c0_42] : memref<1x1xf32, #tpu.memory_space<vmem>>, vector<1x1xf32>
    tpu.vector_store %arg15[%c0_41, %c0_42], %62 {strides = array<i32>} : memref<1x1xf32, #tpu.memory_space<vmem>>, vector<1x1xf32>,
    %c0_43 = arith.constant 0 : index
    %c0_44 = arith.constant 0 : index
    %64 = vector.load %arg16[%c0_43, %c0_44] : memref<1x1xf32, #tpu.memory_space<vmem>>, vector<1x1xf32>
    %65 = arith.mulf %32, %32 : vector<128x1xf32>
    %66 = arith.mulf %65, %44 : vector<128x1xf32>
    %cst_45 = arith.constant dense<0.000000e+00> : vector<1xf32>
    %67 = vector.multi_reduction <add>, %66, %cst_45 [0] : vector<128x1xf32> to vector<1xf32>
    %68 = vector.shape_cast %67 : vector<1xf32> to vector<1x1xf32>
    %69 = arith.addf %64, %68 : vector<1x1xf32>
    %c0_46 = arith.constant 0 : index
    %c0_47 = arith.constant 0 : index
    %70 = vector.load %arg16[%c0_46, %c0_47] : memref<1x1xf32, #tpu.memory_space<vmem>>, vector<1x1xf32>
    tpu.vector_store %arg16[%c0_46, %c0_47], %69 {strides = array<i32>} : memref<1x1xf32, #tpu.memory_space<vmem>>, vector<1x1xf32>,
    %c0_48 = arith.constant 0 : index
    %c0_49 = arith.constant 0 : index
    %71 = vector.load %arg17[%c0_48, %c0_49] : memref<1x1xf32, #tpu.memory_space<vmem>>, vector<1x1xf32>
    %cst_50 = arith.constant dense<0.000000e+00> : vector<1xf32>
    %72 = vector.multi_reduction <add>, %43, %cst_50 [0] : vector<128x1xf32> to vector<1xf32>
    %73 = vector.shape_cast %72 : vector<1xf32> to vector<1x1xf32>
    %74 = arith.addf %71, %73 : vector<1x1xf32>
    %c0_51 = arith.constant 0 : index
    %c0_52 = arith.constant 0 : index
    %75 = vector.load %arg17[%c0_51, %c0_52] : memref<1x1xf32, #tpu.memory_space<vmem>>, vector<1x1xf32>
    tpu.vector_store %arg17[%c0_51, %c0_52], %74 {strides = array<i32>} : memref<1x1xf32, #tpu.memory_space<vmem>>, vector<1x1xf32>,
    %c0_53 = arith.constant 0 : index
    %c0_54 = arith.constant 0 : index
    %76 = vector.load %arg18[%c0_53, %c0_54] : memref<1x1xf32, #tpu.memory_space<vmem>>, vector<1x1xf32>
    %cst_55 = arith.constant dense<0.000000e+00> : vector<1xf32>
    %77 = vector.multi_reduction <add>, %44, %cst_55 [0] : vector<128x1xf32> to vector<1xf32>
    %78 = vector.shape_cast %77 : vector<1xf32> to vector<1x1xf32>
    %79 = arith.addf %76, %78 : vector<1x1xf32>
    %c0_56 = arith.constant 0 : index
    %c0_57 = arith.constant 0 : index
    %80 = vector.load %arg18[%c0_56, %c0_57] : memref<1x1xf32, #tpu.memory_space<vmem>>, vector<1x1xf32>
    tpu.vector_store %arg18[%c0_56, %c0_57], %79 {strides = array<i32>} : memref<1x1xf32, #tpu.memory_space<vmem>>, vector<1x1xf32>,
    %cst_58 = arith.constant 0.000000e+00 : f32
    %81 = vector.broadcast %cst_58 : f32 to vector<128x1xf32>
    %82 = arith.subf %81, %32 : vector<128x1xf32>
    %cst_59 = arith.constant 1.000000e+00 : f32
    %83 = vector.broadcast %cst_59 : f32 to vector<128x1xf32>
    %84 = arith.mulf %82, %83 : vector<128x1xf32>
    %cst_60 = arith.constant -1.000000e+30 : f32
    %85 = vector.broadcast %cst_60 : f32 to vector<128x1xf32>
    %86 = arith.select %39, %84, %85 : vector<128x1xi1>, vector<128x1xf32>
    %c0_61 = arith.constant 0 : index
    %c0_62 = arith.constant 0 : index
    %87 = vector.load %arg19[%c0_61, %c0_62] : memref<1x1xf32, #tpu.memory_space<vmem>>, vector<1x1xf32>
    %cst_63 = arith.constant dense<0xFF800000> : vector<1xf32>
    %88 = vector.multi_reduction <maximumf>, %86, %cst_63 [0] : vector<128x1xf32> to vector<1xf32>
    %89 = vector.shape_cast %88 : vector<1xf32> to vector<1x1xf32>
    %90 = arith.maximumf %87, %89 : vector<1x1xf32>
    %c0_64 = arith.constant 0 : index
    %c0_65 = arith.constant 0 : index
    %91 = vector.load %arg20[%c0_64, %c0_65] : memref<1x1xf32, #tpu.memory_space<vmem>>, vector<1x1xf32>
    %c0_66 = arith.constant 0 : index
    %c0_67 = arith.constant 0 : index
    %92 = vector.load %arg19[%c0_66, %c0_67] : memref<1x1xf32, #tpu.memory_space<vmem>>, vector<1x1xf32>
    %93 = arith.subf %92, %90 : vector<1x1xf32>
    %94 = math.exp %93 : vector<1x1xf32>
    %95 = arith.mulf %91, %94 : vector<1x1xf32>
    %96 = vector.broadcast %90 : vector<1x1xf32> to vector<128x1xf32>
    %97 = arith.subf %86, %96 : vector<128x1xf32>
    %98 = math.exp %97 : vector<128x1xf32>
    %99 = arith.mulf %98, %41 : vector<128x1xf32>
    %cst_68 = arith.constant dense<0.000000e+00> : vector<1xf32>
    %100 = vector.multi_reduction <add>, %99, %cst_68 [0] : vector<128x1xf32> to vector<1xf32>
    %101 = vector.shape_cast %100 : vector<1xf32> to vector<1x1xf32>
    %102 = arith.addf %95, %101 : vector<1x1xf32>
    %c0_69 = arith.constant 0 : index
    %c0_70 = arith.constant 0 : index
    %103 = vector.load %arg20[%c0_69, %c0_70] : memref<1x1xf32, #tpu.memory_space<vmem>>, vector<1x1xf32>
    tpu.vector_store %arg20[%c0_69, %c0_70], %102 {strides = array<i32>} : memref<1x1xf32, #tpu.memory_space<vmem>>, vector<1x1xf32>,
    %c0_71 = arith.constant 0 : index
    %c0_72 = arith.constant 0 : index
    %104 = vector.load %arg19[%c0_71, %c0_72] : memref<1x1xf32, #tpu.memory_space<vmem>>, vector<1x1xf32>
    tpu.vector_store %arg19[%c0_71, %c0_72], %90 {strides = array<i32>} : memref<1x1xf32, #tpu.memory_space<vmem>>, vector<1x1xf32>,
    %c2_i32 = arith.constant 2 : i32
    %105 = arith.cmpi eq, %arg0, %c2_i32 : i32
    %106 = arith.extui %105 : i1 to i32
    %c0_i32_73 = arith.constant 0 : i32
    %107 = arith.cmpi ne, %106, %c0_i32_73 : i32
    scf.if %107 {
      %c0_74 = arith.constant 0 : index
      %c0_75 = arith.constant 0 : index
      %108 = vector.load %arg13[%c0_74, %c0_75] : memref<1x1xf32, #tpu.memory_space<vmem>>, vector<1x1xf32>
      %c0_76 = arith.constant 0 : index
      %c0_77 = arith.constant 0 : index
      %109 = vector.load %arg17[%c0_76, %c0_77] : memref<1x1xf32, #tpu.memory_space<vmem>>, vector<1x1xf32>
      %110 = arith.divf %108, %109 : vector<1x1xf32>
      %c0_78 = arith.constant 0 : index
      %c0_79 = arith.constant 0 : index
      %111 = vector.load %arg14[%c0_78, %c0_79] : memref<1x1xf32, #tpu.memory_space<vmem>>, vector<1x1xf32>
      %c0_80 = arith.constant 0 : index
      %c0_81 = arith.constant 0 : index
      %112 = vector.load %arg18[%c0_80, %c0_81] : memref<1x1xf32, #tpu.memory_space<vmem>>, vector<1x1xf32>
      %113 = arith.divf %111, %112 : vector<1x1xf32>
      %c0_82 = arith.constant 0 : index
      %c0_83 = arith.constant 0 : index
      %114 = vector.load %arg19[%c0_82, %c0_83] : memref<1x1xf32, #tpu.memory_space<vmem>>, vector<1x1xf32>
      %c0_84 = arith.constant 0 : index
      %c0_85 = arith.constant 0 : index
      %115 = vector.load %arg20[%c0_84, %c0_85] : memref<1x1xf32, #tpu.memory_space<vmem>>, vector<1x1xf32>
      %116 = math.log %115 : vector<1x1xf32>
      %117 = arith.addf %114, %116 : vector<1x1xf32>
      %cst_86 = arith.constant 1.000000e+00 : f32
      %118 = vector.broadcast %cst_86 : f32 to vector<1x1xf32>
      %119 = arith.mulf %110, %118 : vector<1x1xf32>
      %120 = arith.addf %119, %117 : vector<1x1xf32>
      %121 = arith.subf %110, %113 : vector<1x1xf32>
      %cst_87 = arith.constant 1.000000e+00 : f32
      %122 = vector.broadcast %cst_87 : f32 to vector<1x1xf32>
      %123 = arith.mulf %121, %122 : vector<1x1xf32>
      %c0_88 = arith.constant 0 : index
      %c0_89 = arith.constant 0 : index
      %124 = vector.load %arg15[%c0_88, %c0_89] : memref<1x1xf32, #tpu.memory_space<vmem>>, vector<1x1xf32>
      %c0_90 = arith.constant 0 : index
      %c0_91 = arith.constant 0 : index
      %125 = vector.load %arg17[%c0_90, %c0_91] : memref<1x1xf32, #tpu.memory_space<vmem>>, vector<1x1xf32>
      %126 = arith.divf %124, %125 : vector<1x1xf32>
      %c0_92 = arith.constant 0 : index
      %c0_93 = arith.constant 0 : index
      %127 = vector.load %arg16[%c0_92, %c0_93] : memref<1x1xf32, #tpu.memory_space<vmem>>, vector<1x1xf32>
      %c0_94 = arith.constant 0 : index
      %c0_95 = arith.constant 0 : index
      %128 = vector.load %arg18[%c0_94, %c0_95] : memref<1x1xf32, #tpu.memory_space<vmem>>, vector<1x1xf32>
      %129 = arith.divf %127, %128 : vector<1x1xf32>
      %130 = arith.addf %126, %129 : vector<1x1xf32>
      %cst_96 = arith.constant 2.000000e-01 : f32
      %131 = vector.broadcast %cst_96 : f32 to vector<1x1xf32>
      %132 = arith.mulf %131, %130 : vector<1x1xf32>
      %133 = arith.addf %120, %123 : vector<1x1xf32>
      %cst_97 = arith.constant 1.000000e+00 : f32
      %134 = vector.broadcast %cst_97 : f32 to vector<1x1xf32>
      %135 = arith.mulf %134, %133 : vector<1x1xf32>
      %136 = arith.addf %135, %132 : vector<1x1xf32>
      %c0_98 = arith.constant 0 : index
      %c0_99 = arith.constant 0 : index
      %137 = vector.load %arg12[%c0_98, %c0_99] : memref<1x1xf32, #tpu.memory_space<vmem>>, vector<1x1xf32>
      tpu.vector_store %arg12[%c0_98, %c0_99], %136 {strides = array<i32>} : memref<1x1xf32, #tpu.memory_space<vmem>>, vector<1x1xf32>,
    } else {
    }
    return
  }
  func.func @transform_0(%arg0: i32) -> (i32, i32) {
    %c0_i32 = arith.constant 0 : i32
    %c0_i32_0 = arith.constant 0 : i32
    return %arg0, %c0_i32 : i32, i32
  }
  func.func @transform_1(%arg0: i32) -> (i32, i32) {
    %c0_i32 = arith.constant 0 : i32
    %c0_i32_0 = arith.constant 0 : i32
    return %arg0, %c0_i32 : i32, i32
  }
  func.func @transform_2(%arg0: i32) -> (i32, i32) {
    %c0_i32 = arith.constant 0 : i32
    %c0_i32_0 = arith.constant 0 : i32
    %c0_i32_1 = arith.constant 0 : i32
    return %c0_i32, %c0_i32_0 : i32, i32
  }
  func.func @transform_3(%arg0: i32) -> (i32, i32) {
    %c0_i32 = arith.constant 0 : i32
    %c0_i32_0 = arith.constant 0 : i32
    %c0_i32_1 = arith.constant 0 : i32
    return %c0_i32, %c0_i32_0 : i32, i32
  }
  func.func @transform_4(%arg0: i32) -> (i32, i32) {
    %c0_i32 = arith.constant 0 : i32
    %c0_i32_0 = arith.constant 0 : i32
    %c0_i32_1 = arith.constant 0 : i32
    return %c0_i32, %c0_i32_0 : i32, i32
  }
  func.func @transform_5(%arg0: i32) -> (i32, i32) {
    %c0_i32 = arith.constant 0 : i32
    %c0_i32_0 = arith.constant 0 : i32
    %c0_i32_1 = arith.constant 0 : i32
    return %c0_i32, %c0_i32_0 : i32, i32
  }
  func.func @transform_6(%arg0: i32) -> (i32, i32) {
    %c0_i32 = arith.constant 0 : i32
    %c0_i32_0 = arith.constant 0 : i32
    %c0_i32_1 = arith.constant 0 : i32
    return %c0_i32, %c0_i32_0 : i32, i32
  }
  func.func @transform_7(%arg0: i32) -> (i32, i32) {
    %c0_i32 = arith.constant 0 : i32
    %c0_i32_0 = arith.constant 0 : i32
    %c0_i32_1 = arith.constant 0 : i32
    return %c0_i32, %c0_i32_0 : i32, i32
  }
  func.func @transform_8(%arg0: i32) -> (i32, i32) {
    %c0_i32 = arith.constant 0 : i32
    %c0_i32_0 = arith.constant 0 : i32
    %c0_i32_1 = arith.constant 0 : i32
    return %c0_i32, %c0_i32_0 : i32, i32
  }
  func.func @transform_9(%arg0: i32) -> (i32, i32) {
    %c0_i32 = arith.constant 0 : i32
    %c0_i32_0 = arith.constant 0 : i32
    %c0_i32_1 = arith.constant 0 : i32
    return %c0_i32, %c0_i32_0 : i32, i32
  }
  func.func @transform_10(%arg0: i32) -> (i32, i32) {
    %c0_i32 = arith.constant 0 : i32
    %c0_i32_0 = arith.constant 0 : i32
    return %arg0, %c0_i32 : i32, i32
  }
  func.func @transform_11(%arg0: i32) -> (i32, i32) {
    %c0_i32 = arith.constant 0 : i32
    %c0_i32_0 = arith.constant 0 : i32
    %c0_i32_1 = arith.constant 0 : i32
    return %c0_i32, %c0_i32_0 : i32, i32
  }
}

</mosaic_0001>

<bundles_post_ra>
// kernel: tpu_custom_call.1
= control target key start
LH: loop header
LB: loop body
LE: loop exit
PB: predicated region body
PF: predicated region fallthrough
CT: control target
= control target key end

     0   :  { %s3984_s0 = inlined_call_operand.vmem [shape: f32[384,1], index: 0, kind: input, shape index: {}]   ;;  %s3985_s1 = inlined_call_operand.vmem [shape: f32[384,64], index: 1, kind: input, shape index: {}]   ;;  %s3986_s2 = inlined_call_operand.vmem [shape: f32[64,256], index: 2, kind: input, shape index: {}]   ;;  %s3987_s3 = inlined_call_operand.vmem [shape: f32[1,256], index: 3, kind: input, shape index: {}]   ;;  %s3988_s4 = inlined_call_operand.vmem [shape: f32[256,256], index: 4, kind: input, shape index: {}]   ;;  %s3989_s5 = inlined_call_operand.vmem [shape: f32[1,256], index: 5, kind: input, shape index: {}]   ;;  %s3990_s6 = inlined_call_operand.hbm [shape: f32[256,256], index: 6, kind: input, shape index: {}]   ;;  %s3991_s7 = inlined_call_operand.vmem [shape: f32[1,256], index: 7, kind: input, shape index: {}]   ;;  %s3992_s8 = inlined_call_operand.vmem [shape: f32[1,256], index: 8, kind: input, shape index: {}]   ;;  %s3993_s9 = inlined_call_operand.<no memory space> [shape: f32[1,1], index: 9, kind: input, shape index: {}]   ;;  %s3994_s10 = inlined_call_operand.vmem [shape: f32[384,1], index: 10, kind: output, shape index: {0}]   ;;  %s3995_s11 = inlined_call_operand.hbm [shape: f32[1,1], index: 11, kind: output, shape index: {1}]  }
   0x1   :  { %v17_v0 = vstv %s3993_s9 }
   0x2   :  { %18 = vst [vmem:[#allocation10] sm:$0x1] %v17_v0 }
   0x3   :  { %19 = vsyncpa [#allocation12], 0 }
   0x4   :  { %20 = vsyncpa [#allocation13], 0  ;;  %s2607_s19 = smov 0  }
   0x5 LB: > { %s2613_s20 = sadd.s32 4294967295, %s2535_s19   ;;  %p2169_p0 = scmp.ge.s32.totalorder %s2535_s19, 1  ;;  %s2535_s19 = sphi %s2607_s19, %s26_s19  }
   0x6   : > { %p298_p1 = scmp.lt.s32.totalorder %s2535_s19, 4  ;;  %s2537_s9 = smov [#allocation11]  }
   0x7   : > { %s322_s21 = sshll.u32 %s2537_s9, 4  ;;  %p3996_p4 = scmp.eq.s32.totalorder %s2613_s20, 0  ;;  %s323_s21 = int_to_ptr.vmem [resolvable:$true] %s322_s21 }
   0x8   : > { %p2618_p3 = pnand %p2169_p0, %p298_p1  ;;  %s2467_s26 = scalar_lea.hbm %s3990_s6, 8192 }
   0x9   : > { %p2468_p7 = scmp.ne.s32.totalorder %s3990_s6, %s2467_s26  ;;  %p2474_p11 = scmp.lt.u32.totalorder %s2467_s26, %s3990_s6 }
   0xa   : > { %s4028_s22 = scalar_select %p2618_p3, 1, 0 }
   0xb   : > { %p2404_p5 = pneg %p2618_p3 }
   0xd   : > { %p2627_p6 = pnand %p3996_p4, %p2404_p5 }
   0xf   : > { %p2469_p8 = pneg %p2627_p6 }
  0x11   : > { %p2470_p9 = pnand %p2469_p8, %p2468_p7 }
  0x13   : > { %p2471_p10 = pneg %p2470_p9 }
  0x15   : > { %p2476_p12 = pnand %p2474_p11, %p2471_p10 }
  0x17   : > { %2479 = shalt.err (!%p2476_p12)
}
  0x18   : > { %s2480_s12 = scalar_lea.vmem %s323_s21, 8192  ;;  %p2488_p5 = scmp.lt.s32.totalorder %s323_s21, %s323_s21 }
  0x19   : > { %p2481_p13 = scmp.ne.s32.totalorder %s323_s21, %s2480_s12  ;;  %p2489_p2 = scmp.lt.s32.totalorder %s2480_s12, %s2480_s12 }
  0x1b   : > { %p2483_p0 = pnand %p2481_p13, %p2469_p8  ;;  %p2490_p4 = por %p2489_p2, %p2488_p5 }
  0x1d   : > { %p2484_p1 = pneg %p2483_p0 }
  0x1f   : > { %p2491_p3 = pnand %p2490_p4, %p2484_p1 }
  0x21   : > { %2494 = shalt.err (!%p2491_p3)
}
  0x22   : > { %s2538_s13 = smov 256   ;;  %s2539_s14 = smov 16  }
  0x23   : > { %2407 = dma.hbm_to_vmem [thread:$0]  (!%p2627_p6), %s3990_s6, 8192, %s323_s21, [#allocation12], %s2538_s13, %s2538_s13, %s2539_s14  }
  0x24   : > { %p4030_p7 = scmp.ne.s32.totalorder %s4028_s22, 0 }
  0x26   : > { %365 = sbr.rel (%p4030_p7) target bundleno = 1087 (0x43f), region = 60 }
  0x2d   : > { %p4031_p9 = scmp.eq.s32.totalorder %s2613_s20, 0 }
  0x2f   : > { %2526 = dma.done.wait (%p4031_p9), [#allocation12], 8192   ;;  %p4032_p8 = pmov %p4031_p9 }
  0x30   : > { %s2174_s17 = sshll.u32 %s2613_s20, 4  ;;  %p4033_p3 = scmp.ne.s32.totalorder %s2613_s20, 0 }
  0x31   : > { %2528 = vsyncadd (%p4032_p8), [#allocation12], 4294959104  ;;  %p411_p2 = scmp.lt.s32.totalorder %s2174_s17, 47  ;;  %vm432_vm0 = vcmask (!%p4033_p3), 0   ;;  %v2540_v1 = vmov (!%p4033_p3), 0.0  }
  0x32   : > { %431 = sbr.rel (%p4033_p3) target bundleno = 57 (0x39), region = 68  ;;  %433 = vst.msk [vmem:[#allocation2] sm:$0x1] (!%p4033_p3), %vm432_vm0, %v2540_v1  ;;  %434 = vst.msk [vmem:[#allocation3] sm:$0x1] (!%p4033_p3), %vm432_vm0, %v2540_v1 }
  0x33   : > { %s4086_s17 = smov (!%p411_p2, %s2174_s17), 47  ;;  %435 = vst.msk [vmem:[#allocation4] sm:$0x1] (!%p4033_p3), %vm432_vm0, %v2540_v1  ;;  %436 = vst.msk [vmem:[#allocation5] sm:$0x1] (!%p4033_p3), %vm432_vm0, %v2540_v1 }
  0x34   : > { %s2175_s18 = sshll.u32 %s4086_s17, 3  ;;  %437 = vst.msk [vmem:[#allocation6] sm:$0x1] (!%p4033_p3), %vm432_vm0, %v2540_v1  ;;  %438 = vst.msk [vmem:[#allocation7] sm:$0x1] (!%p4033_p3), %vm432_vm0, %v2540_v1 }
  0x35   : > { %s2657_s24 = scalar_lea.vmem %s3984_s0, %s2175_s18  ;;  %s2662_s22 = scalar_lea.vmem %s3985_s1, %s2175_s18  ;;  %439 = vst.msk [vmem:[#allocation9] sm:$0x1] (!%p4033_p3), %vm432_vm0, %v2540_v1  ;;  %v2541_v2 = vmov (!%p4033_p3), -1e+30  }
  0x36   : > { %s2667_s28 = scalar_lea.vmem %s3994_s10, %s2175_s18  ;;  %440 = vst.msk [vmem:[#allocation8] sm:$0x1] (!%p4033_p3), %vm432_vm0, %v2541_v2 }
  0x39 PF: > { %v458_v3 = vld [vmem:[%s3986_s2 + $0x8] sm:$0xff]  ;;  %v460_v4 = vld [vmem:[%s3986_s2 + $0x18] sm:$0xff]  ;;  %v457_v5 = vld [vmem:[%s3986_s2] sm:$0xff]  ;;  %v3998_v10 = vmov 0.0   ;;  %vm485_vm1 = vcmask 523264   ;;  %s2198_s12 = sshll.u32 %s2613_s20, 7 }
  0x3a   : > { %v2220_v6 = vpack.c.bf16 %v460_v4, %v458_v3  ;;  %v459_v7 = vld [vmem:[%s3986_s2 + $0x10] sm:$0xff]  ;;  %v462_v8 = vld [vmem:[%s3986_s2 + $0x28] sm:$0xff]  ;;  %v464_v9 = vld [vmem:[%s3986_s2 + $0x38] sm:$0xff]  ;;  %598 = vmatprep.mubr.f32.mxu0 %v3998_v10  ;;  %vm1380_vm5 = vcmask 7168   ;;  %p2215_p4 = scmp.ne.s32.totalorder %s2613_s20, 2 }
  0x3b   : > { %v2222_v11 = vpack.c.bf16 %v459_v7, %v457_v5  ;;  %v2224_v12 = vpack.c.bf16 %v464_v9, %v462_v8  ;;  %v461_v13 = vld [vmem:[%s3986_s2 + $0x20] sm:$0xff]  ;;  %v463_v14 = vld [vmem:[%s3986_s2 + $0x30] sm:$0xff]  ;;  %v466_v15 = vld [vmem:[%s3986_s2 + $0x48] sm:$0xff] }
  0x3c   : > { %2221 = vmatprep.subr.bf16.mxu0 %v2220_v6  ;;  %v468_v16 = vld [vmem:[%s3986_s2 + $0x58] sm:$0xff]  ;;  %v2226_v17 = vpack.c.bf16 %v463_v14, %v461_v13  ;;  %v465_v19 = vld [vmem:[%s3986_s2 + $0x40] sm:$0xff]  ;;  %v467_v20 = vld [vmem:[%s3986_s2 + $0x50] sm:$0xff] }
  0x3d   : > { %2223 = vmatpush1.bf16.msra.mxu0 %v2222_v11  ;;  %v2228_v18 = vpack.c.bf16 %v468_v16, %v466_v15  ;;  %v470_v21 = vld [vmem:[%s3986_s2 + $0x68] sm:$0xff]  ;;  %v472_v22 = vld [vmem:[%s3986_s2 + $0x78] sm:$0xff]  ;;  %v2230_v23 = vpack.c.bf16 %v467_v20, %v465_v19  ;;  %v469_v25 = vld [vmem:[%s3986_s2 + $0x60] sm:$0xff] }
  0x3e   : > { %2225 = vmatprep.subr.bf16.mxu0 %v2224_v12  ;;  %v2232_v24 = vpack.c.bf16 %v472_v22, %v470_v21  ;;  %v471_v26 = vld [vmem:[%s3986_s2 + $0x70] sm:$0xff]  ;;  %v728_v27 = vld [vmem:[%s3988_s4 + $0x8] sm:$0xff]  ;;  %v730_v28 = vld [vmem:[%s3988_s4 + $0x18] sm:$0xff] }
  0x3f   : > { %v727_v29 = vld [vmem:[%s3988_s4] sm:$0xff]  ;;  %v729_v30 = vld [vmem:[%s3988_s4 + $0x10] sm:$0xff]  ;;  %v2234_v31 = vpack.c.bf16 %v471_v26, %v469_v25  ;;  %v2236_v32 = vpack.c.bf16 %v730_v28, %v728_v27  ;;  %v732_v34 = vld [vmem:[%s3988_s4 + $0x28] sm:$0xff] }
  0x40   : > { %v2238_v33 = vpack.c.bf16 %v729_v30, %v727_v29  ;;  %v734_v35 = vld [vmem:[%s3988_s4 + $0x38] sm:$0xff]  ;;  %v731_v36 = vld [vmem:[%s3988_s4 + $0x20] sm:$0xff]  ;;  %v733_v38 = vld [vmem:[%s3988_s4 + $0x30] sm:$0xff] }
  0x41   : > { %2227 = vmatpush1.bf16.msra.mxu0 %v2226_v17  ;;  %v2240_v37 = vpack.c.bf16 %v734_v35, %v732_v34  ;;  %v736_v39 = vld [vmem:[%s3988_s4 + $0x48] sm:$0xff]  ;;  %v738_v40 = vld [vmem:[%s3988_s4 + $0x58] sm:$0xff]  ;;  %2237 = vmatprep.subr.bf16.mxu1 %v2236_v32  ;;  %v2242_v41 = vpack.c.bf16 %v733_v38, %v731_v36  ;;  %v441_v42 = vld [vmem:[%s2662_s22] sm:$0xff] }
  0x42   : > { %2229 = vmatprep.subr.bf16.mxu0 %v2228_v18  ;;  %2239 = vmatpush1.bf16.msra.mxu1 %v2238_v33  ;;  %v2244_v43 = vpack.c.bf16 %v738_v40, %v736_v39  ;;  %v735_v44 = vld [vmem:[%s3988_s4 + $0x40] sm:$0xff]  ;;  %v737_v45 = vld [vmem:[%s3988_s4 + $0x50] sm:$0xff]  ;;  %v740_v46 = vld [vmem:[%s3988_s4 + $0x68] sm:$0xff] }
  0x43   : > { %2241 = vmatprep.subr.bf16.mxu1 %v2240_v37  ;;  %v742_v47 = vld [vmem:[%s3988_s4 + $0x78] sm:$0xff]  ;;  %v2246_v48 = vpack.c.bf16 %v737_v45, %v735_v44  ;;  %v442_v49 = vld [vmem:[%s2662_s22 + $0x8] sm:$0xff]  ;;  %v739_v51 = vld [vmem:[%s3988_s4 + $0x60] sm:$0xff] }
  0x44   : > { %v2248_v50 = vpack.c.bf16 %v742_v47, %v740_v46  ;;  %v741_v52 = vld [vmem:[%s3988_s4 + $0x70] sm:$0xff]  ;;  %v744_v53 = vld [vmem:[%s3988_s4 + $0x88] sm:$0xff]  ;;  %v746_v54 = vld [vmem:[%s3988_s4 + $0x98] sm:$0xff] }
  0x45   : > { %2231 = vmatpush1.bf16.msra.mxu0 %v2230_v23  ;;  %v2250_v55 = vpack.c.bf16 %v741_v52, %v739_v51  ;;  %v443_v56 = vld [vmem:[%s2662_s22 + $0x10] sm:$0xff]  ;;  %v2252_v57 = vpack.c.bf16 %v746_v54, %v744_v53  ;;  %v743_v58 = vld [vmem:[%s3988_s4 + $0x80] sm:$0xff]  ;;  %v748_v60 = vld [vmem:[%s3988_s4 + $0xa8] sm:$0xff] }
  0x46   : > { %2233 = vmatprep.subr.bf16.mxu0 %v2232_v24  ;;  %2243 = vmatpush1.bf16.msra.mxu1 %v2242_v41  ;;  %v745_v59 = vld [vmem:[%s3988_s4 + $0x90] sm:$0xff]  ;;  %v750_v61 = vld [vmem:[%s3988_s4 + $0xb8] sm:$0xff]  ;;  %v747_v1 = vld [vmem:[%s3988_s4 + $0xa0] sm:$0xff] }
  0x47   : > { %2245 = vmatprep.subr.bf16.mxu1 %v2244_v43  ;;  %v2254_v62 = vpack.c.bf16 %v745_v59, %v743_v58  ;;  %v444_v63 = vld [vmem:[%s2662_s22 + $0x18] sm:$0xff]  ;;  %v2256_v0 = vpack.c.bf16 %v750_v61, %v748_v60  ;;  %v749_v2 = vld [vmem:[%s3988_s4 + $0xb0] sm:$0xff]  ;;  %v752_v3 = vld [vmem:[%s3988_s4 + $0xc8] sm:$0xff] }
  0x48   : > { %v754_v4 = vld [vmem:[%s3988_s4 + $0xd8] sm:$0xff]  ;;  %v2258_v5 = vpack.c.bf16 %v749_v2, %v747_v1  ;;  %v445_v6 = vld [vmem:[%s2662_s22 + $0x20] sm:$0xff]  ;;  %v753_v9 = vld [vmem:[%s3988_s4 + $0xd0] sm:$0xff] }
  0x49   : > { %2235 = vmatpush1.bf16.msra.mxu0 %v2234_v31  ;;  %v2260_v7 = vpack.c.bf16 %v754_v4, %v752_v3  ;;  %v751_v8 = vld [vmem:[%s3988_s4 + $0xc0] sm:$0xff]  ;;  %v756_v11 = vld [vmem:[%s3988_s4 + $0xe8] sm:$0xff]  ;;  %v758_v12 = vld [vmem:[%s3988_s4 + $0xf8] sm:$0xff] }
  0x4a   : > { %2247 = vmatpush1.bf16.msra.mxu1 %v2246_v48  ;;  %v2262_v13 = vpack.c.bf16 %v753_v9, %v751_v8  ;;  %v446_v14 = vld [vmem:[%s2662_s22 + $0x28] sm:$0xff]  ;;  %v2264_v15 = vpack.c.bf16 %v758_v12, %v756_v11  ;;  %v755_v16 = vld [vmem:[%s3988_s4 + $0xe0] sm:$0xff]  ;;  %v757_v17 = vld [vmem:[%s3988_s4 + $0xf0] sm:$0xff] }
  0x4b   : > { %2249 = vmatprep.subr.bf16.mxu1 %v2248_v50  ;;  %v760_v18 = vld [vmem:[%s3988_s4 + $0x108] sm:$0xff]  ;;  %v762_v19 = vld [vmem:[%s3988_s4 + $0x118] sm:$0xff]  ;;  %v2266_v20 = vpack.c.bf16 %v757_v17, %v755_v16  ;;  %v447_v21 = vld [vmem:[%s2662_s22 + $0x30] sm:$0xff] }
  0x4c   : > { %2181 = vmatmul.mubr.msk.f32.vlgmr.msra.gmra.mrb[0].mxu0 %vm485_vm1, %v441_v42  ;;  %v2268_v22 = vpack.c.bf16 %v762_v19, %v760_v18  ;;  %v759_v23 = vld [vmem:[%s3988_s4 + $0x100] sm:$0xff]  ;;  %v761_v24 = vld [vmem:[%s3988_s4 + $0x110] sm:$0xff]  ;;  %v764_v25 = vld [vmem:[%s3988_s4 + $0x128] sm:$0xff] }
  0x4d   : > { %604 = vmatprep.mubr.f32.mxu0 %v3998_v10  ;;  %v766_v26 = vld [vmem:[%s3988_s4 + $0x138] sm:$0xff]  ;;  %v2270_v27 = vpack.c.bf16 %v761_v24, %v759_v23  ;;  %v763_v30 = vld [vmem:[%s3988_s4 + $0x120] sm:$0xff]  ;;  %v765_v31 = vld [vmem:[%s3988_s4 + $0x130] sm:$0xff] }
  0x4e   : > { %2251 = vmatpush1.bf16.msra.mxu1 %v2250_v55  ;;  %v448_v28 = vld [vmem:[%s2662_s22 + $0x38] sm:$0xff]  ;;  %v2272_v29 = vpack.c.bf16 %v766_v26, %v764_v25  ;;  %v768_v32 = vld [vmem:[%s3988_s4 + $0x148] sm:$0xff]  ;;  %v2274_v34 = vpack.c.bf16 %v765_v31, %v763_v30  ;;  %v449_v35 = vld [vmem:[%s2662_s22 + $0x40] sm:$0xff] }
  0x4f   : > { %2253 = vmatprep.subr.bf16.mxu1 %v2252_v57  ;;  %v770_v33 = vld [vmem:[%s3988_s4 + $0x158] sm:$0xff]  ;;  %v767_v37 = vld [vmem:[%s3988_s4 + $0x140] sm:$0xff]  ;;  %v769_v38 = vld [vmem:[%s3988_s4 + $0x150] sm:$0xff] }
  0x50   : > { %2182 = vmatmul.mubr.msk.f32.gmra.mrb[2].mxu0 %vm485_vm1, %v442_v49  ;;  %v2276_v36 = vpack.c.bf16 %v770_v33, %v768_v32  ;;  %v772_v39 = vld [vmem:[%s3988_s4 + $0x168] sm:$0xff]  ;;  %v774_v40 = vld [vmem:[%s3988_s4 + $0x178] sm:$0xff]  ;;  %v2278_v41 = vpack.c.bf16 %v769_v38, %v767_v37  ;;  %v771_v44 = vld [vmem:[%s3988_s4 + $0x160] sm:$0xff] }
  0x51   : > { %610 = vmatprep.mubr.f32.mxu0 %v3998_v10  ;;  %v450_v42 = vld [vmem:[%s2662_s22 + $0x48] sm:$0xff]  ;;  %v2280_v43 = vpack.c.bf16 %v774_v40, %v772_v39  ;;  %v773_v45 = vld [vmem:[%s3988_s4 + $0x170] sm:$0xff]  ;;  %v778_v47 = vld [vmem:[%s3988_s4 + $0x198] sm:$0xff] }
  0x52   : > { %2255 = vmatpush1.bf16.msra.mxu1 %v2254_v62  ;;  %v776_v46 = vld [vmem:[%s3988_s4 + $0x188] sm:$0xff]  ;;  %v2282_v48 = vpack.c.bf16 %v773_v45, %v771_v44  ;;  %v451_v49 = vld [vmem:[%s2662_s22 + $0x50] sm:$0xff]  ;;  %v775_v51 = vld [vmem:[%s3988_s4 + $0x180] sm:$0xff] }
  0x53   : > { %2257 = vmatprep.subr.bf16.mxu1 %v2256_v0  ;;  %v2284_v50 = vpack.c.bf16 %v778_v47, %v776_v46  ;;  %v777_v52 = vld [vmem:[%s3988_s4 + $0x190] sm:$0xff]  ;;  %v780_v53 = vld [vmem:[%s3988_s4 + $0x1a8] sm:$0xff]  ;;  %v782_v54 = vld [vmem:[%s3988_s4 + $0x1b8] sm:$0xff] }
  0x54   : > { %2183 = vmatmul.mubr.msk.f32.gmra.mrb[4].mxu0 %vm485_vm1, %v443_v56  ;;  %v2286_v55 = vpack.c.bf16 %v777_v52, %v775_v51  ;;  %v452_v56 = vld [vmem:[%s2662_s22 + $0x58] sm:$0xff]  ;;  %v2288_v57 = vpack.c.bf16 %v782_v54, %v780_v53  ;;  %v779_v58 = vld [vmem:[%s3988_s4 + $0x1a0] sm:$0xff]  ;;  %v781_v59 = vld [vmem:[%s3988_s4 + $0x1b0] sm:$0xff] }
  0x55   : > { %616 = vmatprep.mubr.f32.mxu0 %v3998_v10  ;;  %v784_v60 = vld [vmem:[%s3988_s4 + $0x1c8] sm:$0xff]  ;;  %v786_v61 = vld [vmem:[%s3988_s4 + $0x1d8] sm:$0xff]  ;;  %v2290_v62 = vpack.c.bf16 %v781_v59, %v779_v58  ;;  %v455_v2 = vld [vmem:[%s2662_s22 + $0x70] sm:$0xff] }
  0x56   : > { %2259 = vmatpush1.bf16.msra.mxu1 %v2258_v5  ;;  %v2292_v0 = vpack.c.bf16 %v786_v61, %v784_v60  ;;  %v454_v1 = vld [vmem:[%s2662_s22 + $0x68] sm:$0xff]  ;;  %v456_v3 = vld [vmem:[%s2662_s22 + $0x78] sm:$0xff]  ;;  %v783_v4 = vld [vmem:[%s3988_s4 + $0x1c0] sm:$0xff] }
  0x57   : > { %2261 = vmatprep.subr.bf16.mxu1 %v2260_v7  ;;  %v785_v5 = vld [vmem:[%s3988_s4 + $0x1d0] sm:$0xff]  ;;  %v788_v7 = vld [vmem:[%s3988_s4 + $0x1e8] sm:$0xff]  ;;  %v790_v8 = vld [vmem:[%s3988_s4 + $0x1f8] sm:$0xff] }
  0x58   : > { %2184 = vmatmul.mubr.msk.f32.gmra.mrb[6].mxu0 %vm485_vm1, %v444_v63  ;;  %v453_v63 = vld [vmem:[%s2662_s22 + $0x60] sm:$0xff]  ;;  %v2296_v9 = vpack.c.bf16 %v790_v8, %v788_v7  ;;  %v789_v12 = vld [vmem:[%s3988_s4 + $0x1f0] sm:$0xff] }
  0x59   : > { %622 = vmatprep.mubr.f32.mxu0 %v3998_v10  ;;  %v787_v11 = vld [vmem:[%s3988_s4 + $0x1e0] sm:$0xff]  ;;  %v996_v16 = vld [vmem:[#allocation11] sm:$0xff]  ;;  %v1001_v19 = vld [vmem:[#allocation11 + $0x28] sm:$0xff] }
  0x5a   : > { %2263 = vmatpush1.bf16.msra.mxu1 %v2262_v13  ;;  %v2298_v13 = vpack.c.bf16 %v789_v12, %v787_v11  ;;  %v998_v18 = vld [vmem:[#allocation11 + $0x10] sm:$0xff]  ;;  %v1000_v23 = vld [vmem:[#allocation11 + $0x20] sm:$0xff]  ;;  %v1005_v25 = vld [vmem:[#allocation11 + $0x48] sm:$0xff] }
  0x5b   : > { %2265 = vmatprep.subr.bf16.mxu1 %v2264_v15  ;;  %v999_v15 = vld [vmem:[#allocation11 + $0x18] sm:$0xff]  ;;  %v1002_v24 = vld [vmem:[#allocation11 + $0x30] sm:$0xff]  ;;  %v1009_v31 = vld [vmem:[#allocation11 + $0x68] sm:$0xff] }
  0x5c   : > { %2185 = vmatmul.mubr.msk.f32.gmra.mrb[8].mxu0 %vm485_vm1, %v445_v6  ;;  %v2294_v6 = vpack.c.bf16 %v785_v5, %v783_v4  ;;  %v1007_v26 = vld [vmem:[#allocation11 + $0x58] sm:$0xff]  ;;  %v1006_v30 = vld [vmem:[#allocation11 + $0x50] sm:$0xff]  ;;  %v1013_v37 = vld [vmem:[#allocation11 + $0x88] sm:$0xff] }
  0x5d   : > { %628 = vmatprep.mubr.f32.mxu0 %v3998_v10  ;;  %v1011_v32 = vld [vmem:[#allocation11 + $0x78] sm:$0xff]  ;;  %v1016_v47 = vld [vmem:[#allocation11 + $0xa0] sm:$0xff]  ;;  %v1022_v54 = vld [vmem:[#allocation11 + $0xd0] sm:$0xff] }
  0x5e   : > { %2267 = vmatpush1.bf16.msra.mxu1 %v2266_v20  ;;  %v1003_v20 = vld [vmem:[#allocation11 + $0x38] sm:$0xff]  ;;  %v1020_v53 = vld [vmem:[#allocation11 + $0xc0] sm:$0xff]  ;;  %v1026_v60 = vld [vmem:[#allocation11 + $0xf0] sm:$0xff] }
  0x5f   : > { %2269 = vmatprep.subr.bf16.mxu1 %v2268_v22  ;;  %v2961_v22 = vpack.c.bf16 %v1003_v20, %v1001_v19  ;;  %v1015_v38 = vld [vmem:[#allocation11 + $0x98] sm:$0xff]  ;;  %v1024_v59 = vld [vmem:[#allocation11 + $0xe0] sm:$0xff]  ;;  %v1029_v61 = vld [vmem:[#allocation11 + $0x108] sm:$0xff] }
  0x60   : > { %2186 = vmatmul.mubr.msk.f32.gmra.mrb[10].mxu0 %vm485_vm1, %v446_v14  ;;  %v997_v14 = vld [vmem:[#allocation11 + $0x8] sm:$0xff]  ;;  %v2979_v40 = vpack.c.bf16 %v1015_v38, %v1013_v37  ;;  %v1019_v44 = vld [vmem:[#allocation11 + $0xb8] sm:$0xff]  ;;  %v1032_v7 = vld [vmem:[#allocation11 + $0x120] sm:$0xff] }
  0x61   : > { %634 = vmatprep.mubr.f32.mxu0 %v3998_v10  ;;  %v2300_v17 = vpack.c.bf16 %v999_v15, %v997_v14  ;;  %v1035_v4 = vld [vmem:[#allocation11 + $0x138] sm:$0xff]  ;;  %v1034_v8 = vld [vmem:[#allocation11 + $0x130] sm:$0xff]  ;;  %v1036_v14 = vld [vmem:[#allocation11 + $0x140] sm:$0xff] }
  0x62   : > { %2271 = vmatpush1.bf16.msra.mxu1 %v2270_v27  ;;  %v2964_v27 = vpack.c.bf16 %v1002_v24, %v1000_v23  ;;  %v1039_v11 = vld [vmem:[#allocation11 + $0x158] sm:$0xff]  ;;  %v3012_v12 = vpack.c.bf16 %v1034_v8, %v1032_v7  ;;  %v1038_v15 = vld [vmem:[#allocation11 + $0x150] sm:$0xff]  ;;  %v1040_v20 = vld [vmem:[#allocation11 + $0x160] sm:$0xff] }
  0x63   : > { %2273 = vmatprep.subr.bf16.mxu1 %v2272_v29  ;;  %2301 = vmatprep.subr.bf16.mxu0 %v2300_v17  ;;  %v1004_v29 = vld [vmem:[#allocation11 + $0x40] sm:$0xff]  ;;  %v1042_v23 = vld [vmem:[#allocation11 + $0x170] sm:$0xff]  ;;  %v1045_v24 = vld [vmem:[#allocation11 + $0x188] sm:$0xff] }
  0x64   : > { %2187 = vmatmul.mubr.msk.f32.gmra.mrb[12].mxu0 %vm485_vm1, %v447_v21  ;;  %v2959_v21 = vpack.c.bf16 %v998_v18, %v996_v16  ;;  %v2970_v33 = vpack.c.bf16 %v1006_v30, %v1004_v29  ;;  %v1041_v16 = vld [vmem:[#allocation11 + $0x168] sm:$0xff]  ;;  %v3018_v18 = vpack.c.bf16 %v1038_v15, %v1036_v14  ;;  %v1044_v30 = vld [vmem:[#allocation11 + $0x180] sm:$0xff] }
  0x65   : > { %640 = vmatprep.mubr.f32.mxu0 %v3998_v10 }
  0x66   : > { %2275 = vmatpush1.bf16.msra.mxu1 %v2274_v34  ;;  %2303 = vmatpush1.bf16.msra.mxu0 %v2959_v21  ;;  %v2973_v34 = vpack.c.bf16 %v1011_v32, %v1009_v31  ;;  %v1046_v31 = vld [vmem:[#allocation11 + $0x190] sm:$0xff]  ;;  %v475_v32 = vlaneseq }
  0x67   : > { %2277 = vmatprep.subr.bf16.mxu1 %v2276_v36  ;;  %2305 = vmatprep.subr.bf16.mxu0 %v2961_v22  ;;  %v1010_v36 = vld [vmem:[#allocation11 + $0x70] sm:$0xff]  ;;  %v3030_v37 = vpack.c.bf16 %v1046_v31, %v1044_v30 }
  0x68   : > { %2188 = vmatmul.mubr.msk.f32.gmra.mrb[14].mxu0 %vm485_vm1, %v448_v28  ;;  %v2967_v28 = vpack.c.bf16 %v1007_v26, %v1005_v25  ;;  %v1047_v25 = vld [vmem:[#allocation11 + $0x198] sm:$0xff]  ;;  %v3024_v26 = vpack.c.bf16 %v1042_v23, %v1040_v20 }
  0x69   : > { %646 = vmatprep.mubr.f32.mxu0 %v3998_v10  ;;  %v3027_v29 = vpack.c.bf16 %v1047_v25, %v1045_v24 }
  0x6a   : > { %2279 = vmatpush1.bf16.msra.mxu1 %v2278_v41  ;;  %2307 = vmatpush1.bf16.msra.mxu0 %v2964_v27  ;;  %v1012_v41 = vld [vmem:[#allocation11 + $0x80] sm:$0xff] }
  0x6b   : > { %2281 = vmatprep.subr.bf16.mxu1 %v2280_v43  ;;  %2309 = vmatprep.subr.bf16.mxu0 %v2967_v28  ;;  %v1017_v43 = vld [vmem:[#allocation11 + $0xa8] sm:$0xff] }
  0x6c   : > { %2189 = vmatmul.mubr.msk.f32.gmra.mrb[16].mxu0 %vm485_vm1, %v449_v35  ;;  %v1008_v35 = vld [vmem:[#allocation11 + $0x60] sm:$0xff]  ;;  %v2985_v46 = vpack.c.bf16 %v1019_v44, %v1017_v43  ;;  %v3035_v43 = vshrl.u32 %v475_v32, 7  ;;  %v1053_v44 = vld [vmem:[#allocation11 + $0x1c8] sm:$0xff] }
  0x6d   : > { %652 = vmatprep.mubr.f32.mxu0 %v3998_v10  ;;  %v2976_v39 = vpack.c.bf16 %v1010_v36, %v1008_v35  ;;  %v1049_v35 = vld [vmem:[#allocation11 + $0x1a8] sm:$0xff]  ;;  %v1051_v36 = vld [vmem:[#allocation11 + $0x1b8] sm:$0xff] }
  0x6e   : > { %2283 = vmatpush1.bf16.msra.mxu1 %v2282_v48  ;;  %2311 = vmatpush1.bf16.msra.mxu0 %v2970_v33  ;;  %v1018_v48 = vld [vmem:[#allocation11 + $0xb0] sm:$0xff]  ;;  %v3033_v38 = vpack.c.bf16 %v1051_v36, %v1049_v35 }
  0x6f   : > { %2285 = vmatprep.subr.bf16.mxu1 %v2284_v50  ;;  %2313 = vmatprep.subr.bf16.mxu0 %v2973_v34  ;;  %v1023_v50 = vld [vmem:[#allocation11 + $0xd8] sm:$0xff]  ;;  %v2988_v51 = vpack.c.bf16 %v1018_v48, %v1016_v47 }
  0x70   : > { %2190 = vmatmul.mubr.msk.f32.gmra.mrb[18].mxu0 %vm485_vm1, %v450_v42  ;;  %v1014_v42 = vld [vmem:[#allocation11 + $0x90] sm:$0xff]  ;;  %v1055_v47 = vld [vmem:[#allocation11 + $0x1d8] sm:$0xff] }
  0x71   : > { %658 = vmatprep.mubr.f32.mxu0 %v3998_v10  ;;  %v2982_v45 = vpack.c.bf16 %v1014_v42, %v1012_v41  ;;  %v1048_v41 = vld [vmem:[#allocation11 + $0x1a0] sm:$0xff]  ;;  %v1050_v42 = vld [vmem:[#allocation11 + $0x1b0] sm:$0xff] }
  0x72   : > { %2287 = vmatpush1.bf16.msra.mxu1 %v2286_v55  ;;  %2315 = vmatpush1.bf16.msra.mxu0 %v2976_v39  ;;  %v1025_v55 = vld [vmem:[#allocation11 + $0xe8] sm:$0xff]  ;;  %v3038_v48 = vpack.c.bf16 %v1050_v42, %v1048_v41 }
  0x73   : > { %2289 = vmatprep.subr.bf16.mxu1 %v2288_v57  ;;  %2317 = vmatprep.subr.bf16.mxu0 %v2979_v40  ;;  %v2994_v57 = vpack.c.bf16 %v1022_v54, %v1020_v53  ;;  %v473_v53 = vld [vmem:[%s3987_s3] sm:$0x3]  ;;  %v3050_v54 = vsub.s32 1, %v3035_v43 }
  0x74   : > { %2191 = vmatmul.mubr.msk.f32.gmra.mrb[20].mxu0 %vm485_vm1, %v451_v49  ;;  %v1021_v49 = vld [vmem:[#allocation11 + $0xc8] sm:$0xff] }
  0x75   : > { %664 = vmatprep.mubr.f32.mxu0 %v3998_v10  ;;  %v2991_v52 = vpack.c.bf16 %v1023_v50, %v1021_v49  ;;  %v3041_v49 = vpack.c.bf16 %v1055_v47, %v1053_v44  ;;  %v3044_v50 = vsub.s32 0, %v3035_v43 }
  0x76   : > { %2291 = vmatpush1.bf16.msra.mxu1 %v2290_v62  ;;  %2319 = vmatpush1.bf16.msra.mxu0 %v2982_v45  ;;  %v1031_v62 = vld [vmem:[#allocation11 + $0x118] sm:$0xff] }
  0x77   : > { %2293 = vmatprep.subr.bf16.mxu1 %v2292_v0  ;;  %2321 = vmatprep.subr.bf16.mxu0 %v2985_v46  ;;  %v3003_v0 = vpack.c.bf16 %v1031_v62, %v1029_v61  ;;  %4034 = vst [vmem:[#allocation17_spill] sm:$0xff] %v3044_v50 }
  0x78   : > { %2192 = vmatmul.mubr.msk.f32.gmra.mrb[22].mxu0 %vm485_vm1, %v452_v56  ;;  %v1027_v56 = vld [vmem:[#allocation11 + $0xf8] sm:$0xff] }
  0x79   : > { %670 = vmatprep.mubr.f32.mxu0 %v3998_v10  ;;  %v2997_v58 = vpack.c.bf16 %v1027_v56, %v1025_v55  ;;  %v3055_v55 = vrot.slane %v473_v53, %v3044_v50  ;;  %v3058_v56 = vrot.slane %v473_v53, %v3050_v54 }
  0x7a   : > { %2295 = vmatpush1.bf16.msra.mxu1 %v2294_v6  ;;  %2323 = vmatpush1.bf16.msra.mxu0 %v2988_v51 }
  0x7b   : > { %2297 = vmatprep.subr.bf16.mxu1 %v2296_v9  ;;  %2325 = vmatprep.subr.bf16.mxu0 %v2991_v52  ;;  %v1037_v9 = vld [vmem:[#allocation11 + $0x148] sm:$0xff] }
  0x7c   : > { %2193 = vmatmul.mubr.msk.f32.gmra.mrb[24].mxu0 %vm485_vm1, %v453_v63  ;;  %v3000_v63 = vpack.c.bf16 %v1026_v60, %v1024_v59 }
  0x7d   : > { %676 = vmatprep.mubr.f32.mxu0 %v3998_v10 }
  0x7e   : > { %2299 = vmatpush1.bf16.msra.mxu1 %v2298_v13  ;;  %2327 = vmatpush1.bf16.msra.mxu0 %v2994_v57  ;;  %v3015_v13 = vpack.c.bf16 %v1039_v11, %v1037_v9 }
  0x7f   : > { %2364 = vmatprep.subr.bf16.mxu1 %v2300_v17  ;;  %2329 = vmatprep.subr.bf16.mxu0 %v2997_v58  ;;  %v1043_v17 = vld [vmem:[#allocation11 + $0x178] sm:$0xff] }
  0x80   : > { %2194 = vmatmul.mubr.msk.f32.gmra.mrb[26].mxu0 %vm485_vm1, %v454_v1  ;;  %v1028_v1 = vld [vmem:[#allocation11 + $0x100] sm:$0xff]  ;;  %v3021_v19 = vpack.c.bf16 %v1043_v17, %v1041_v16 }
  0x81   : > { %682 = vmatprep.mubr.f32.mxu0 %v3998_v10 }
  0x82   : > { %2331 = vmatpush1.bf16.msra.mxu0 %v3000_v63 }
  0x83   : > { %2333 = vmatprep.subr.bf16.mxu0 %v3003_v0 }
  0x84   : > { %2195 = vmatmul.mubr.msk.f32.gmra.mrb[28].mxu0 %vm485_vm1, %v455_v2  ;;  %v1030_v2 = vld [vmem:[#allocation11 + $0x110] sm:$0xff] }
  0x85   : > { %688 = vmatprep.mubr.f32.mxu0 %v3998_v10  ;;  %v3006_v5 = vpack.c.bf16 %v1030_v2, %v1028_v1 }
  0x87   : > { %2335 = vmatpush1.bf16.msra.mxu0 %v3006_v5 }
  0x88   : > { %2196 = vmatmul.mubr.msk.f32.gmra.mrb[30].mxu0 %vm485_vm1, %v456_v3  ;;  %v1033_v3 = vld [vmem:[#allocation11 + $0x128] sm:$0xff] }
  0x89   : > { %v3009_v6 = vpack.c.bf16 %v1035_v4, %v1033_v3 }
  0x8b   : > { %2337 = vmatprep.subr.bf16.mxu0 %v3009_v6 }
  0x8c   : > { %2339 = vmatpush1.bf16.msra.mxu0 %v3012_v12 }
  0x8d   : > { %2341 = vmatprep.subr.bf16.mxu0 %v3015_v13 }
  0x90   : > { %2343 = vmatpush1.bf16.msra.mxu0 %v3018_v18 }
  0x91   : > { %2345 = vmatprep.subr.bf16.mxu0 %v3021_v19 }
  0x94   : > { %2347 = vmatpush1.bf16.msra.mxu0 %v3024_v26 }
  0x95   : > { %2349 = vmatprep.subr.bf16.mxu0 %v3027_v29 }
  0x98   : > { %2351 = vmatpush1.bf16.msra.mxu0 %v3030_v37 }
  0x99   : > { %2353 = vmatprep.subr.bf16.mxu0 %v3033_v38 }
  0x9c   : > { %2355 = vmatpush1.bf16.msra.mxu0 %v3038_v48 }
  0x9d   : > { %2357 = vmatprep.subr.bf16.mxu0 %v3041_v49 }
 0x11f   : > { %v600_v59 = vpop.f32.mrb[0].mxu0 }
 0x120   : > { %v601_v60 = vadd.f32 %v600_v59, %v3055_v55  ;;  %v602_v61 = vpop.f32.mrb[1].mxu0 }
 0x121   : > { %v603_v62 = vadd.f32 %v602_v61, %v3058_v56 }
 0x122   : > { %v695_v3 = vmax.f32 %v601_v60, 0.0 }
 0x123   : > { %v606_v1 = vpop.f32.mrb[2].mxu0  ;;  %v696_v2 = vmax.f32 %v603_v62, 0.0 }
 0x124   : > { %v607_v4 = vadd.f32 %v606_v1, %v3055_v55  ;;  %v608_v7 = vpop.f32.mrb[3].mxu0 }
 0x125   : > { %v609_v8 = vadd.f32 %v608_v7, %v3058_v56  ;;  %867 = vmatprep.mubr.f32.mxu1 %v696_v2 }
 0x126   : > { %868 = vmatmul.mubr.f32.vlgmr.msra.gmra.mrb[0].mxu1 %v695_v3  ;;  %v697_v14 = vmax.f32 %v607_v4, 0.0 }
 0x127   : > { %v698_v9 = vmax.f32 %v609_v8, 0.0  ;;  %v612_v11 = vpop.f32.mrb[4].mxu0  ;;  %2380 = vmatpush1.bf16.msra.mxu1 %v2959_v21 }
 0x128   : > { %v613_v15 = vadd.f32 %v612_v11, %v3055_v55  ;;  %v614_v16 = vpop.f32.mrb[5].mxu0  ;;  %2365 = vmatprep.subr.bf16.mxu1 %v2961_v22 }
 0x129   : > { %v615_v17 = vadd.f32 %v614_v16, %v3058_v56  ;;  %873 = vmatprep.mubr.f32.mxu1 %v698_v9 }
 0x12a   : > { %874 = vmatmul.mubr.f32.gmra.mrb[2].mxu1 %v697_v14  ;;  %v699_v24 = vmax.f32 %v613_v15, 0.0 }
 0x12b   : > { %v700_v20 = vmax.f32 %v615_v17, 0.0  ;;  %v618_v23 = vpop.f32.mrb[6].mxu0  ;;  %2381 = vmatpush1.bf16.msra.mxu1 %v2964_v27 }
 0x12c   : > { %v619_v25 = vadd.f32 %v618_v23, %v3055_v55  ;;  %v620_v30 = vpop.f32.mrb[7].mxu0  ;;  %2366 = vmatprep.subr.bf16.mxu1 %v2967_v28 }
 0x12d   : > { %v621_v21 = vadd.f32 %v620_v30, %v3058_v56  ;;  %879 = vmatprep.mubr.f32.mxu1 %v700_v20 }
 0x12e   : > { %880 = vmatmul.mubr.f32.gmra.mrb[4].mxu1 %v699_v24  ;;  %v701_v32 = vmax.f32 %v619_v25, 0.0 }
 0x12f   : > { %v702_v31 = vmax.f32 %v621_v21, 0.0  ;;  %v624_v22 = vpop.f32.mrb[8].mxu0  ;;  %2382 = vmatpush1.bf16.msra.mxu1 %v2970_v33 }
 0x130   : > { %v625_v35 = vadd.f32 %v624_v22, %v3055_v55  ;;  %v626_v36 = vpop.f32.mrb[9].mxu0  ;;  %2367 = vmatprep.subr.bf16.mxu1 %v2973_v34 }
 0x131   : > { %v627_v27 = vadd.f32 %v626_v36, %v3058_v56  ;;  %885 = vmatprep.mubr.f32.mxu1 %v702_v31 }
 0x132   : > { %886 = vmatmul.mubr.f32.gmra.mrb[6].mxu1 %v701_v32  ;;  %v703_v42 = vmax.f32 %v625_v35, 0.0 }
 0x133   : > { %v704_v41 = vmax.f32 %v627_v27, 0.0  ;;  %v630_v28 = vpop.f32.mrb[10].mxu0  ;;  %2383 = vmatpush1.bf16.msra.mxu1 %v2976_v39 }
 0x134   : > { %v631_v44 = vadd.f32 %v630_v28, %v3055_v55  ;;  %v632_v47 = vpop.f32.mrb[11].mxu0  ;;  %2368 = vmatprep.subr.bf16.mxu1 %v2979_v40 }
 0x135   : > { %v633_v33 = vadd.f32 %v632_v47, %v3058_v56  ;;  %891 = vmatprep.mubr.f32.mxu1 %v704_v41 }
 0x136   : > { %892 = vmatmul.mubr.f32.gmra.mrb[8].mxu1 %v703_v42  ;;  %v705_v59 = vmax.f32 %v631_v44, 0.0 }
 0x137   : > { %v706_v53 = vmax.f32 %v633_v33, 0.0  ;;  %v636_v34 = vpop.f32.mrb[12].mxu0  ;;  %2384 = vmatpush1.bf16.msra.mxu1 %v2982_v45 }
 0x138   : > { %v637_v60 = vadd.f32 %v636_v34, %v3055_v55  ;;  %v638_v61 = vpop.f32.mrb[13].mxu0  ;;  %2369 = vmatprep.subr.bf16.mxu1 %v2985_v46 }
 0x139   : > { %v639_v39 = vadd.f32 %v638_v61, %v3058_v56  ;;  %897 = vmatprep.mubr.f32.mxu1 %v706_v53 }
 0x13a   : > { %898 = vmatmul.mubr.f32.gmra.mrb[10].mxu1 %v705_v59  ;;  %v707_v1 = vmax.f32 %v637_v60, 0.0 }
 0x13b   : > { %v708_v62 = vmax.f32 %v639_v39, 0.0  ;;  %v642_v40 = vpop.f32.mrb[14].mxu0  ;;  %2385 = vmatpush1.bf16.msra.mxu1 %v2988_v51 }
 0x13c   : > { %v643_v2 = vadd.f32 %v642_v40, %v3055_v55  ;;  %v644_v3 = vpop.f32.mrb[15].mxu0  ;;  %2370 = vmatprep.subr.bf16.mxu1 %v2991_v52  ;;  %v1054_v40 = vld [vmem:[#allocation11 + $0x1d0] sm:$0xff] }
 0x13d   : > { %v645_v45 = vadd.f32 %v644_v3, %v3058_v56  ;;  %903 = vmatprep.mubr.f32.mxu1 %v708_v62  ;;  %v1052_v62 = vld [vmem:[#allocation11 + $0x1c0] sm:$0xff] }
 0x13e   : > { %904 = vmatmul.mubr.f32.gmra.mrb[12].mxu1 %v707_v1  ;;  %v709_v7 = vmax.f32 %v643_v2, 0.0  ;;  %v2358_v1 = vpack.c.bf16 %v1054_v40, %v1052_v62  ;;  %v1057_v2 = vld [vmem:[#allocation11 + $0x1e8] sm:$0xff] }
 0x13f   : > { %v710_v4 = vmax.f32 %v645_v45, 0.0  ;;  %v648_v46 = vpop.f32.mrb[16].mxu0  ;;  %2386 = vmatpush1.bf16.msra.mxu1 %v2994_v57  ;;  %v1058_v45 = vld [vmem:[#allocation11 + $0x1f0] sm:$0xff] }
 0x140   : > { %v649_v8 = vadd.f32 %v648_v46, %v3055_v55  ;;  %v650_v9 = vpop.f32.mrb[17].mxu0  ;;  %2371 = vmatprep.subr.bf16.mxu1 %v2997_v58  ;;  %2359 = vmatpush1.bf16.msra.mxu0 %v2358_v1 }
 0x141   : > { %v651_v51 = vadd.f32 %v650_v9, %v3058_v56  ;;  %909 = vmatprep.mubr.f32.mxu1 %v710_v4 }
 0x142   : > { %910 = vmatmul.mubr.f32.gmra.mrb[14].mxu1 %v709_v7  ;;  %v711_v14 = vmax.f32 %v649_v8, 0.0 }
 0x143   : > { %v712_v11 = vmax.f32 %v651_v51, 0.0  ;;  %v654_v52 = vpop.f32.mrb[18].mxu0  ;;  %2387 = vmatpush1.bf16.msra.mxu1 %v3000_v63 }
 0x144   : > { %v655_v15 = vadd.f32 %v654_v52, %v3055_v55  ;;  %v656_v16 = vpop.f32.mrb[19].mxu0  ;;  %2372 = vmatprep.subr.bf16.mxu1 %v3003_v0 }
 0x145   : > { %v657_v57 = vadd.f32 %v656_v16, %v3058_v56  ;;  %915 = vmatprep.mubr.f32.mxu1 %v712_v11 }
 0x146   : > { %916 = vmatmul.mubr.f32.gmra.mrb[16].mxu1 %v711_v14  ;;  %v713_v20 = vmax.f32 %v655_v15, 0.0 }
 0x147   : > { %v714_v17 = vmax.f32 %v657_v57, 0.0  ;;  %v660_v58 = vpop.f32.mrb[20].mxu0  ;;  %2388 = vmatpush1.bf16.msra.mxu1 %v3006_v5 }
 0x148   : > { %v661_v23 = vadd.f32 %v660_v58, %v3055_v55  ;;  %v662_v24 = vpop.f32.mrb[21].mxu0  ;;  %2373 = vmatprep.subr.bf16.mxu1 %v3009_v6 }
 0x149   : > { %v663_v63 = vadd.f32 %v662_v24, %v3058_v56  ;;  %921 = vmatprep.mubr.f32.mxu1 %v714_v17 }
 0x14a   : > { %922 = vmatmul.mubr.f32.gmra.mrb[18].mxu1 %v713_v20  ;;  %v715_v30 = vmax.f32 %v661_v23, 0.0 }
 0x14b   : > { %v716_v25 = vmax.f32 %v663_v63, 0.0  ;;  %v666_v0 = vpop.f32.mrb[22].mxu0  ;;  %2389 = vmatpush1.bf16.msra.mxu1 %v3012_v12 }
 0x14c   : > { %v667_v21 = vadd.f32 %v666_v0, %v3055_v55  ;;  %v668_v31 = vpop.f32.mrb[23].mxu0  ;;  %2374 = vmatprep.subr.bf16.mxu1 %v3015_v13 }
 0x14d   : > { %v669_v5 = vadd.f32 %v668_v31, %v3058_v56  ;;  %927 = vmatprep.mubr.f32.mxu1 %v716_v25 }
 0x14e   : > { %928 = vmatmul.mubr.f32.gmra.mrb[20].mxu1 %v715_v30  ;;  %v717_v32 = vmax.f32 %v667_v21, 0.0 }
 0x14f   : > { %v718_v22 = vmax.f32 %v669_v5, 0.0  ;;  %v672_v6 = vpop.f32.mrb[24].mxu0  ;;  %2390 = vmatpush1.bf16.msra.mxu1 %v3018_v18 }
 0x150   : > { %v673_v35 = vadd.f32 %v672_v6, %v3055_v55  ;;  %v674_v36 = vpop.f32.mrb[25].mxu0  ;;  %2375 = vmatprep.subr.bf16.mxu1 %v3021_v19 }
 0x151   : > { %v675_v12 = vadd.f32 %v674_v36, %v3058_v56  ;;  %933 = vmatprep.mubr.f32.mxu1 %v718_v22 }
 0x152   : > { %934 = vmatmul.mubr.f32.gmra.mrb[22].mxu1 %v717_v32  ;;  %v719_v41 = vmax.f32 %v673_v35, 0.0 }
 0x153   : > { %v720_v27 = vmax.f32 %v675_v12, 0.0  ;;  %v678_v13 = vpop.f32.mrb[26].mxu0  ;;  %2391 = vmatpush1.bf16.msra.mxu1 %v3024_v26 }
 0x154   : > { %v679_v28 = vadd.f32 %v678_v13, %v3055_v55  ;;  %v680_v42 = vpop.f32.mrb[27].mxu0  ;;  %2376 = vmatprep.subr.bf16.mxu1 %v3027_v29 }
 0x155   : > { %v681_v18 = vadd.f32 %v680_v42, %v3058_v56  ;;  %939 = vmatprep.mubr.f32.mxu1 %v720_v27 }
 0x156   : > { %940 = vmatmul.mubr.f32.gmra.mrb[24].mxu1 %v719_v41  ;;  %v721_v47 = vmax.f32 %v679_v28, 0.0 }
 0x157   : > { %v722_v44 = vmax.f32 %v681_v18, 0.0  ;;  %v684_v19 = vpop.f32.mrb[28].mxu0  ;;  %2392 = vmatpush1.bf16.msra.mxu1 %v3030_v37 }
 0x158   : > { %v685_v33 = vadd.f32 %v684_v19, %v3055_v55  ;;  %v686_v53 = vpop.f32.mrb[29].mxu0  ;;  %2377 = vmatprep.subr.bf16.mxu1 %v3033_v38 }
 0x159   : > { %v687_v26 = vadd.f32 %v686_v53, %v3058_v56  ;;  %945 = vmatprep.mubr.f32.mxu1 %v722_v44 }
 0x15a   : > { %946 = vmatmul.mubr.f32.gmra.mrb[26].mxu1 %v721_v47  ;;  %v723_v59 = vmax.f32 %v685_v33, 0.0 }
 0x15b   : > { %v724_v34 = vmax.f32 %v687_v26, 0.0  ;;  %v690_v29 = vpop.f32.mrb[30].mxu0  ;;  %2393 = vmatpush1.bf16.msra.mxu1 %v3038_v48  ;;  %v1059_v48 = vld [vmem:[#allocation11 + $0x1f8] sm:$0xff] }
 0x15c   : > { %v691_v60 = vadd.f32 %v690_v29, %v3055_v55  ;;  %v692_v61 = vpop.f32.mrb[31].mxu0  ;;  %2378 = vmatprep.subr.bf16.mxu1 %v3041_v49  ;;  %v2360_v3 = vpack.c.bf16 %v1059_v48, %v1057_v2  ;;  %v1056_v55 = vld [vmem:[#allocation11 + $0x1e0] sm:$0xff]  ;;  %v791_v49 = vld [vmem:[%s3989_s5] sm:$0x3] }
 0x15d   : > { %v693_v37 = vadd.f32 %v692_v61, %v3058_v56  ;;  %951 = vmatprep.mubr.f32.mxu1 %v724_v34  ;;  %v2362_v4 = vpack.c.bf16 %v1058_v45, %v1056_v55  ;;  %v3124_v56 = vrot.slane %v791_v49, %v3044_v50  ;;  %v3127_v46 = vrot.slane %v791_v49, %v3050_v54 }
 0x15e   : > { %952 = vmatmul.mubr.f32.gmra.mrb[28].mxu1 %v723_v59  ;;  %v725_v38 = vmax.f32 %v691_v60, 0.0  ;;  %2361 = vmatprep.subr.bf16.mxu0 %v2360_v3 }
 0x15f   : > { %v726_v39 = vmax.f32 %v693_v37, 0.0  ;;  %2394 = vmatpush1.bf16.msra.mxu1 %v2358_v1  ;;  %2363 = vmatpush1.bf16.msra.mxu0 %v2362_v4 }
 0x160   : > { %2379 = vmatprep.subr.bf16.mxu1 %v2360_v3 }
 0x161   : > { %957 = vmatprep.mubr.f32.mxu1 %v726_v39 }
 0x162   : > { %958 = vmatmul.mubr.f32.gmra.mrb[30].mxu1 %v725_v38 }
 0x163   : > { %2395 = vmatpush1.bf16.msra.mxu1 %v2362_v4 }
 0x1f9   : > { %v869_v7 = vpop.f32.mrb[0].mxu1 }
 0x1fa   : > { %v870_v8 = vadd.f32 %v869_v7, %v3124_v56  ;;  %v871_v9 = vpop.f32.mrb[1].mxu1 }
 0x1fb   : > { %v872_v51 = vadd.f32 %v871_v9, %v3127_v46 }
 0x1fc   : > { %v964_v14 = vmax.f32 %v870_v8, 0.0 }
 0x1fd   : > { %v965_v11 = vmax.f32 %v872_v51, 0.0  ;;  %v875_v52 = vpop.f32.mrb[2].mxu1 }
 0x1fe   : > { %v876_v15 = vadd.f32 %v875_v52, %v3124_v56  ;;  %v877_v16 = vpop.f32.mrb[3].mxu1 }
 0x1ff   : > { %v878_v57 = vadd.f32 %v877_v16, %v3127_v46  ;;  %1136 = vmatprep.mubr.f32.mxu0 %v965_v11 }
 0x200   : > { %1137 = vmatmul.mubr.f32.vlgmr.msra.gmra.mrb[32].mxu0 %v964_v14  ;;  %v966_v20 = vmax.f32 %v876_v15, 0.0 }
 0x201   : > { %v967_v17 = vmax.f32 %v878_v57, 0.0  ;;  %v881_v58 = vpop.f32.mrb[4].mxu1 }
 0x202   : > { %v882_v23 = vadd.f32 %v881_v58, %v3124_v56  ;;  %v883_v24 = vpop.f32.mrb[5].mxu1 }
 0x203   : > { %v884_v63 = vadd.f32 %v883_v24, %v3127_v46  ;;  %1142 = vmatprep.mubr.f32.mxu0 %v967_v17 }
 0x204   : > { %1143 = vmatmul.mubr.f32.gmra.mrb[34].mxu0 %v966_v20  ;;  %v968_v30 = vmax.f32 %v882_v23, 0.0 }
 0x205   : > { %v969_v25 = vmax.f32 %v884_v63, 0.0  ;;  %v887_v0 = vpop.f32.mrb[6].mxu1 }
 0x206   : > { %v888_v21 = vadd.f32 %v887_v0, %v3124_v56  ;;  %v889_v31 = vpop.f32.mrb[7].mxu1 }
 0x207   : > { %v890_v5 = vadd.f32 %v889_v31, %v3127_v46  ;;  %1148 = vmatprep.mubr.f32.mxu0 %v969_v25 }
 0x208   : > { %1149 = vmatmul.mubr.f32.gmra.mrb[36].mxu0 %v968_v30  ;;  %v970_v32 = vmax.f32 %v888_v21, 0.0 }
 0x209   : > { %v971_v22 = vmax.f32 %v890_v5, 0.0  ;;  %v893_v6 = vpop.f32.mrb[8].mxu1 }
 0x20a   : > { %v894_v35 = vadd.f32 %v893_v6, %v3124_v56  ;;  %v895_v36 = vpop.f32.mrb[9].mxu1 }
 0x20b   : > { %v896_v12 = vadd.f32 %v895_v36, %v3127_v46  ;;  %1154 = vmatprep.mubr.f32.mxu0 %v971_v22 }
 0x20c   : > { %1155 = vmatmul.mubr.f32.gmra.mrb[38].mxu0 %v970_v32  ;;  %v972_v41 = vmax.f32 %v894_v35, 0.0 }
 0x20d   : > { %v973_v27 = vmax.f32 %v896_v12, 0.0  ;;  %v899_v13 = vpop.f32.mrb[10].mxu1 }
 0x20e   : > { %v900_v28 = vadd.f32 %v899_v13, %v3124_v56  ;;  %v901_v42 = vpop.f32.mrb[11].mxu1 }
 0x20f   : > { %v902_v18 = vadd.f32 %v901_v42, %v3127_v46  ;;  %1160 = vmatprep.mubr.f32.mxu0 %v973_v27 }
 0x210   : > { %1161 = vmatmul.mubr.f32.gmra.mrb[40].mxu0 %v972_v41  ;;  %v974_v47 = vmax.f32 %v900_v28, 0.0 }
 0x211   : > { %v975_v44 = vmax.f32 %v902_v18, 0.0  ;;  %v905_v19 = vpop.f32.mrb[12].mxu1 }
 0x212   : > { %v906_v33 = vadd.f32 %v905_v19, %v3124_v56  ;;  %v907_v53 = vpop.f32.mrb[13].mxu1 }
 0x213   : > { %v908_v26 = vadd.f32 %v907_v53, %v3127_v46  ;;  %1166 = vmatprep.mubr.f32.mxu0 %v975_v44  ;;  %v1060_v53 = vld [vmem:[%s3991_s7] sm:$0x3] }
 0x214   : > { %1167 = vmatmul.mubr.f32.gmra.mrb[42].mxu0 %v974_v47  ;;  %v976_v59 = vmax.f32 %v906_v33, 0.0 }
 0x215   : > { %v977_v34 = vmax.f32 %v908_v26, 0.0  ;;  %v911_v29 = vpop.f32.mrb[14].mxu1  ;;  %v3165_v26 = vrot.slane %v1060_v53, %v3044_v50 }
 0x216   : > { %v912_v60 = vadd.f32 %v911_v29, %v3124_v56  ;;  %v913_v61 = vpop.f32.mrb[15].mxu1 }
 0x217   : > { %v914_v37 = vadd.f32 %v913_v61, %v3127_v46  ;;  %1172 = vmatprep.mubr.f32.mxu0 %v977_v34  ;;  %v3168_v34 = vrot.slane %v1060_v53, %v3050_v54 }
 0x218   : > { %1173 = vmatmul.mubr.f32.gmra.mrb[44].mxu0 %v976_v59  ;;  %v978_v62 = vmax.f32 %v912_v60, 0.0 }
 0x219   : > { %v979_v39 = vmax.f32 %v914_v37, 0.0  ;;  %v917_v38 = vpop.f32.mrb[16].mxu1 }
 0x21a   : > { %v918_v40 = vadd.f32 %v917_v38, %v3124_v56  ;;  %v919_v1 = vpop.f32.mrb[17].mxu1 }
 0x21b   : > { %v920_v2 = vadd.f32 %v919_v1, %v3127_v46  ;;  %1178 = vmatprep.mubr.f32.mxu0 %v979_v39 }
 0x21c   : > { %1179 = vmatmul.mubr.f32.gmra.mrb[46].mxu0 %v978_v62  ;;  %v980_v55 = vmax.f32 %v918_v40, 0.0 }
 0x21d   : > { %v981_v48 = vmax.f32 %v920_v2, 0.0  ;;  %v923_v3 = vpop.f32.mrb[18].mxu1 }
 0x21e   : > { %v924_v45 = vadd.f32 %v923_v3, %v3124_v56  ;;  %v925_v4 = vpop.f32.mrb[19].mxu1 }
 0x21f   : > { %v926_v49 = vadd.f32 %v925_v4, %v3127_v46  ;;  %1184 = vmatprep.mubr.f32.mxu0 %v981_v48 }
 0x220   : > { %1185 = vmatmul.mubr.f32.gmra.mrb[48].mxu0 %v980_v55  ;;  %v982_v9 = vmax.f32 %v924_v45, 0.0 }
 0x221   : > { %v983_v7 = vmax.f32 %v926_v49, 0.0  ;;  %v929_v8 = vpop.f32.mrb[20].mxu1 }
 0x222   : > { %v930_v51 = vadd.f32 %v929_v8, %v3124_v56  ;;  %v931_v11 = vpop.f32.mrb[21].mxu1 }
 0x223   : > { %v932_v52 = vadd.f32 %v931_v11, %v3127_v46  ;;  %1190 = vmatprep.mubr.f32.mxu0 %v983_v7 }
 0x224   : > { %1191 = vmatmul.mubr.f32.gmra.mrb[50].mxu0 %v982_v9  ;;  %v984_v16 = vmax.f32 %v930_v51, 0.0 }
 0x225   : > { %v985_v14 = vmax.f32 %v932_v52, 0.0  ;;  %v935_v15 = vpop.f32.mrb[22].mxu1 }
 0x226   : > { %v936_v57 = vadd.f32 %v935_v15, %v3124_v56  ;;  %v937_v17 = vpop.f32.mrb[23].mxu1 }
 0x227   : > { %v938_v58 = vadd.f32 %v937_v17, %v3127_v46  ;;  %1196 = vmatprep.mubr.f32.mxu0 %v985_v14 }
 0x228   : > { %1197 = vmatmul.mubr.f32.gmra.mrb[52].mxu0 %v984_v16  ;;  %v986_v24 = vmax.f32 %v936_v57, 0.0 }
 0x229   : > { %v987_v20 = vmax.f32 %v938_v58, 0.0  ;;  %v941_v23 = vpop.f32.mrb[24].mxu1 }
 0x22a   : > { %v942_v63 = vadd.f32 %v941_v23, %v3124_v56  ;;  %v943_v25 = vpop.f32.mrb[25].mxu1 }
 0x22b   : > { %v944_v0 = vadd.f32 %v943_v25, %v3127_v46  ;;  %1202 = vmatprep.mubr.f32.mxu0 %v987_v20 }
 0x22c   : > { %1203 = vmatmul.mubr.f32.gmra.mrb[54].mxu0 %v986_v24  ;;  %v988_v31 = vmax.f32 %v942_v63, 0.0  ;;  %v3194_v24 = vstv %s2198_s12 }
 0x22d   : > { %v989_v30 = vmax.f32 %v944_v0, 0.0  ;;  %v947_v21 = vpop.f32.mrb[26].mxu1 }
 0x22e   : > { %v948_v5 = vadd.f32 %v947_v21, %v3124_v56  ;;  %v949_v22 = vpop.f32.mrb[27].mxu1 }
 0x22f   : > { %v950_v6 = vadd.f32 %v949_v22, %v3127_v46  ;;  %1208 = vmatprep.mubr.f32.mxu0 %v989_v30 }
 0x230   : > { %1209 = vmatmul.mubr.f32.gmra.mrb[56].mxu0 %v988_v31  ;;  %v990_v36 = vmax.f32 %v948_v5, 0.0 }
 0x231   : > { %v991_v32 = vmax.f32 %v950_v6, 0.0  ;;  %v953_v35 = vpop.f32.mrb[28].mxu1  ;;  %v3202_v6 = vadd.s32 %v3194_v24, %v3035_v43 }
 0x232   : > { %v954_v12 = vadd.f32 %v953_v35, %v3124_v56  ;;  %v955_v27 = vpop.f32.mrb[29].mxu1 }
 0x233   : > { %v956_v13 = vadd.f32 %v955_v27, %v3127_v46  ;;  %1214 = vmatprep.mubr.f32.mxu0 %v991_v32  ;;  %vm1432_vm2 = vcmp.lt.s32.totalorder %v3202_v6, 300 }
 0x234   : > { %1215 = vmatmul.mubr.f32.gmra.mrb[58].mxu0 %v990_v36  ;;  %v992_v42 = vmax.f32 %v954_v12, 0.0 }
 0x235   : > { %v993_v41 = vmax.f32 %v956_v13, 0.0  ;;  %v959_v28 = vpop.f32.mrb[30].mxu1 }
 0x236   : > { %v960_v18 = vadd.f32 %v959_v28, %v3124_v56  ;;  %v961_v44 = vpop.f32.mrb[31].mxu1  ;;  %v1265_v56 = vld [vmem:[%s3992_s8] sm:$0x3]  ;;  %v1400_v28 = vadd.s32 8, %v3035_v43 }
 0x237   : > { %v962_v19 = vadd.f32 %v961_v44, %v3127_v46  ;;  %1220 = vmatprep.mubr.f32.mxu1 %v993_v41  ;;  %v3175_v60 = vrot.slane %v1265_v56, %v3044_v50  ;;  %v3179_v37 = vrot.slane %v1265_v56, %v3050_v54 }
 0x238   : > { %1221 = vmatmul.mubr.f32.vlgmr.msra.gmra.mrb[32].mxu1 %v992_v42  ;;  %v994_v33 = vmax.f32 %v960_v18, 0.0 }
 0x239   : > { %v995_v47 = vmax.f32 %v962_v19, 0.0  ;;  %v3211_v19 = vadd.s32 %v3194_v24, %v1400_v28 }
 0x23b   : > { %1226 = vmatprep.mubr.f32.mxu1 %v995_v47  ;;  %vm1433_vm3 = vcmp.lt.s32.totalorder %v3211_v19, 300 }
 0x23c   : > { %1227 = vmatmul.mubr.f32.gmra.mrb[34].mxu1 %v994_v33 }
 0x2d3   : > { %v1138_v46 = vpop.f32.mrb[32].mxu0 }
 0x2d4   : > { %v1139_v29 = vadd.f32 %v1138_v46, %v3165_v26  ;;  %v1140_v59 = vpop.f32.mrb[33].mxu0 }
 0x2d5   : > { %v1141_v61 = vadd.f32 %v1140_v59, %v3168_v34  ;;  %v3218_v59 = vsel %vm1432_vm2, 1.0, %v3998_v10 }
 0x2d6   : > { %v1233_v39 = vmax.f32 %v1139_v29, 0.0  ;;  %4035 = vst [vmem:[#allocation18_spill] sm:$0xff] %v3218_v59 }
 0x2d7   : > { %v1234_v38 = vmax.f32 %v1141_v61, 0.0  ;;  %v1144_v62 = vpop.f32.mrb[34].mxu0 }
 0x2d8   : > { %v1145_v40 = vadd.f32 %v1144_v62, %v3165_v26  ;;  %v1146_v1 = vpop.f32.mrb[35].mxu0  ;;  %v1277_v2 = vmul.f32 %v3175_v60, %v1233_v39  ;;  %v1401_v62 = vadd.s32 16, %v3035_v43 }
 0x2d9   : > { %v1147_v48 = vadd.f32 %v1146_v1, %v3168_v34  ;;  %v1278_v3 = vmul.f32 %v3179_v37, %v1234_v38  ;;  %v1480_v38 = vld [vmem:[%s2657_s24] sm:$0xff] }
 0x2da   : > { %v1235_v55 = vmax.f32 %v1145_v40, 0.0 }
 0x2db   : > { %v1236_v45 = vmax.f32 %v1147_v48, 0.0  ;;  %v1150_v4 = vpop.f32.mrb[36].mxu0  ;;  %v1309_v49 = vadd.f32 %v1278_v3, %v1277_v2  ;;  %v3226_v3 = vadd.s32 %v3194_v24, %v1401_v62 }
 0x2dc   : > { %v1279_v54 = vmul.f32 %v3175_v60, %v1235_v55  ;;  %v1151_v7 = vadd.f32 %v1150_v4, %v3165_v26  ;;  %v1152_v8 = vpop.f32.mrb[37].mxu0 }
 0x2dd   : > { %v1280_v9 = vmul.f32 %v3179_v37, %v1236_v45  ;;  %v1153_v51 = vadd.f32 %v1152_v8, %v3168_v34  ;;  %1310 = vadd.xlane.f32.xlu0 %v1309_v49  ;;  %v3231_v49 = vmul.f32 %v3218_v59, %v1480_v38  ;;  %vm1434_vm4 = vcmp.lt.s32.totalorder %v3226_v3, 300 }
 0x2de   : > { %v1237_v11 = vmax.f32 %v1151_v7, 0.0  ;;  %v1481_v7 = vld [vmem:[%s2657_s24 + $0x8] sm:$0xff] }
 0x2df   : > { %v1238_v52 = vmax.f32 %v1153_v51, 0.0  ;;  %v1156_v14 = vpop.f32.mrb[38].mxu0  ;;  %v1312_v15 = vadd.f32 %v1280_v9, %v1279_v54  ;;  %v3236_v54 = vsel %vm1433_vm3, 1.0, %v3998_v10 }
 0x2e0   : > { %v1157_v16 = vadd.f32 %v1156_v14, %v3165_v26  ;;  %v1158_v57 = vpop.f32.mrb[39].mxu0  ;;  %v1281_v17 = vmul.f32 %v3175_v60, %v1237_v11  ;;  %4036 = vst [vmem:[#allocation19_spill] sm:$0xff] %v3236_v54 }
 0x2e1   : > { %v1159_v58 = vadd.f32 %v1158_v57, %v3168_v34  ;;  %1313 = vadd.xlane.f32.xlu0 %v1312_v15  ;;  %v1282_v20 = vmul.f32 %v3179_v37, %v1238_v52  ;;  %v3243_v15 = vmul.f32 %v3236_v54, %v1481_v7  ;;  %v1482_v57 = vld [vmem:[%s2657_s24 + $0x10] sm:$0xff] }
 0x2e2   : > { %v1239_v23 = vmax.f32 %v1157_v16, 0.0  ;;  %v3248_v16 = vsel %vm1434_vm4, 1.0, %v3998_v10 }
 0x2e3   : > { %v1240_v63 = vmax.f32 %v1159_v58, 0.0  ;;  %v1162_v25 = vpop.f32.mrb[40].mxu0  ;;  %v1315_v0 = vadd.f32 %v1282_v20, %v1281_v17  ;;  %4037 = vst [vmem:[#allocation20_spill] sm:$0xff] %v3248_v16  ;;  %v3276_v28 = vsub.f32 %v3236_v54, %v3243_v15 }
 0x2e4   : > { %v1283_v30 = vmul.f32 %v3175_v60, %v1239_v23  ;;  %v1163_v21 = vadd.f32 %v1162_v25, %v3165_v26  ;;  %v1164_v31 = vpop.f32.mrb[41].mxu0  ;;  %v3255_v23 = vsub.f32 %v3218_v59, %v3231_v49 }
 0x2e5   : > { %v1284_v5 = vmul.f32 %v3179_v37, %v1240_v63  ;;  %v1165_v22 = vadd.f32 %v1164_v31, %v3168_v34  ;;  %1316 = vadd.xlane.f32.xlu1 %v1315_v0  ;;  %v1402_v63 = vadd.s32 24, %v3035_v43 }
 0x2e6   : > { %v1241_v32 = vmax.f32 %v1163_v21, 0.0  ;;  %v1771_v21 = vsel %vm1380_vm5, %v3243_v15, 0.0 }
 0x2e7   : > { %v1242_v35 = vmax.f32 %v1165_v22, 0.0  ;;  %v1168_v36 = vpop.f32.mrb[42].mxu0  ;;  %v1318_v12 = vadd.f32 %v1284_v5, %v1283_v30  ;;  %v1770_v30 = vsel %vm1380_vm5, %v3231_v49, 0.0  ;;  %v3265_v5 = vmul.f32 %v3248_v16, %v1482_v57 }
 0x2e8   : > { %v1285_v27 = vmul.f32 %v3175_v60, %v1241_v32  ;;  %v1169_v13 = vadd.f32 %v1168_v36, %v3165_v26  ;;  %v1170_v41 = vpop.f32.mrb[43].mxu0  ;;  %v3268_v22 = vadd.s32 %v3194_v24, %v1402_v63 }
 0x2e9   : > { %v1286_v42 = vmul.f32 %v3179_v37, %v1242_v35  ;;  %v1171_v18 = vadd.f32 %v1170_v41, %v3168_v34  ;;  %1319 = vadd.xlane.f32.xlu1 %v1318_v12  ;;  %v1810_v12 = vsel %vm1380_vm5, %v3255_v23, 0.0  ;;  %v1773_v62 = vsel %vm1380_vm5, %v3265_v5, 0.0 }
 0x2ea   : > { %v1243_v44 = vmax.f32 %v1169_v13, 0.0  ;;  %vm1435_vm6 = vcmp.lt.s32.totalorder %v3268_v22, 300 }
 0x2eb   : > { %v1244_v47 = vmax.f32 %v1171_v18, 0.0  ;;  %v1174_v33 = vpop.f32.mrb[44].mxu0  ;;  %v1321_v53 = vadd.f32 %v1286_v42, %v1285_v27  ;;  %v1772_v42 = vadd.f32 %v1771_v21, %v1770_v30 }
 0x2ec   : > { %v1287_v56 = vmul.f32 %v3175_v60, %v1243_v44  ;;  %v1175_v46 = vadd.f32 %v1174_v33, %v3165_v26  ;;  %v1176_v29 = vpop.f32.mrb[45].mxu0  ;;  %v1403_v33 = vadd.s32 32, %v3035_v43 }
 0x2ed   : > { %v1288_v61 = vmul.f32 %v3179_v37, %v1244_v47  ;;  %v1177_v39 = vadd.f32 %v1176_v29, %v3168_v34  ;;  %1322 = vadd.xlane.f32.xlu0 %v1321_v53  ;;  %v1483_v47 = vld [vmem:[%s2657_s24 + $0x18] sm:$0xff]  ;;  %v3292_v29 = vsel %vm1435_vm6, 1.0, %v3998_v10 }
 0x2ee   : > { %v1245_v40 = vmax.f32 %v1175_v46, 0.0  ;;  %v3287_v46 = vsub.f32 %v3248_v16, %v3265_v5  ;;  %4038 = vst [vmem:[#allocation21_spill] sm:$0xff] %v3292_v29 }
 0x2ef   : > { %v1246_v1 = vmax.f32 %v1177_v39, 0.0  ;;  %v1180_v2 = vpop.f32.mrb[46].mxu0  ;;  %v1324_v48 = vadd.f32 %v1288_v61, %v1287_v56  ;;  %v1811_v56 = vsel %vm1380_vm5, %v3276_v28, 0.0 }
 0x2f0   : > { %v1289_v55 = vmul.f32 %v3175_v60, %v1245_v40  ;;  %v1181_v45 = vadd.f32 %v1180_v2, %v3165_v26  ;;  %v1182_v4 = vpop.f32.mrb[47].mxu0  ;;  %v3297_v40 = vadd.s32 %v3194_v24, %v1403_v33  ;;  %v1812_v7 = vadd.f32 %v1811_v56, %v1810_v12 }
 0x2f1   : > { %v1290_v8 = vmul.f32 %v3179_v37, %v1246_v1  ;;  %v1183_v9 = vadd.f32 %v1182_v4, %v3168_v34  ;;  %1325 = vadd.xlane.f32.xlu1 %v1324_v48 }
 0x2f2   : > { %v1247_v51 = vmax.f32 %v1181_v45, 0.0  ;;  %vm1436_vm7 = vcmp.lt.s32.totalorder %v3297_v40, 300 }
 0x2f3   : > { %v1248_v11 = vmax.f32 %v1183_v9, 0.0  ;;  %v1186_v52 = vpop.f32.mrb[48].mxu0  ;;  %v1327_v14 = vadd.f32 %v1290_v8, %v1289_v55  ;;  %v3302_v55 = vmul.f32 %v3292_v29, %v1483_v47  ;;  %v1813_v8 = vsel %vm1380_vm5, %v3287_v46, 0.0  ;;  %v1485_v47 = vld [vmem:[%s2657_s24 + $0x28] sm:$0xff] }
 0x2f4   : > { %v1291_v17 = vmul.f32 %v3175_v60, %v1247_v51  ;;  %v1187_v58 = vadd.f32 %v1186_v52, %v3165_v26  ;;  %v1188_v20 = vpop.f32.mrb[49].mxu0  ;;  %v1774_v51 = vadd.f32 %v1773_v62, %v1772_v42  ;;  %v1404_v52 = vadd.s32 40, %v3035_v43 }
 0x2f5   : > { %v1292_v25 = vmul.f32 %v3179_v37, %v1248_v11  ;;  %v1189_v0 = vadd.f32 %v1188_v20, %v3168_v34  ;;  %1328 = vadd.xlane.f32.xlu0 %v1327_v14  ;;  %v1484_v11 = vld [vmem:[%s2657_s24 + $0x20] sm:$0xff]  ;;  %v3316_v20 = vsel %vm1436_vm7, 1.0, %v3998_v10  ;;  %v3322_v30 = vsub.f32 %v3292_v29, %v3302_v55 }
 0x2f6   : > { %v1249_v31 = vmax.f32 %v1187_v58, 0.0  ;;  %v1775_v58 = vsel %vm1380_vm5, %v3302_v55, 0.0  ;;  %4039 = vst [vmem:[#allocation22_spill] sm:$0xff] %v3316_v20  ;;  %v1814_v12 = vadd.f32 %v1813_v8, %v1812_v7 }
 0x2f7   : > { %v1250_v32 = vmax.f32 %v1189_v0, 0.0  ;;  %v1192_v35 = vpop.f32.mrb[50].mxu0  ;;  %v1330_v36 = vadd.f32 %v1292_v25, %v1291_v17 }
 0x2f8   : > { %v1293_v27 = vmul.f32 %v3175_v60, %v1249_v31  ;;  %v1193_v13 = vadd.f32 %v1192_v35, %v3165_v26  ;;  %v1194_v41 = vpop.f32.mrb[51].mxu0  ;;  %v3330_v35 = vadd.s32 %v3194_v24, %v1404_v52 }
 0x2f9   : > { %v1294_v18 = vmul.f32 %v3179_v37, %v1250_v32  ;;  %v1195_v44 = vadd.f32 %v1194_v41, %v3168_v34  ;;  %1331 = vadd.xlane.f32.xlu1 %v1330_v36  ;;  %v3327_v32 = vmul.f32 %v3316_v20, %v1484_v11 }
 0x2fa   : > { %v1251_v53 = vmax.f32 %v1193_v13, 0.0  ;;  %v1405_v13 = vadd.s32 48, %v3035_v43  ;;  %vm1437_vm8 = vcmp.lt.s32.totalorder %v3330_v35, 300 }
 0x2fb   : > { %v1252_v61 = vmax.f32 %v1195_v44, 0.0  ;;  %v1198_v39 = vpop.f32.mrb[52].mxu0  ;;  %v1333_v38 = vadd.f32 %v1294_v18, %v1293_v27  ;;  %v1776_v27 = vadd.f32 %v1775_v58, %v1774_v51  ;;  %v1815_v44 = vsel %vm1380_vm5, %v3322_v30, 0.0  ;;  %v1486_v58 = vld [vmem:[%s2657_s24 + $0x30] sm:$0xff] }
 0x2fc   : > { %v1295_v1 = vmul.f32 %v3175_v60, %v1251_v53  ;;  %v1199_v2 = vadd.f32 %v1198_v39, %v3165_v26  ;;  %v1200_v48 = vpop.f32.mrb[53].mxu0  ;;  %v3344_v39 = vsel %vm1437_vm8, 1.0, %v3998_v10  ;;  %v1816_v51 = vadd.f32 %v1815_v44, %v1814_v12 }
 0x2fd   : > { %v1296_v45 = vmul.f32 %v3179_v37, %v1252_v61  ;;  %v1201_v4 = vadd.f32 %v1200_v48, %v3168_v34  ;;  %1334 = vadd.xlane.f32.xlu0 %v1333_v38  ;;  %v1777_v61 = vsel %vm1380_vm5, %v3327_v32, 0.0  ;;  %4040 = vst [vmem:[#allocation23_spill] sm:$0xff] %v3344_v39  ;;  %v3353_v48 = vmul.f32 %v3344_v39, %v1485_v47 }
 0x2fe   : > { %v1253_v9 = vmax.f32 %v1199_v2, 0.0  ;;  %v1778_v11 = vadd.f32 %v1777_v61, %v1776_v27  ;;  %v1487_v61 = vld [vmem:[%s2657_s24 + $0x38] sm:$0xff] }
 0x2ff   : > { %v1254_v14 = vmax.f32 %v1201_v4, 0.0  ;;  %v1204_v57 = vpop.f32.mrb[54].mxu0  ;;  %v1336_v17 = vadd.f32 %v1296_v45, %v1295_v1  ;;  %v3350_v1 = vsub.f32 %v3316_v20, %v3327_v32  ;;  %v3356_v45 = vadd.s32 %v3194_v24, %v1405_v13  ;;  %v1495_v20 = vld [vmem:[%s2657_s24 + $0x78] sm:$0xff] }
 0x300   : > { %v1297_v63 = vmul.f32 %v3175_v60, %v1253_v9  ;;  %v1205_v25 = vadd.f32 %v1204_v57, %v3165_v26  ;;  %v1206_v0 = vpop.f32.mrb[55].mxu0  ;;  %v1406_v4 = vadd.s32 56, %v3035_v43 }
 0x301   : > { %v1298_v21 = vmul.f32 %v3179_v37, %v1254_v14  ;;  %v1207_v31 = vadd.f32 %v1206_v0, %v3168_v34  ;;  %1337 = vadd.xlane.f32.xlu1 %v1336_v17  ;;  %v1817_v17 = vsel %vm1380_vm5, %v3350_v1, 0.0  ;;  %vm1438_vm9 = vcmp.lt.s32.totalorder %v3356_v45, 300 }
 0x302   : > { %v1255_v36 = vmax.f32 %v1205_v25, 0.0  ;;  %v1779_v0 = vsel %vm1380_vm5, %v3353_v48, 0.0  ;;  %v3379_v12 = vadd.s32 %v3194_v24, %v1406_v4 }
 0x303   : > { %v1256_v41 = vmax.f32 %v1207_v31, 0.0  ;;  %v1210_v42 = vpop.f32.mrb[56].mxu0  ;;  %v1339_v18 = vadd.f32 %v1298_v21, %v1297_v63  ;;  %v3372_v21 = vsel %vm1438_vm9, 1.0, %v3998_v10 }
 0x304   : > { %v1299_v33 = vmul.f32 %v3175_v60, %v1255_v36  ;;  %v1211_v53 = vadd.f32 %v1210_v42, %v3165_v26  ;;  %v1212_v56 = vpop.f32.mrb[57].mxu0  ;;  %4041 = vst [vmem:[#allocation24_spill] sm:$0xff] %v3372_v21  ;;  %v3376_v36 = vsub.f32 %v3344_v39, %v3353_v48  ;;  %v3382_v42 = vmul.f32 %v3372_v21, %v1486_v58 }
 0x305   : > { %v1300_v38 = vmul.f32 %v3179_v37, %v1256_v41  ;;  %v1213_v62 = vadd.f32 %v1212_v56, %v3168_v34  ;;  %1340 = vadd.xlane.f32.xlu0 %v1339_v18  ;;  %v1407_v18 = vadd.s32 64, %v3035_v43  ;;  %v1780_v56 = vadd.f32 %v1779_v0, %v1778_v11 }
 0x306   : > { %v1257_v2 = vmax.f32 %v1211_v53, 0.0  ;;  %v1818_v53 = vadd.f32 %v1817_v17, %v1816_v51  ;;  %vm1439_vm10 = vcmp.lt.s32.totalorder %v3379_v12, 300 }
 0x307   : > { %v1258_v7 = vmax.f32 %v1213_v62, 0.0  ;;  %v1216_v8 = vpop.f32.mrb[58].mxu0  ;;  %v1342_v9 = vadd.f32 %v1300_v38, %v1299_v33 }
 0x308   : > { %v1301_v52 = vmul.f32 %v3175_v60, %v1257_v2  ;;  %v1217_v14 = vadd.f32 %v1216_v8, %v3165_v26  ;;  %v1218_v57 = vpop.f32.mrb[59].mxu0  ;;  %v1819_v2 = vsel %vm1380_vm5, %v3376_v36, 0.0  ;;  %v3398_v8 = vsel %vm1439_vm10, 1.0, %v3998_v10 }
 0x309   : > { %v1302_v63 = vmul.f32 %v3179_v37, %v1258_v7  ;;  %v1219_v25 = vadd.f32 %v1218_v57, %v3168_v34  ;;  %1343 = vadd.xlane.f32.xlu1 %v1342_v9  ;;  %v1781_v7 = vsel %vm1380_vm5, %v3382_v42, 0.0  ;;  %4042 = vst [vmem:[#allocation25_spill] sm:$0xff] %v3398_v8  ;;  %v3401_v9 = vadd.s32 %v3194_v24, %v1407_v18 }
 0x30a   : > { %v1259_v31 = vmax.f32 %v1217_v14, 0.0  ;;  %v3405_v14 = vsub.f32 %v3372_v21, %v3382_v42  ;;  %v3408_v57 = vmul.f32 %v3398_v8, %v1487_v61 }
 0x30b   : > { %v1260_v27 = vmax.f32 %v1219_v25, 0.0  ;;  %v1222_v13 = vpop.f32.mrb[32].mxu1  ;;  %v1345_v41 = vadd.f32 %v1302_v63, %v1301_v52  ;;  %vm1440_vm11 = vcmp.lt.s32.totalorder %v3401_v9, 300  ;;  %v1408_v25 = vadd.s32 72, %v3035_v43 }
 0x30c   : > { %v1303_v44 = vmul.f32 %v3175_v60, %v1259_v31  ;;  %v1223_v47 = vadd.f32 %v1222_v13, %v3165_v26  ;;  %v1224_v33 = vpop.f32.mrb[33].mxu1  ;;  %v1782_v13 = vadd.f32 %v1781_v7, %v1780_v56 }
 0x30d   : > { %v1304_v38 = vmul.f32 %v3179_v37, %v1260_v27  ;;  %v1225_v62 = vadd.f32 %v1224_v33, %v3168_v34  ;;  %1346 = vadd.xlane.f32.xlu0 %v1345_v41  ;;  %v1820_v27 = vadd.f32 %v1819_v2, %v1818_v53  ;;  %v1488_v41 = vld [vmem:[%s2657_s24 + $0x40] sm:$0xff]  ;;  %v1783_v53 = vsel %vm1380_vm5, %v3408_v57, 0.0 }
 0x30e   : > { %v1261_v4 = vmax.f32 %v1223_v47, 0.0  ;;  %v3425_v47 = vadd.s32 %v3194_v24, %v1408_v25 }
 0x30f   : > { %v1262_v51 = vmax.f32 %v1225_v62, 0.0  ;;  %v1228_v11 = vpop.f32.mrb[34].mxu1  ;;  %v1348_v52 = vadd.f32 %v1304_v38, %v1303_v44  ;;  %v1821_v44 = vsel %vm1380_vm5, %v3405_v14, 0.0  ;;  %v1409_v62 = vadd.s32 80, %v3035_v43 }
 0x310   : > { %v1305_v17 = vmul.f32 %v3175_v60, %v1261_v4  ;;  %v1229_v58 = vadd.f32 %v1228_v11, %v3165_v26  ;;  %v1230_v63 = vpop.f32.mrb[35].mxu1  ;;  %v3422_v26 = vsel %vm1440_vm11, 1.0, %v3998_v10  ;;  %vm1441_vm12 = vcmp.lt.s32.totalorder %v3425_v47, 300 }
 0x311   : > { %v1306_v0 = vmul.f32 %v3179_v37, %v1262_v51  ;;  %v1231_v31 = vadd.f32 %v1230_v63, %v3168_v34  ;;  %1349 = vadd.xlane.f32.xlu1 %v1348_v52  ;;  %4043 = vst [vmem:[#allocation26_spill] sm:$0xff] %v3422_v26  ;;  %v3429_v34 = vsub.f32 %v3398_v8, %v3408_v57  ;;  %v3443_v7 = vsel %vm1441_vm12, 1.0, %v3998_v10  ;;  %v1489_v51 = vld [vmem:[%s2657_s24 + $0x48] sm:$0xff] }
 0x312   : > { %v1263_v18 = vmax.f32 %v1229_v58, 0.0  ;;  %v3435_v38 = vmul.f32 %v3422_v26, %v1488_v41  ;;  %v1822_v4 = vadd.f32 %v1821_v44, %v1820_v27  ;;  %4044 = vst [vmem:[#allocation27_spill] sm:$0xff] %v3443_v7  ;;  %v3449_v11 = vadd.s32 %v3194_v24, %v1409_v62 }
 0x313   : > { %v1264_v33 = vmax.f32 %v1231_v31, 0.0  ;;  %v1351_v61 = vadd.f32 %v1306_v0, %v1305_v17  ;;  %v1784_v17 = vadd.f32 %v1783_v53, %v1782_v13  ;;  %v3458_v63 = vmul.f32 %v3443_v7, %v1489_v51  ;;  %v1490_v31 = vld [vmem:[%s2657_s24 + $0x50] sm:$0xff]  ;;  %v1491_v51 = vld [vmem:[%s2657_s24 + $0x58] sm:$0xff] }
 0x314   : > { %v1307_v56 = vmul.f32 %v3175_v60, %v1263_v18  ;;  %v1823_v60 = vsel %vm1380_vm5, %v3429_v34, 0.0  ;;  %v1785_v58 = vsel %vm1380_vm5, %v3435_v38, 0.0  ;;  %vm1442_vm13 = vcmp.lt.s32.totalorder %v3449_v11, 300 }
 0x315   : > { %v1308_v2 = vmul.f32 %v3179_v37, %v1264_v33  ;;  %1352 = vadd.xlane.f32.xlu0 %v1351_v61  ;;  %v3453_v37 = vsub.f32 %v3422_v26, %v3435_v38  ;;  %v1824_v25 = vadd.f32 %v1823_v60, %v1822_v4  ;;  %v3464_v0 = vsel %vm1442_vm13, 1.0, %v3998_v10 }
 0x316   : > { %4045 = vst [vmem:[#allocation28_spill] sm:$0xff] %v3464_v0  ;;  %v1410_v13 = vadd.s32 88, %v3035_v43  ;;  %v1786_v41 = vadd.f32 %v1785_v58, %v1784_v17  ;;  %v3472_v18 = vsub.f32 %v3443_v7, %v3458_v63  ;;  %v1787_v44 = vsel %vm1380_vm5, %v3458_v63, 0.0  ;;  %v1493_v7 = vld [vmem:[%s2657_s24 + $0x68] sm:$0xff] }
 0x317   : > { %v1354_v52 = vadd.f32 %v1308_v2, %v1307_v56  ;;  %v1825_v27 = vsel %vm1380_vm5, %v3453_v37, 0.0  ;;  %v3477_v33 = vmul.f32 %v3464_v0, %v1490_v31  ;;  %v1411_v62 = vadd.s32 96, %v3035_v43 }
 0x318   : > { %v3480_v61 = vadd.s32 %v3194_v24, %v1410_v13  ;;  %v1826_v53 = vadd.f32 %v1825_v27, %v1824_v25  ;;  %v1827_v56 = vsel %vm1380_vm5, %v3472_v18, 0.0  ;;  %v1788_v2 = vadd.f32 %v1787_v44, %v1786_v41  ;;  %v1492_v44 = vld [vmem:[%s2657_s24 + $0x60] sm:$0xff] }
 0x319   : > { %1355 = vadd.xlane.f32.xlu1 %v1354_v52  ;;  %v3494_v60 = vsub.f32 %v3464_v0, %v3477_v33  ;;  %v1789_v52 = vsel %vm1380_vm5, %v3477_v33, 0.0  ;;  %v3502_v58 = vadd.s32 %v3194_v24, %v1411_v62  ;;  %v1412_v27 = vadd.s32 104, %v3035_v43 }
 0x31a   : > { %vm1443_vm14 = vcmp.lt.s32.totalorder %v3480_v61, 300  ;;  %v1828_v25 = vadd.f32 %v1827_v56, %v1826_v53  ;;  %v1790_v13 = vadd.f32 %v1789_v52, %v1788_v2  ;;  %v4049_v0 = vmov 0.0  }
 0x31b   : > { %v3489_v4 = vsel %vm1443_vm14, 1.0, %v3998_v10  ;;  %v1829_v31 = vsel %vm1380_vm5, %v3494_v60, 0.0  ;;  %vm1444_vm15 = vcmp.lt.s32.totalorder %v3502_v58, 300 }
 0x31c   : > { %4046 = vst [vmem:[#allocation29_spill] sm:$0xff] %v3489_v4  ;;  %v3499_v17 = vmul.f32 %v3489_v4, %v1491_v51  ;;  %v3511_v41 = vsel %vm1444_vm15, 1.0, %v3998_v10  ;;  %v3524_v51 = vadd.s32 %v3194_v24, %v1412_v27  ;;  %v1830_v2 = vadd.f32 %v1829_v31, %v1828_v25 }
 0x31d   : > { %4047 = vst [vmem:[#allocation30_spill] sm:$0xff] %v3511_v41  ;;  %v3521_v56 = vmul.f32 %v3511_v41, %v1492_v44  ;;  %v1413_v27 = vadd.s32 112, %v3035_v43 }
 0x31e   : > { %v3516_v62 = vsub.f32 %v3489_v4, %v3499_v17  ;;  %v1791_v53 = vsel %vm1380_vm5, %v3499_v17, 0.0  ;;  %4048 = vst [vmem:[#allocation31_spill] sm:$0xff] %v3524_v51  ;;  %vm4009_vm0 = vcmp.lt.s32.totalorder %v3524_v51, 300  ;;  %v1809_v51 = vld [vmem:[#allocation7] sm:$0x1] }
 0x31f   : > { %v1792_v10 = vadd.f32 %v1791_v53, %v1790_v13  ;;  %v3532_v4 = vsel %vm4009_vm0, 1.0, %v4049_v0  ;;  %v3537_v44 = vsub.f32 %v3511_v41, %v3521_v56  ;;  %v1793_v25 = vsel %vm1380_vm5, %v3521_v56, 0.0 }
 0x320   : > { %v1831_v52 = vsel %vm1380_vm5, %v3516_v62, 0.0  ;;  %4050 = vst [vmem:[#allocation32_spill] sm:$0xff] %v3532_v4  ;;  %v3542_v31 = vmul.f32 %v3532_v4, %v1493_v7  ;;  %v3548_v26 = vadd.s32 %v3194_v24, %v1413_v27  ;;  %v1414_v7 = vadd.s32 120, %v3035_v43  ;;  %v1494_v27 = vld [vmem:[%s2657_s24 + $0x70] sm:$0xff] }
 0x321   : > { %v1832_v13 = vadd.f32 %v1831_v52, %v1830_v2  ;;  %v1833_v53 = vsel %vm1380_vm5, %v3537_v44, 0.0  ;;  %v1794_v8 = vadd.f32 %v1793_v25, %v1792_v10 }
 0x322   : > { %4051 = vst [vmem:[#allocation33_spill] sm:$0xff] %v3548_v26  ;;  %v3552_v41 = vsub.f32 %v3532_v4, %v3542_v31  ;;  %v1795_v21 = vsel %vm1380_vm5, %v3542_v31, 0.0  ;;  %vm1446_vm1 = vcmp.lt.s32.totalorder %v3548_v26, 300  ;;  %v3570_v4 = vadd.s32 %v3194_v24, %v1414_v7 }
 0x323   : > { %v1834_v2 = vadd.f32 %v1833_v53, %v1832_v13  ;;  %v3561_v52 = vsel %vm1446_vm1, 1.0, %v4049_v0  ;;  %v1796_v39 = vadd.f32 %v1795_v21, %v1794_v8 }
 0x324   : > { %4052 = vst [vmem:[#allocation34_spill] sm:$0xff] %v3561_v52  ;;  %v1835_v10 = vsel %vm1380_vm5, %v3552_v41, 0.0  ;;  %v3567_v25 = vmul.f32 %v3561_v52, %v1494_v27  ;;  %4053 = vst [vmem:[#allocation35_spill] sm:$0xff] %v3570_v4  ;;  %vm4023_vm0 = vcmp.lt.s32.totalorder %v3570_v4, 300 }
 0x325   : > { %v1836_v13 = vadd.f32 %v1835_v10, %v1834_v2  ;;  %v3580_v53 = vsel %vm4023_vm0, 1.0, %v4049_v0  ;;  %vm1583_vm0 = vcmask 0  }
 0x326   : > { %v3574_v43 = vsub.f32 %v3561_v52, %v3567_v25  ;;  %4054 = vst [vmem:[#allocation36_spill] sm:$0xff] %v3580_v53  ;;  %v1797_v27 = vsel %vm1380_vm5, %v3567_v25, 0.0  ;;  %v3588_v21 = vmul.f32 %v3580_v53, %v1495_v20 }
 0x327   : > { %v1798_v8 = vadd.f32 %v1797_v27, %v1796_v39 }
 0x328   : > { %v1837_v24 = vsel %vm1380_vm5, %v3574_v43, 0.0  ;;  %4055 = vst [vmem:[#allocation37_spill] sm:$0xff] %v3588_v21  ;;  %v3592_v2 = vsub.f32 %v3580_v53, %v3588_v21  ;;  %v1799_v0 = vsel %vm1380_vm5, %v3588_v21, 0.0 }
 0x329   : > { %v1838_v7 = vadd.f32 %v1837_v24, %v1836_v13  ;;  %v1800_v10 = vadd.f32 %v1799_v0, %v1798_v8  ;;  %v1769_v24 = vld [vmem:[#allocation6] sm:$0x1] }
 0x32a   : > { %4056 = vst [vmem:[#allocation38_spill] sm:$0xff] %v3592_v2  ;;  %v1839_v52 = vsel %vm1380_vm5, %v3592_v2, 0.0 }
 0x32b   : > { %v1801_v29 = vrot.slane %v1800_v10, 4  ;;  %v1840_v16 = vadd.f32 %v1839_v52, %v1838_v7 }
 0x32d   : > { %v1802_v54 = vadd.f32 %v1801_v29, %v1800_v10  ;;  %v1841_v59 = vrot.slane %v1840_v16, 4  ;;  %v3600_v29 = vld [vmem:[#allocation10] ss:$0 sm:$0xff] }
 0x32f   : > { %v1803_v50 = vrot.slane %v1802_v54, 2  ;;  %v1842_v20 = vadd.f32 %v1841_v59, %v1840_v16 }
 0x331   : > { %v1804_v4 = vadd.f32 %v1803_v50, %v1802_v54  ;;  %v1843_v39 = vrot.slane %v1842_v20, 2 }
 0x333   : > { %v1805_v13 = vrot.slane %v1804_v4, 1  ;;  %v1844_v27 = vadd.f32 %v1843_v39, %v1842_v20 }
 0x335   : > { %v1806_v53 = vadd.f32 %v1805_v13, %v1804_v4  ;;  %v1845_v26 = vrot.slane %v1844_v27, 1 }
 0x337   : > { %v1807_v21 = vadd.f32 %v1806_v53, %v1769_v24  ;;  %v1846_v8 = vadd.f32 %v1845_v26, %v1844_v27 }
 0x339   : > { %1808 = vst.msk [vmem:[#allocation6] sm:$0x1] %vm1583_vm0, %v1807_v21  ;;  %v1847_v52 = vadd.f32 %v1846_v8, %v1809_v51 }
 0x33b   : > { %1848 = vst.msk [vmem:[#allocation7] sm:$0x1] %vm1583_vm0, %v1847_v52 }
 0x36a   : > { %v1311_v50 = vpop.xlane.xlu0 %1310 }
 0x36b   : > { %v1364_v59 = vadd.f32 %v3600_v29, %v1311_v50 }
 0x36d   : > { %1381 = vst.msk [vmem:[%s2667_s28] sm:$0xff] %vm1380_vm5, %v1364_v59  ;;  %v1642_v16 = vmul.f32 %v1364_v59, %v1364_v59  ;;  %v1529_v26 = vmul.f32 %v3231_v49, %v1364_v59  ;;  %v1586_v53 = vmul.f32 %v3255_v23, %v1364_v59  ;;  %v1849_v21 = vsub.f32 0.0, %v1364_v59 }
 0x36e   : > { %v1314_v54 = vpop.xlane.xlu0 %1313 }
 0x36f   : > { %v1365_v4 = vadd.f32 %v3600_v29, %v1314_v54  ;;  %v1658_v0 = vmul.f32 %v1642_v16, %v3231_v49  ;;  %v1545_v8 = vsel %vm1380_vm5, %v1529_v26, 0.0  ;;  %v1602_v52 = vsel %vm1380_vm5, %v1586_v53, 0.0 }
 0x370   : > { %v1714_v50 = vmul.f32 %v1642_v16, %v3255_v23  ;;  %v3624_v54 = vsel %vm1432_vm2, %v1849_v21, -1e+30 }
 0x371   : > { %1382 = vst.msk [vmem:[%s2667_s28 + $0x8] sm:$0xff] %vm1380_vm5, %v1365_v4  ;;  %v1643_v51 = vmul.f32 %v1365_v4, %v1365_v4  ;;  %v1530_v10 = vmul.f32 %v3243_v15, %v1365_v4  ;;  %v1587_v20 = vmul.f32 %v3276_v28, %v1365_v4  ;;  %v1850_v13 = vsub.f32 0.0, %v1365_v4 }
 0x372   : > { %v1317_v7 = vpop.xlane.xlu1 %1316  ;;  %v1674_v59 = vsel %vm1380_vm5, %v1658_v0, 0.0 }
 0x373   : > { %v1366_v39 = vadd.f32 %v3600_v29, %v1317_v7  ;;  %v1659_v27 = vmul.f32 %v1643_v51, %v3243_v15  ;;  %v1715_v24 = vmul.f32 %v1643_v51, %v3276_v28  ;;  %v1546_v4 = vsel %vm1380_vm5, %v1530_v10, 0.0 }
 0x374   : > { %v1603_v15 = vsel %vm1380_vm5, %v1587_v20, 0.0  ;;  %v3630_v28 = vsel %vm1433_vm3, %v1850_v13, -1e+30  ;;  %v1730_v7 = vsel %vm1380_vm5, %v1714_v50, 0.0  ;;  %v1882_v20 = vsel %vm1380_vm5, %v3624_v54, -inf }
 0x375   : > { %1383 = vst.msk [vmem:[%s2667_s28 + $0x10] sm:$0xff] %vm1380_vm5, %v1366_v39  ;;  %4057 = vst [vmem:[#allocation39_spill] sm:$0xff] %v3630_v28  ;;  %v1531_v26 = vmul.f32 %v3265_v5, %v1366_v39  ;;  %v1644_v53 = vmul.f32 %v1366_v39, %v1366_v39  ;;  %v1851_v23 = vsub.f32 0.0, %v1366_v39  ;;  %v1675_v16 = vsel %vm1380_vm5, %v1659_v27, 0.0 }
 0x376   : > { %v1320_v49 = vpop.xlane.xlu1 %1319  ;;  %v1731_v51 = vsel %vm1380_vm5, %v1715_v24, 0.0  ;;  %v1588_v6 = vmul.f32 %v3287_v46, %v1366_v39  ;;  %v1547_v13 = vadd.f32 %v1546_v4, %v1545_v8  ;;  %v1883_v27 = vsel %vm1380_vm5, %v3630_v28, -inf }
 0x377   : > { %v1367_v21 = vadd.f32 %v3600_v29, %v1320_v49  ;;  %v1660_v0 = vmul.f32 %v1644_v53, %v3265_v5  ;;  %v1716_v19 = vmul.f32 %v1644_v53, %v3287_v46  ;;  %v3642_v10 = vsel %vm1434_vm4, %v1851_v23, -1e+30 }
 0x378   : > { %v1604_v24 = vadd.f32 %v1603_v15, %v1602_v52  ;;  %v1676_v50 = vadd.f32 %v1675_v16, %v1674_v59  ;;  %v1732_v49 = vadd.f32 %v1731_v51, %v1730_v7  ;;  %v1548_v46 = vsel %vm1380_vm5, %v1531_v26, 0.0 }
 0x379   : > { %1384 = vst.msk [vmem:[%s2667_s28 + $0x18] sm:$0xff] %vm1380_vm5, %v1367_v21  ;;  %v1645_v39 = vmul.f32 %v1367_v21, %v1367_v21  ;;  %v1852_v5 = vsub.f32 0.0, %v1367_v21  ;;  %v1605_v3 = vsel %vm1380_vm5, %v1588_v6, 0.0  ;;  %v1884_v53 = vsel %vm1380_vm5, %v3642_v10, -inf }
 0x37a   : > { %v1323_v2 = vpop.xlane.xlu0 %1322  ;;  %v1532_v8 = vmul.f32 %v3302_v55, %v1367_v21  ;;  %v1887_v4 = vmax.f32 %v1882_v20, %v1883_v27  ;;  %v1677_v23 = vsel %vm1380_vm5, %v1660_v0, 0.0  ;;  %v1733_v28 = vsel %vm1380_vm5, %v1716_v19, 0.0 }
 0x37b   : > { %v1589_v52 = vmul.f32 %v3322_v30, %v1367_v21  ;;  %v1661_v15 = vmul.f32 %v1645_v39, %v3302_v55  ;;  %v1717_v26 = vmul.f32 %v1645_v39, %v3322_v30  ;;  %v1368_v16 = vadd.f32 %v3600_v29, %v1323_v2 }
 0x37c   : > { %v1549_v6 = vadd.f32 %v1548_v46, %v1547_v13  ;;  %v1606_v7 = vadd.f32 %v1605_v3, %v1604_v24  ;;  %v1889_v20 = vmax.f32 %v1884_v53, %v1887_v4  ;;  %v3664_v0 = vsel %vm1435_vm6, %v1852_v5, -1e+30 }
 0x37d   : > { %4058 = vst [vmem:[#allocation40_spill] sm:$0xff] %v3664_v0  ;;  %v1678_v19 = vadd.f32 %v1677_v23, %v1676_v50  ;;  %v1734_v27 = vadd.f32 %v1733_v28, %v1732_v49  ;;  %v1550_v21 = vsel %vm1380_vm5, %v1532_v8, 0.0  ;;  %1385 = vst.msk [vmem:[%s2667_s28 + $0x20] sm:$0xff] %vm1380_vm5, %v1368_v16  ;;  %v1533_v55 = vmul.f32 %v3327_v32, %v1368_v16 }
 0x37e   : > { %v1326_v59 = vpop.xlane.xlu1 %1325  ;;  %v1607_v30 = vsel %vm1380_vm5, %v1589_v52, 0.0  ;;  %v1590_v2 = vmul.f32 %v3350_v1, %v1368_v16  ;;  %v1646_v13 = vmul.f32 %v1368_v16, %v1368_v16  ;;  %v1853_v39 = vsub.f32 0.0, %v1368_v16 }
 0x37f   : > { %v1369_v51 = vadd.f32 %v3600_v29, %v1326_v59  ;;  %v1679_v22 = vsel %vm1380_vm5, %v1661_v15, 0.0  ;;  %v1735_v24 = vsel %vm1380_vm5, %v1717_v26, 0.0  ;;  %v1885_v28 = vsel %vm1380_vm5, %v3664_v0, -inf }
 0x380   : > { %v1552_v49 = vsel %vm1380_vm5, %v1533_v55, 0.0  ;;  %v1662_v5 = vmul.f32 %v1646_v13, %v3327_v32  ;;  %v1718_v46 = vmul.f32 %v1646_v13, %v3350_v1  ;;  %v1551_v53 = vadd.f32 %v1550_v21, %v1549_v6 }
 0x381   : > { %1386 = vst.msk [vmem:[%s2667_s28 + $0x28] sm:$0xff] %vm1380_vm5, %v1369_v51  ;;  %v1534_v50 = vmul.f32 %v3353_v48, %v1369_v51  ;;  %v1647_v3 = vmul.f32 %v1369_v51, %v1369_v51  ;;  %v1608_v8 = vadd.f32 %v1607_v30, %v1606_v7  ;;  %v3684_v4 = vsel %vm1436_vm7, %v1853_v39, -1e+30 }
 0x382   : > { %v1854_v23 = vsub.f32 0.0, %v1369_v51  ;;  %v1329_v52 = vpop.xlane.xlu0 %1328  ;;  %v1680_v59 = vadd.f32 %v1679_v22, %v1678_v19  ;;  %v1736_v15 = vadd.f32 %v1735_v24, %v1734_v27  ;;  %v1609_v26 = vsel %vm1380_vm5, %v1590_v2, 0.0 }
 0x383   : > { %v1591_v16 = vmul.f32 %v3376_v36, %v1369_v51  ;;  %v1891_v32 = vmax.f32 %v1885_v28, %v1889_v20  ;;  %v1553_v0 = vadd.f32 %v1552_v49, %v1551_v53  ;;  %v1681_v1 = vsel %vm1380_vm5, %v1662_v5, 0.0 }
 0x384   : > { %v1554_v6 = vsel %vm1380_vm5, %v1534_v50, 0.0  ;;  %v1737_v40 = vsel %vm1380_vm5, %v1718_v46, 0.0  ;;  %v1886_v7 = vsel %vm1380_vm5, %v3684_v4, -inf  ;;  %v1663_v19 = vmul.f32 %v1647_v3, %v3353_v48 }
 0x385   : > { %v1370_v27 = vadd.f32 %v3600_v29, %v1329_v52  ;;  %v1610_v21 = vadd.f32 %v1609_v26, %v1608_v8  ;;  %v1719_v51 = vmul.f32 %v1647_v3, %v3376_v36  ;;  %v3698_v20 = vsel %vm1437_vm8, %v1854_v23, -1e+30 }
 0x386   : > { %v1332_v55 = vpop.xlane.xlu1 %1331  ;;  %v1682_v2 = vadd.f32 %v1681_v1, %v1680_v59  ;;  %v1555_v13 = vadd.f32 %v1554_v6, %v1553_v0  ;;  %v1611_v39 = vsel %vm1380_vm5, %v1591_v16, 0.0  ;;  %v1738_v48 = vadd.f32 %v1737_v40, %v1736_v15 }
 0x387   : > { %v1371_v30 = vadd.f32 %v3600_v29, %v1332_v55  ;;  %1387 = vst.msk [vmem:[%s2667_s28 + $0x30] sm:$0xff] %vm1380_vm5, %v1370_v27  ;;  %v1535_v22 = vmul.f32 %v3382_v42, %v1370_v27  ;;  %v1893_v24 = vmax.f32 %v1886_v7, %v1891_v32  ;;  %v1592_v28 = vmul.f32 %v3405_v14, %v1370_v27 }
 0x388   : > { %v1648_v50 = vmul.f32 %v1370_v27, %v1370_v27  ;;  %v1683_v35 = vsel %vm1380_vm5, %v1663_v19, 0.0  ;;  %v1888_v36 = vsel %vm1380_vm5, %v3698_v20, -inf  ;;  %v1855_v49 = vsub.f32 0.0, %v1370_v27 }
 0x389   : > { %1388 = vst.msk [vmem:[%s2667_s28 + $0x38] sm:$0xff] %vm1380_vm5, %v1371_v30  ;;  %v1536_v0 = vmul.f32 %v3408_v57, %v1371_v30  ;;  %v1612_v5 = vadd.f32 %v1611_v39, %v1610_v21  ;;  %v1739_v46 = vsel %vm1380_vm5, %v1719_v51, 0.0  ;;  %v1556_v3 = vsel %vm1380_vm5, %v1535_v22, 0.0 }
 0x38a   : > { %v1613_v53 = vsel %vm1380_vm5, %v1592_v28, 0.0  ;;  %v1664_v8 = vmul.f32 %v1648_v50, %v3382_v42  ;;  %v1720_v23 = vmul.f32 %v1648_v50, %v3405_v14  ;;  %v3719_v52 = vsel %vm1438_vm9, %v1855_v49, -1e+30  ;;  %v1335_v15 = vpop.xlane.xlu0 %1334 }
 0x38b   : > { %v1593_v59 = vmul.f32 %v3429_v34, %v1371_v30  ;;  %v1684_v16 = vadd.f32 %v1683_v35, %v1682_v2  ;;  %v1895_v55 = vmax.f32 %v1888_v36, %v1893_v24  ;;  %v1890_v32 = vsel %vm1380_vm5, %v3719_v52, -inf }
 0x38c   : > { %v1740_v1 = vadd.f32 %v1739_v46, %v1738_v48  ;;  %v1557_v6 = vadd.f32 %v1556_v3, %v1555_v13  ;;  %v1614_v42 = vadd.f32 %v1613_v53, %v1612_v5  ;;  %v1558_v14 = vsel %vm1380_vm5, %v1536_v0, 0.0 }
 0x38d   : > { %v1649_v40 = vmul.f32 %v1371_v30, %v1371_v30  ;;  %v1856_v45 = vsub.f32 0.0, %v1371_v30  ;;  %v1372_v7 = vadd.f32 %v3600_v29, %v1335_v15  ;;  %v1685_v27 = vsel %vm1380_vm5, %v1664_v8, 0.0 }
 0x38e   : > { %v1338_v26 = vpop.xlane.xlu1 %1337  ;;  %v1741_v21 = vsel %vm1380_vm5, %v1720_v23, 0.0  ;;  %v1897_v51 = vmax.f32 %v1890_v32, %v1895_v55  ;;  %v1615_v2 = vsel %vm1380_vm5, %v1593_v59, 0.0 }
 0x38f   : > { %v1373_v19 = vadd.f32 %v3600_v29, %v1338_v26  ;;  %v1665_v39 = vmul.f32 %v1649_v40, %v3408_v57  ;;  %v1721_v13 = vmul.f32 %v1649_v40, %v3429_v34  ;;  %v3734_v22 = vsel %vm1439_vm10, %v1856_v45, -1e+30  ;;  %1389 = vst.msk [vmem:[%s2667_s28 + $0x40] sm:$0xff] %vm1380_vm5, %v1372_v7 }
 0x390   : > { %v1537_v30 = vmul.f32 %v3435_v38, %v1372_v7  ;;  %v1892_v48 = vsel %vm1380_vm5, %v3734_v22, -inf  ;;  %v1594_v24 = vmul.f32 %v3453_v37, %v1372_v7  ;;  %v1650_v28 = vmul.f32 %v1372_v7, %v1372_v7 }
 0x391   : > { %1390 = vst.msk [vmem:[%s2667_s28 + $0x48] sm:$0xff] %vm1380_vm5, %v1373_v19  ;;  %v1857_v50 = vsub.f32 0.0, %v1372_v7  ;;  %v1686_v57 = vadd.f32 %v1685_v27, %v1684_v16  ;;  %v1742_v35 = vadd.f32 %v1741_v21, %v1740_v1  ;;  %v1559_v34 = vadd.f32 %v1558_v14, %v1557_v6 }
 0x392   : > { %v1616_v36 = vadd.f32 %v1615_v2, %v1614_v42  ;;  %v1687_v12 = vsel %vm1380_vm5, %v1665_v39, 0.0  ;;  %v1743_v49 = vsel %vm1380_vm5, %v1721_v13, 0.0  ;;  %v1899_v0 = vmax.f32 %v1892_v48, %v1897_v51  ;;  %v1341_v46 = vpop.xlane.xlu0 %1340 }
 0x393   : > { %v1560_v5 = vsel %vm1380_vm5, %v1537_v30, 0.0  ;;  %v1617_v3 = vsel %vm1380_vm5, %v1594_v24, 0.0  ;;  %v1666_v53 = vmul.f32 %v1650_v28, %v3435_v38  ;;  %v1722_v8 = vmul.f32 %v1650_v28, %v3453_v37 }
 0x394   : > { %v3752_v23 = vsel %vm1440_vm11, %v1857_v50, -1e+30  ;;  %v1538_v15 = vmul.f32 %v3458_v63, %v1373_v19  ;;  %v1595_v26 = vmul.f32 %v3472_v18, %v1373_v19  ;;  %v1651_v16 = vmul.f32 %v1373_v19, %v1373_v19 }
 0x395   : > { %v1894_v59 = vsel %vm1380_vm5, %v3752_v23, -inf  ;;  %v1688_v55 = vadd.f32 %v1687_v12, %v1686_v57  ;;  %v1744_v32 = vadd.f32 %v1743_v49, %v1742_v35  ;;  %v1561_v1 = vadd.f32 %v1560_v5, %v1559_v34 }
 0x396   : > { %v1858_v6 = vsub.f32 0.0, %v1373_v19  ;;  %v1344_v42 = vpop.xlane.xlu1 %1343  ;;  %v1618_v38 = vadd.f32 %v1617_v3, %v1616_v36  ;;  %v1689_v37 = vsel %vm1380_vm5, %v1666_v53, 0.0  ;;  %v1745_v9 = vsel %vm1380_vm5, %v1722_v8, 0.0 }
 0x397   : > { %v1562_v14 = vsel %vm1380_vm5, %v1538_v15, 0.0  ;;  %v1901_v45 = vmax.f32 %v1894_v59, %v1899_v0  ;;  %v1619_v7 = vsel %vm1380_vm5, %v1595_v26, 0.0  ;;  %v1667_v27 = vmul.f32 %v1651_v16, %v3458_v63 }
 0x398   : > { %v1723_v21 = vmul.f32 %v1651_v16, %v3472_v18  ;;  %v3766_v19 = vsel %vm1441_vm12, %v1858_v6, -1e+30  ;;  %v1374_v51 = vadd.f32 %v3600_v29, %v1341_v46  ;;  %v1375_v2 = vadd.f32 %v3600_v29, %v1344_v42 }
 0x399   : > { %v1690_v13 = vadd.f32 %v1689_v37, %v1688_v55  ;;  %v1746_v30 = vadd.f32 %v1745_v9, %v1744_v32  ;;  %v1563_v48 = vadd.f32 %v1562_v14, %v1561_v1  ;;  %v1691_v24 = vsel %vm1380_vm5, %v1667_v27, 0.0 }
 0x39a   : > { %v1347_v40 = vpop.xlane.xlu0 %1346  ;;  %v1620_v28 = vadd.f32 %v1619_v7, %v1618_v38  ;;  %v1747_v63 = vsel %vm1380_vm5, %v1723_v21, 0.0  ;;  %v1896_v18 = vsel %vm1380_vm5, %v3766_v19, -inf  ;;  %1391 = vst.msk [vmem:[%s2667_s28 + $0x50] sm:$0xff] %vm1380_vm5, %v1374_v51  ;;  %v1539_v47 = vmul.f32 %v3477_v33, %v1374_v51  ;;  %1392 = vst.msk [vmem:[%s2667_s28 + $0x58] sm:$0xff] %vm1380_vm5, %v1375_v2 }
 0x39b   : > { %v1376_v39 = vadd.f32 %v3600_v29, %v1347_v40  ;;  %v1596_v50 = vmul.f32 %v3494_v60, %v1374_v51  ;;  %v1652_v57 = vmul.f32 %v1374_v51, %v1374_v51  ;;  %v1859_v35 = vsub.f32 0.0, %v1374_v51 }
 0x39c   : > { %v1540_v34 = vmul.f32 %v3499_v17, %v1375_v2  ;;  %v1692_v36 = vadd.f32 %v1691_v24, %v1690_v13  ;;  %v1564_v12 = vsel %vm1380_vm5, %v1539_v47, 0.0  ;;  %v1597_v49 = vmul.f32 %v3516_v62, %v1375_v2 }
 0x39d   : > { %1393 = vst.msk [vmem:[%s2667_s28 + $0x60] sm:$0xff] %vm1380_vm5, %v1376_v39  ;;  %v1653_v0 = vmul.f32 %v1375_v2, %v1375_v2  ;;  %v1621_v5 = vsel %vm1380_vm5, %v1596_v50, 0.0  ;;  %v1668_v46 = vmul.f32 %v1652_v57, %v3477_v33  ;;  %v1724_v3 = vmul.f32 %v1652_v57, %v3494_v60 }
 0x39e   : > { %v1860_v53 = vsub.f32 0.0, %v1375_v2  ;;  %v1903_v8 = vmax.f32 %v1896_v18, %v1901_v45  ;;  %v1565_v59 = vadd.f32 %v1564_v12, %v1563_v48  ;;  %v3791_v15 = vsel %vm1442_vm13, %v1859_v35, -1e+30  ;;  %v1350_v6 = vpop.xlane.xlu1 %1349 }
 0x39f   : > { %v1566_v26 = vsel %vm1380_vm5, %v1540_v34, 0.0  ;;  %v1748_v16 = vadd.f32 %v1747_v63, %v1746_v30  ;;  %v1622_v55 = vadd.f32 %v1621_v5, %v1620_v28  ;;  %v1898_v32 = vsel %vm1380_vm5, %v3791_v15, -inf }
 0x3a0   : > { %v1623_v1 = vsel %vm1380_vm5, %v1597_v49, 0.0  ;;  %v1693_v33 = vsel %vm1380_vm5, %v1668_v46, 0.0  ;;  %v1749_v60 = vsel %vm1380_vm5, %v1724_v3, 0.0  ;;  %v1905_v42 = vmax.f32 %v1898_v32, %v1903_v8 }
 0x3a1   : > { %v1567_v38 = vadd.f32 %v1566_v26, %v1565_v59  ;;  %v1669_v11 = vmul.f32 %v1653_v0, %v3499_v17  ;;  %v1725_v37 = vmul.f32 %v1653_v0, %v3516_v62  ;;  %v3803_v9 = vsel %vm1443_vm14, %v1860_v53, -1e+30 }
 0x3a2   : > { %v1541_v14 = vmul.f32 %v3521_v56, %v1376_v39  ;;  %v1900_v40 = vsel %vm1380_vm5, %v3803_v9, -inf  ;;  %v1598_v45 = vmul.f32 %v3537_v44, %v1376_v39  ;;  %v1654_v7 = vmul.f32 %v1376_v39, %v1376_v39  ;;  %v1353_v13 = vpop.xlane.xlu0 %1352 }
 0x3a3   : > { %v1861_v27 = vsub.f32 0.0, %v1376_v39  ;;  %v1694_v21 = vadd.f32 %v1693_v33, %v1692_v36  ;;  %v1750_v51 = vadd.f32 %v1749_v60, %v1748_v16  ;;  %v1624_v2 = vadd.f32 %v1623_v1, %v1622_v55  ;;  %v4059_v33 = vld [vmem:[#allocation31_spill] sm:$0xff] }
 0x3a4   : > { %v1695_v17 = vsel %vm1380_vm5, %v1669_v11, 0.0  ;;  %v1751_v61 = vsel %vm1380_vm5, %v1725_v37, 0.0  ;;  %v1910_v30 = vmax.f32 %v1900_v40, %v1905_v42  ;;  %v1568_v48 = vsel %vm1380_vm5, %v1541_v14, 0.0 }
 0x3a5   : > { %v1625_v24 = vsel %vm1380_vm5, %v1598_v45, 0.0  ;;  %v1696_v28 = vadd.f32 %v1695_v17, %v1694_v21  ;;  %v1670_v63 = vmul.f32 %v1654_v7, %v3521_v56  ;;  %v1726_v39 = vmul.f32 %v1654_v7, %v3537_v44 }
 0x3a6   : > { %v1356_v62 = vpop.xlane.xlu1 %1355  ;;  %v3817_v18 = vsel %vm1444_vm15, %v1861_v27, -1e+30  ;;  %v1377_v50 = vadd.f32 %v3600_v29, %v1350_v6  ;;  %v1378_v57 = vadd.f32 %v3600_v29, %v1353_v13  ;;  %v1752_v34 = vadd.f32 %v1751_v61, %v1750_v51  ;;  %v4063_v61 = vld [vmem:[#allocation38_spill] sm:$0xff] }
 0x3a7   : > { %v1902_v47 = vsel %vm1380_vm5, %v3817_v18, -inf  ;;  %v1379_v35 = vadd.f32 %v3600_v29, %v1356_v62  ;;  %v1569_v36 = vadd.f32 %v1568_v48, %v1567_v38  ;;  %v1626_v56 = vadd.f32 %v1625_v24, %v1624_v2  ;;  %v4062_v2 = vld [vmem:[#allocation37_spill] sm:$0xff] }
 0x3a8   : > { %v1697_v12 = vsel %vm1380_vm5, %v1670_v63, 0.0  ;;  %v1753_v44 = vsel %vm1380_vm5, %v1726_v39, 0.0  ;;  %v1907_v58 = vmax.f32 %v1902_v47, %v1910_v30  ;;  %1394 = vst.msk [vmem:[%s2667_s28 + $0x68] sm:$0xff] %vm1380_vm5, %v1377_v50  ;;  %v1542_v49 = vmul.f32 %v3542_v31, %v1377_v50  ;;  %1395 = vst.msk [vmem:[%s2667_s28 + $0x70] sm:$0xff] %vm1380_vm5, %v1378_v57 }
 0x3a9   : > { %v1599_v0 = vmul.f32 %v3552_v41, %v1377_v50  ;;  %1396 = vst.msk [vmem:[%s2667_s28 + $0x78] sm:$0xff] %vm1380_vm5, %v1379_v35  ;;  %v1698_v5 = vadd.f32 %v1697_v12, %v1696_v28  ;;  %v1655_v29 = vmul.f32 %v1377_v50, %v1377_v50  ;;  %v1862_v46 = vsub.f32 0.0, %v1377_v50  ;;  %v4064_v12 = vld [vmem:[#allocation35_spill] sm:$0xff] }
 0x3aa   : > { %v1543_v3 = vmul.f32 %v3567_v25, %v1378_v57  ;;  %v1570_v53 = vsel %vm1380_vm5, %v1542_v49, 0.0  ;;  %v1600_v59 = vmul.f32 %v3574_v43, %v1378_v57  ;;  %v1656_v26 = vmul.f32 %v1378_v57, %v1378_v57 }
 0x3ab   : > { %v1627_v8 = vsel %vm1380_vm5, %v1599_v0, 0.0  ;;  %v1754_v16 = vadd.f32 %v1753_v44, %v1752_v34  ;;  %v1671_v55 = vmul.f32 %v1655_v29, %v3542_v31  ;;  %v1727_v32 = vmul.f32 %v1655_v29, %v3552_v41 }
 0x3ac   : > { %v1863_v1 = vsub.f32 0.0, %v1378_v57  ;;  %v1571_v6 = vadd.f32 %v1570_v53, %v1569_v36  ;;  %vm4060_vm2 = vcmp.lt.s32.totalorder %v4059_v33, 300  ;;  %v1572_v42 = vsel %vm1380_vm5, %v1543_v3, 0.0 }
 0x3ad   : > { %v3842_v60 = vsel %vm4060_vm2, %v1862_v46, -1e+30  ;;  %v1672_v38 = vmul.f32 %v1656_v26, %v3567_v25  ;;  %v1628_v11 = vadd.f32 %v1627_v8, %v1626_v56  ;;  %v1699_v37 = vsel %vm1380_vm5, %v1671_v55, 0.0 }
 0x3ae   : > { %v1755_v14 = vsel %vm1380_vm5, %v1727_v32, 0.0  ;;  %v1904_v31 = vsel %vm1380_vm5, %v3842_v60, -inf  ;;  %v1700_v40 = vadd.f32 %v1699_v37, %v1698_v5  ;;  %v1573_v45 = vadd.f32 %v1572_v42, %v1571_v6 }
 0x3af   : > { %v1756_v41 = vadd.f32 %v1755_v14, %v1754_v16  ;;  %v1629_v7 = vsel %vm1380_vm5, %v1600_v59, 0.0  ;;  %v1701_v27 = vsel %vm1380_vm5, %v1672_v38, 0.0  ;;  %v1728_v21 = vmul.f32 %v1656_v26, %v3574_v43 }
 0x3b0   : > { %v3855_v25 = vsel %vm1446_vm1, %v1863_v1, -1e+30  ;;  %v1544_v17 = vmul.f32 %v4062_v2, %v1379_v35  ;;  %v1909_v13 = vmax.f32 %v1904_v31, %v1907_v58  ;;  %v1601_v30 = vmul.f32 %v4063_v61, %v1379_v35 }
 0x3b1   : > { %v1906_v62 = vsel %vm1380_vm5, %v3855_v25, -inf  ;;  %v1657_v48 = vmul.f32 %v1379_v35, %v1379_v35  ;;  %v1630_v24 = vadd.f32 %v1629_v7, %v1628_v11  ;;  %v1757_v28 = vsel %vm1380_vm5, %v1728_v21, 0.0  ;;  %v1585_v21 = vld [vmem:[#allocation3] sm:$0x1] }
 0x3b2   : > { %v1574_v63 = vsel %vm1380_vm5, %v1544_v17, 0.0  ;;  %v1864_v39 = vsub.f32 0.0, %v1379_v35  ;;  %v1702_v43 = vadd.f32 %v1701_v27, %v1700_v40  ;;  %v1631_v50 = vsel %vm1380_vm5, %v1601_v30, 0.0  ;;  %v3874_v30 = vld [vmem:[#allocation8] sm:$0x1] }
 0x3b3   : > { %v1575_v47 = vadd.f32 %v1574_v63, %v1573_v45  ;;  %v1673_v57 = vmul.f32 %v1657_v48, %v4062_v2  ;;  %v1911_v34 = vmax.f32 %v1906_v62, %v1909_v13  ;;  %v1632_v36 = vadd.f32 %v1631_v50, %v1630_v24 }
 0x3b4   : > { %v1729_v56 = vmul.f32 %v1657_v48, %v4063_v61  ;;  %vm4065_vm3 = vcmp.lt.s32.totalorder %v4064_v12, 300  ;;  %v1758_v58 = vadd.f32 %v1757_v28, %v1756_v41  ;;  %v1528_v41 = vld [vmem:[#allocation2] sm:$0x1]  ;;  %v1641_v61 = vld [vmem:[#allocation4] sm:$0x1] }
 0x3b5   : > { %v3868_v44 = vsel %vm4065_vm3, %v1864_v39, -1e+30  ;;  %v1576_v49 = vrot.slane %v1575_v47, 4  ;;  %v1703_v0 = vsel %vm1380_vm5, %v1673_v57, 0.0  ;;  %v1633_v5 = vrot.slane %v1632_v36, 4 }
 0x3b6   : > { %v1908_v35 = vsel %vm1380_vm5, %v3868_v44, -inf  ;;  %v1704_v29 = vadd.f32 %v1703_v0, %v1702_v43  ;;  %v1759_v46 = vsel %vm1380_vm5, %v1729_v56, 0.0  ;;  %v1713_v28 = vld [vmem:[#allocation5] sm:$0x1] }
 0x3b7   : > { %v1912_v3 = vmax.f32 %v1908_v35, %v1911_v34  ;;  %v1577_v53 = vadd.f32 %v1576_v49, %v1575_v47  ;;  %v1760_v8 = vadd.f32 %v1759_v46, %v1758_v58  ;;  %v1634_v59 = vadd.f32 %v1633_v5, %v1632_v36  ;;  %v4066_v36 = vld [vmem:[#allocation17_spill] sm:$0xff]  ;;  %v4067_v58 = vld [vmem:[#allocation39_spill] sm:$0xff]  ;;  %v4068_v35 = vld [vmem:[#allocation40_spill] sm:$0xff] }
 0x3b8   : > { %v1705_v26 = vrot.slane %v1704_v29, 4 }
 0x3b9   : > { %v1913_v16 = vrot.slane %v1912_v3, 4  ;;  %v1578_v55 = vrot.slane %v1577_v53, 2  ;;  %v1761_v32 = vrot.slane %v1760_v8, 4  ;;  %v1635_v1 = vrot.slane %v1634_v59, 2 }
 0x3ba   : > { %v1706_v6 = vadd.f32 %v1705_v26, %v1704_v29 }
 0x3bb   : > { %v1914_v33 = vmax.f32 %v1912_v3, %v1913_v16  ;;  %v1579_v42 = vadd.f32 %v1578_v55, %v1577_v53  ;;  %v1762_v38 = vadd.f32 %v1761_v32, %v1760_v8  ;;  %v1636_v11 = vadd.f32 %v1635_v1, %v1634_v59 }
 0x3bc   : > { %v1707_v37 = vrot.slane %v1706_v6, 2 }
 0x3bd   : > { %v1915_v14 = vrot.slane %v1914_v33, 2  ;;  %v1580_v31 = vrot.slane %v1579_v42, 1  ;;  %v1763_v40 = vrot.slane %v1762_v38, 2  ;;  %v1637_v45 = vrot.slane %v1636_v11, 1 }
 0x3be   : > { %v1708_v7 = vadd.f32 %v1707_v37, %v1706_v6 }
 0x3bf   : > { %v1916_v27 = vmax.f32 %v1914_v33, %v1915_v14  ;;  %v1581_v51 = vadd.f32 %v1580_v31, %v1579_v42  ;;  %v1764_v2 = vadd.f32 %v1763_v40, %v1762_v38  ;;  %v1638_v17 = vadd.f32 %v1637_v45, %v1636_v11  ;;  %v4070_v14 = vld [vmem:[#allocation19_spill] sm:$0xff] }
 0x3c0   : > { %v1709_v13 = vrot.slane %v1708_v7, 1 }
 0x3c1   : > { %v1917_v62 = vrot.slane %v1916_v27, 1  ;;  %v1582_v48 = vadd.f32 %v1581_v51, %v1528_v41  ;;  %v1765_v24 = vrot.slane %v1764_v2, 1  ;;  %v1639_v63 = vadd.f32 %v1638_v17, %v1585_v21  ;;  %v4071_v41 = vld [vmem:[#allocation20_spill] sm:$0xff]  ;;  %v4072_v21 = vld [vmem:[#allocation21_spill] sm:$0xff] }
 0x3c2   : > { %v1710_v39 = vadd.f32 %v1709_v13, %v1708_v7 }
 0x3c3   : > { %v1918_v43 = vmax.f32 %v1916_v27, %v1917_v62  ;;  %1584 = vst.msk [vmem:[#allocation2] sm:$0x1] %vm1583_vm0, %v1582_v48  ;;  %v1766_v47 = vadd.f32 %v1765_v24, %v1764_v2  ;;  %1640 = vst.msk [vmem:[#allocation3] sm:$0x1] %vm1583_vm0, %v1639_v63  ;;  %v4073_v62 = vld [vmem:[#allocation22_spill] sm:$0xff] }
 0x3c4   : > { %v1711_v50 = vadd.f32 %v1710_v39, %v1641_v61 }
 0x3c5   : > { %v3879_v57 = vmax.f32 %v3874_v30, %v1918_v43  ;;  %v1767_v34 = vadd.f32 %v1766_v47, %v1713_v28  ;;  %v4074_v43 = vld [vmem:[#allocation23_spill] sm:$0xff] }
 0x3c6   : > { %1712 = vst.msk [vmem:[#allocation4] sm:$0x1] %vm1583_vm0, %v1711_v50 }
 0x3c7   : > { %v3884_v56 = vrot.slane %v3879_v57, %v4066_v36  ;;  %2034 = vst.msk [vmem:[#allocation8] sm:$0x1] %vm1583_vm0, %v3879_v57  ;;  %1768 = vst.msk [vmem:[#allocation5] sm:$0x1] %vm1583_vm0, %v1767_v34 }
 0x3c9   : > { %v1931_v12 = vsub.f32 %v3624_v54, %v3884_v56  ;;  %v1932_v49 = vsub.f32 %v4067_v58, %v3884_v56  ;;  %v1933_v0 = vsub.f32 %v3642_v10, %v3884_v56  ;;  %v1934_v5 = vsub.f32 %v4068_v35, %v3884_v56 }
 0x3ca   : > { %v1935_v29 = vsub.f32 %v3684_v4, %v3884_v56  ;;  %v1936_v46 = vsub.f32 %v3698_v20, %v3884_v56  ;;  %v1937_v54 = vsub.f32 %v3719_v52, %v3884_v56  ;;  %v1938_v10 = vsub.f32 %v3734_v22, %v3884_v56 }
 0x3cb   : > { %v1947_v3 = vmul.f32 1.442695, %v1931_v12  ;;  %v1949_v53 = vmul.f32 1.442695, %v1932_v49  ;;  %v1951_v8 = vmul.f32 1.442695, %v1933_v0  ;;  %v1939_v4 = vsub.f32 %v3752_v23, %v3884_v56 }
 0x3cc   : > { %v1953_v59 = vmul.f32 1.442695, %v1934_v5  ;;  %v1955_v26 = vmul.f32 1.442695, %v1935_v29  ;;  %v1957_v16 = vmul.f32 1.442695, %v1936_v46  ;;  %v1940_v55 = vsub.f32 %v3766_v19, %v3884_v56 }
 0x3cd   : > { %2427 = vpow2.f32 %v1947_v3  ;;  %v1959_v20 = vmul.f32 1.442695, %v1937_v54  ;;  %v1961_v52 = vmul.f32 1.442695, %v1938_v10  ;;  %v1941_v32 = vsub.f32 %v3791_v15, %v3884_v56  ;;  %v4069_v19 = vld [vmem:[#allocation18_spill] sm:$0xff]  ;;  %v4075_v12 = vld [vmem:[#allocation24_spill] sm:$0xff] }
 0x3ce   : > { %2429 = vpow2.f32 %v1949_v53  ;;  %v1963_v1 = vmul.f32 1.442695, %v1939_v4  ;;  %v1942_v22 = vsub.f32 %v3803_v9, %v3884_v56  ;;  %v1965_v6 = vmul.f32 1.442695, %v1940_v55  ;;  %v4077_v53 = vld [vmem:[#allocation26_spill] sm:$0xff]  ;;  %v4078_v10 = vld [vmem:[#allocation27_spill] sm:$0xff] }
 0x3cf   : > { %2431 = vpow2.f32 %v1951_v8  ;;  %v1943_v42 = vsub.f32 %v3817_v18, %v3884_v56  ;;  %v1967_v38 = vmul.f32 1.442695, %v1941_v32  ;;  %v1944_v15 = vsub.f32 %v3842_v60, %v3884_v56 }
 0x3d0   : > { %2433 = vpow2.f32 %v1953_v59  ;;  %v1969_v9 = vmul.f32 1.442695, %v1942_v22  ;;  %v1945_v17 = vsub.f32 %v3855_v25, %v3884_v56  ;;  %v1946_v28 = vsub.f32 %v3868_v44, %v3884_v56  ;;  %v4076_v44 = vld [vmem:[#allocation25_spill] sm:$0xff] }
 0x3d1   : > { %2435 = vpow2.f32 %v1955_v26  ;;  %v1971_v60 = vmul.f32 1.442695, %v1943_v42  ;;  %v1973_v63 = vmul.f32 1.442695, %v1944_v15 }
 0x3d2   : > { %2437 = vpow2.f32 %v1957_v16  ;;  %v1975_v25 = vmul.f32 1.442695, %v1945_v17  ;;  %v1977_v35 = vmul.f32 1.442695, %v1946_v28 }
 0x3d3   : > { %2439 = vpow2.f32 %v1959_v20 }
 0x3d4   : > { %2441 = vpow2.f32 %v1961_v52  ;;  %v4079_v52 = vld [vmem:[#allocation28_spill] sm:$0xff] }
 0x3d5   : > { %2443 = vpow2.f32 %v1963_v1 }
 0x3d6   : > { %2445 = vpow2.f32 %v1965_v6 }
 0x3d7   : > { %v2428_v33 = vpop.eup %2427  ;;  %2447 = vpow2.f32 %v1967_v38 }
 0x3d8   : > { %v2430_v23 = vpop.eup %2429  ;;  %v1979_v11 = vmul.f32 %v2428_v33, %v4069_v19  ;;  %2449 = vpow2.f32 %v1969_v9  ;;  %v4080_v33 = vld [vmem:[#allocation29_spill] sm:$0xff]  ;;  %v4082_v9 = vld [vmem:[#allocation32_spill] sm:$0xff] }
 0x3d9   : > { %v2432_v37 = vpop.eup %2431  ;;  %v1980_v31 = vmul.f32 %v2430_v23, %v4070_v14  ;;  %2451 = vpow2.f32 %v1971_v60  ;;  %v4084_v60 = vld [vmem:[#allocation36_spill] sm:$0xff] }
 0x3da   : > { %v2434_v40 = vpop.eup %2433  ;;  %v1981_v45 = vmul.f32 %v2432_v37, %v4071_v41  ;;  %v1995_v7 = vsel %vm1380_vm5, %v1979_v11, 0.0  ;;  %2453 = vpow2.f32 %v1973_v63  ;;  %v4081_v11 = vld [vmem:[#allocation30_spill] sm:$0xff] }
 0x3db   : > { %v2436_v27 = vpop.eup %2435  ;;  %v1982_v18 = vmul.f32 %v2434_v40, %v4072_v21  ;;  %v1996_v51 = vsel %vm1380_vm5, %v1980_v31, 0.0  ;;  %2455 = vpow2.f32 %v1975_v25  ;;  %v1921_v40 = vsub.f32 %v3874_v30, %v3879_v57  ;;  %v4083_v21 = vld [vmem:[#allocation34_spill] sm:$0xff] }
 0x3dc   : > { %v2438_v2 = vpop.eup %2437  ;;  %v1997_v13 = vadd.f32 %v1996_v51, %v1995_v7  ;;  %v1983_v61 = vmul.f32 %v2436_v27, %v4073_v62  ;;  %v1998_v48 = vsel %vm1380_vm5, %v1981_v45, 0.0  ;;  %2457 = vpow2.f32 %v1977_v35  ;;  %v2039_v35 = vld [vmem:[#allocation2] sm:$0x1] (!%p2215_p4) }
 0x3dd   : > { %v2440_v24 = vpop.eup %2439  ;;  %v1984_v47 = vmul.f32 %v2438_v2, %v4074_v43  ;;  %v2000_v50 = vsel %vm1380_vm5, %v1982_v18, 0.0  ;;  %v1922_v17 = vmul.f32 1.442695, %v1921_v40 }
 0x3de   : > { %v1999_v39 = vadd.f32 %v1998_v48, %v1997_v13  ;;  %v2442_v34 = vpop.eup %2441  ;;  %v1985_v58 = vmul.f32 %v2440_v24, %v4075_v12  ;;  %v2002_v49 = vsel %vm1380_vm5, %v1983_v61, 0.0 }
 0x3df   : > { %v2444_v0 = vpop.eup %2443  ;;  %v1986_v56 = vmul.f32 %v2442_v34, %v4076_v44  ;;  %v2004_v29 = vsel %vm1380_vm5, %v1984_v47, 0.0  ;;  %2459 = vpow2.f32 %v1922_v17  ;;  %v2043_v44 = vld [vmem:[#allocation3] sm:$0x1] (!%p2215_p4) }
 0x3e0   : > { %v2001_v36 = vadd.f32 %v2000_v50, %v1999_v39  ;;  %v2446_v46 = vpop.eup %2445  ;;  %v1987_v54 = vmul.f32 %v2444_v0, %v4077_v53  ;;  %v2006_v8 = vsel %vm1380_vm5, %v1985_v58, 0.0  ;;  %v1920_v50 = vld [vmem:[#allocation9] sm:$0x1]  ;;  %v2040_v58 = vld [vmem:[#allocation6] sm:$0x1] (!%p2215_p4) }
 0x3e1   : > { %v2448_v59 = vpop.eup %2447  ;;  %v1988_v16 = vmul.f32 %v2446_v46, %v4078_v10  ;;  %v2008_v4 = vsel %vm1380_vm5, %v1986_v56, 0.0  ;;  %2461 = vrcp.f32 (!%p2215_p4), %v2040_v58  ;;  %v2056_v56 = vld [vmem:[#allocation5] sm:$0x1] (!%p2215_p4) }
 0x3e2   : > { %v2003_v5 = vadd.f32 %v2002_v49, %v2001_v36  ;;  %v2450_v20 = vpop.eup %2449  ;;  %v1989_v32 = vmul.f32 %v2448_v59, %v4079_v52  ;;  %v2010_v1 = vsel %vm1380_vm5, %v1987_v54, 0.0  ;;  %v2044_v49 = vld [vmem:[#allocation7] sm:$0x1] (!%p2215_p4)  ;;  %v2047_v59 = vld [vmem:[#allocation8] sm:$0x1] (!%p2215_p4) }
 0x3e3   : > { %v2452_v22 = vpop.eup %2451  ;;  %v1990_v23 = vmul.f32 %v2450_v20, %v4080_v33  ;;  %v2012_v42 = vsel %vm1380_vm5, %v1988_v16, 0.0  ;;  %2463 = vrcp.f32 (!%p2215_p4), %v2044_v49 }
 0x3e4   : > { %v2005_v3 = vadd.f32 %v2004_v29, %v2003_v5  ;;  %v2454_v38 = vpop.eup %2453  ;;  %v1991_v37 = vmul.f32 %v2452_v22, %v4081_v11  ;;  %v2014_v15 = vsel %vm1380_vm5, %v1989_v32, 0.0  ;;  %v2054_v5 = vld [vmem:[#allocation4] sm:$0x1] (!%p2215_p4) }
 0x3e5   : > { %v2456_v14 = vpop.eup %2455  ;;  %v1992_v41 = vmul.f32 %v2454_v38, %v4082_v9  ;;  %v2016_v45 = vsel %vm1380_vm5, %v1990_v23, 0.0 }
 0x3e6   : > { %v2007_v26 = vadd.f32 %v2006_v8, %v2005_v3  ;;  %v2458_v7 = vpop.eup %2457  ;;  %v1993_v18 = vmul.f32 %v2456_v14, %v4083_v21  ;;  %v2018_v51 = vsel %vm1380_vm5, %v1991_v37, 0.0 }
 0x3e7   : > { %v1994_v13 = vmul.f32 %v2458_v7, %v4084_v60  ;;  %v2020_v62 = vsel %vm1380_vm5, %v1992_v41, 0.0 }
 0x3e8   : > { %v2009_v55 = vadd.f32 %v2008_v4, %v2007_v26  ;;  %v2022_v48 = vsel %vm1380_vm5, %v1993_v18, 0.0 }
 0x3e9   : > { %v2024_v57 = vsel %vm1380_vm5, %v1994_v13, 0.0  ;;  %v2460_v47 = vpop.eup %2459 }
 0x3ea   : > { %v2011_v6 = vadd.f32 %v2010_v1, %v2009_v55  ;;  %v1924_v25 = vmul.f32 %v2460_v47, %v1920_v50 }
 0x3eb   : > { %v2462_v29 = vpop.eup (!%p2215_p4), %2461 }
 0x3ec   : > { %v2013_v19 = vadd.f32 %v2012_v42, %v2011_v6  ;;  %v2042_v3 = vmul.f32 (!%p2215_p4), %v2462_v29, %v2039_v35  ;;  %v2055_v53 = vmul.f32 (!%p2215_p4), %v2462_v29, %v2054_v5 }
 0x3ed   : > { %v2464_v46 = vpop.eup (!%p2215_p4), %2463 }
 0x3ee   : > { %v2015_v31 = vadd.f32 %v2014_v15, %v2013_v19  ;;  %v2046_v8 = vmul.f32 (!%p2215_p4), %v2464_v46, %v2043_v44  ;;  %v2057_v26 = vmul.f32 (!%p2215_p4), %v2464_v46, %v2056_v56 }
 0x3f0   : > { %v2017_v27 = vadd.f32 %v2016_v45, %v2015_v31  ;;  %v2058_v16 = vadd.f32 (!%p2215_p4), %v2057_v26, %v2055_v53  ;;  %v2053_v20 = vsub.f32 (!%p2215_p4), %v2042_v3, %v2046_v8 }
 0x3f2   : > { %v2019_v2 = vadd.f32 %v2018_v51, %v2017_v27  ;;  %v2059_v52 = vmul.f32 (!%p2215_p4), 0.2, %v2058_v16 }
 0x3f4   : > { %v2021_v61 = vadd.f32 %v2020_v62, %v2019_v2 }
 0x3f6   : > { %v2023_v30 = vadd.f32 %v2022_v48, %v2021_v61 }
 0x3f8   : > { %v2025_v24 = vadd.f32 %v2024_v57, %v2023_v30 }
 0x3fa   : > { %v2026_v28 = vrot.slane %v2025_v24, 4 }
 0x3fc   : > { %v2027_v63 = vadd.f32 %v2026_v28, %v2025_v24 }
 0x3fe   : > { %v2028_v39 = vrot.slane %v2027_v63, 2 }
 0x400   : > { %v2029_v43 = vadd.f32 %v2028_v39, %v2027_v63 }
 0x402   : > { %v2030_v34 = vrot.slane %v2029_v43, 1  ;;  %2038 = sbr.rel (%p2215_p4) target bundleno = 1062 (0x426), region = 72 }
 0x404   : > { %v2031_v36 = vadd.f32 %v2030_v34, %v2029_v43 }
 0x406   : > { %v2032_v12 = vadd.f32 %v2031_v36, %v1924_v25 }
 0x408   : > { %2033 = vst.msk [vmem:[#allocation9] sm:$0x1] %vm1583_vm0, %v2032_v12 }
 0x40f   : > { %v2048_v0 = vld [vmem:[#allocation9] sm:$0x1] }
 0x410   : > { %2465 = vlog2.f32 %v2048_v0 }
 0x41a   : > { %v2466_v54 = vpop.eup %2465 }
 0x41b   : > { %v2050_v10 = vmul.f32 0.6931472, %v2466_v54 }
 0x41d   : > { %v2051_v4 = vadd.f32 %v2050_v10, %v2047_v59 }
 0x41f   : > { %v2052_v55 = vadd.f32 %v2051_v4, %v2042_v3 }
 0x421   : > { %v2060_v32 = vadd.f32 %v2053_v20, %v2052_v55 }
 0x423   : > { %v2061_v1 = vadd.f32 %v2060_v32, %v2059_v52 }
 0x425   : > { %2062 = vst.msk [vmem:[#allocation14] sm:$0x1] %vm1583_vm0, %v2061_v1 }
 0x426 PF: > { %p2410_p6 = scmp.eq.s32.totalorder %s2613_s20, 2  ;;  %s2543_s24 = smov [#allocation14]  }
 0x427   : > { %s2079_s28 = sshll.u32 %s2543_s24, 4  ;;  %s2080_s28 = int_to_ptr.vmem [resolvable:$true] %s2079_s28 }
 0x428   : > { %s2495_s13 = scalar_lea.vmem %s2080_s28, 16  ;;  %s2501_s14 = scalar_lea.vmem %s2080_s28, 32 }
 0x429   : > { %p2496_p10 = scmp.ne.s32.totalorder %s2080_s28, %s2495_s13  ;;  %p2502_p13 = scmp.lt.s32.totalorder %s2080_s28, %s2080_s28 }
 0x42a   : > { %p2503_p0 = scmp.lt.s32.totalorder %s2501_s14, %s2495_s13 }
 0x42b   : > { %p2497_p11 = pnand %p2496_p10, %p2410_p6 }
 0x42c   : > { %p2504_p1 = por %p2503_p0, %p2502_p13 }
 0x42d   : > { %p2498_p12 = pneg %p2497_p11 }
 0x42f   : > { %p2505_p5 = pnand %p2504_p1, %p2498_p12 }
 0x431   : > { %2508 = shalt.err (!%p2505_p5)
}
 0x432   : > { %s2509_s16 = scalar_lea.hbm %s3995_s11, 16 }
 0x433   : > { %p2510_p7 = scmp.ne.s32.totalorder %s3995_s11, %s2509_s16  ;;  %p2515_p2 = scmp.lt.u32.totalorder %s2509_s16, %s3995_s11 }
 0x435   : > { %p2511_p9 = pnand %p2510_p7, %p2410_p6 }
 0x437   : > { %p2512_p8 = pneg %p2511_p9 }
 0x439   : > { %p2517_p3 = pnand %p2515_p2, %p2512_p8 }
 0x43b   : > { %2520 = shalt.err (!%p2517_p3)
}
 0x43c   : > { %2401 = dma.vmem_to_hbm [thread:$0]  (%p2410_p6), %s2080_s28, 16, %s3995_s11, [#allocation13]  }
 0x43d   : > { %2530 = dma.done.wait (%p2410_p6), [#allocation13], 16  }
 0x43e   : > { %2532 = vsyncadd (%p2410_p6), [#allocation13], 4294967280 }
 0x43f PF: > { %s26_s19 = sadd.s32 1, %s2535_s19  }
 0x440   : > { %p23_p4 = scmp.ge.s32.totalorder %s26_s19, 5  }
 0x442   :  { %25 = sbr.rel (!%p23_p4) target bundleno = 5 (0x5), region = 115 }
 0x449   :  { %2100 = vsyncpa [#allocation12], 1 }
 0x44a   :  { %2102 = vsyncpa [#allocation12 + $0x1], 1 }
 0x44b   :  { %2103 = vsyncpa [#allocation13], 1 }
 0x44c   :  { %2105 = vsyncpa [#allocation13 + $0x1], 1 }

</bundles_post_ra>
